<compile_context>
chip_gen: v5e
topology: v5e:2x2
jax: 0.10.0
libtpu: 0.0.40
codegen_flags: <defaults>
</compile_context>

<pallas_src>
import functools

import jax
import jax.numpy as jnp
import numpy as np
from jax.experimental import pallas as pl
from jax.experimental.pallas import tpu as pltpu


def _round_up(x, m):
    return ((x + m - 1) // m) * m


# -----------------------------------------------------------------------------
# Kernel: one bidirectional GRU layer, both directions fused into a single
# time loop. Single invocation (no grid); everything resident in VMEM.
# -----------------------------------------------------------------------------
def bigru_layer_kernel(x_ref, wih_ref, gib_ref, whh_ref, bhn_ref, h0_ref,
                       y_ref, hn_ref, gi_ref):
    # x_ref  : (T*B, I)   time-major flattened layer input (f32)
    # wih_ref: (I, 2G)    [fwd | rev] input weights, gate axis zero-padded to G
    # gib_ref: (1, 2G)    folded input bias: b_ih + [b_hh_r, b_hh_z, 0] per dir
    # whh_ref: (2, H, G)  recurrent weights per direction (bf16, G-padded)
    # bhn_ref: (1, 2H)    n-gate recurrent bias [fwd | rev]
    # h0_ref : (B, 2H)    initial hidden [fwd | rev]
    # y_ref  : (T*B, P)   per-step hidden: cols 0:H fwd, H:2H rev, 2H:P zero
    # hn_ref : (B, 2H)    final hidden [fwd | rev]
    # gi_ref : (T*B, 2G)  VMEM scratch for the precomputed input projections
    B = h0_ref.shape[0]
    H = whh_ref.shape[1]
    G = whh_ref.shape[2]
    T = x_ref.shape[0] // B

    # ---- Off the serial path: input projection for ALL timesteps and BOTH
    # directions as one (T*B, I) x (I, 2G) MXU matmul into VMEM scratch. ----
    gi_ref[...] = (
        jnp.dot(x_ref[...], wih_ref[...], preferred_element_type=jnp.float32)
        + gib_ref[...])

    # Zero the lane-dense (128-padded) output once so pad columns 2H:P are
    # exactly 0.0 (they feed the next layer's zero-padded weight rows).
    y_ref[...] = jnp.zeros_like(y_ref)

    # ---- Hoisted loop invariants (no per-step broadcasts / weight loads) ----
    whh_f = whh_ref[0]                                     # (H, G) bf16
    whh_r = whh_ref[1]                                     # (H, G) bf16
    b_n = jnp.broadcast_to(bhn_ref[...], (B, 2 * H))       # broadcast ONCE
    bn_f = b_n[:, 0:H]
    bn_r = b_n[:, H:2 * H]

    def gru_cell(gi, gh, bn, h_prev):
        # PyTorch gate order (r, z, n); all gate math in f32.
        r = jax.nn.sigmoid(gi[:, 0:H] + gh[:, 0:H])
        z = jax.nn.sigmoid(gi[:, H:2 * H] + gh[:, H:2 * H])
        n = jnp.tanh(gi[:, 2 * H:3 * H] + r * (gh[:, 2 * H:3 * H] + bn))
        return (1.0 - z) * n + z * h_prev

    h_f = h0_ref[:, 0:H]
    h_r = h0_ref[:, H:2 * H]

    # Static Python loop: every index (t and T-1-t) is a compile-time constant
    # -> static VMEM slices. The forward and reverse recurrent dots are
    # independent and issue back-to-back, pipelining through the MXU.
    # TODO(synk): for long sequences (T >> 100) switch to
    # lax.fori_loop(..., unroll=8) plus emit_pipeline T-chunking of gi / y so
    # resident VMEM stays within v7x's 64 MiB.
    for t in range(T):
        rt = T - 1 - t
        gh_f = jnp.dot(h_f.astype(jnp.bfloat16), whh_f,
                       preferred_element_type=jnp.float32)          # (B, G)
        gh_r = jnp.dot(h_r.astype(jnp.bfloat16), whh_r,
                       preferred_element_type=jnp.float32)          # (B, G)
        gi_f = gi_ref[t * B:(t + 1) * B, 0:G]
        gi_r = gi_ref[rt * B:(rt + 1) * B, G:2 * G]
        h_f = gru_cell(gi_f, gh_f, bn_f, h_f)
        h_r = gru_cell(gi_r, gh_r, bn_r, h_r)
        y_ref[t * B:(t + 1) * B, 0:H] = h_f
        y_ref[rt * B:(rt + 1) * B, H:2 * H] = h_r

    hn_ref[:, 0:H] = h_f
    hn_ref[:, H:2 * H] = h_r


def run_bigru_layer(x2d, wih_cat, gib_cat, whh_stk, bhn_cat, h0_cat,
                    T, B, H, G, P):
    """One bidirectional GRU layer (both directions) in a single pallas_call."""
    TB = T * B
    # VMEM budget: inputs + outputs + gi scratch (+ headroom). No grid -> no
    # double-buffering to account for; clamp to v7x's 64 MiB physical VMEM.
    needed = 4 * (x2d.size + wih_cat.size + gib_cat.size + bhn_cat.size
                  + h0_cat.size + TB * P + B * 2 * H + TB * 2 * G) \
             + 2 * whh_stk.size
    vmem_limit = int(min(max(2 * needed + (4 << 20), 32 << 20), 64 << 20))

    y, hn = pl.pallas_call(
        bigru_layer_kernel,
        out_shape=(jax.ShapeDtypeStruct((TB, P), jnp.float32),
                   jax.ShapeDtypeStruct((B, 2 * H), jnp.float32)),
        in_specs=[pl.BlockSpec(memory_space=pltpu.MemorySpace.VMEM)] * 6,
        out_specs=(pl.BlockSpec(memory_space=pltpu.MemorySpace.VMEM),
                   pl.BlockSpec(memory_space=pltpu.MemorySpace.VMEM)),
        scratch_shapes=[pltpu.VMEM((TB, 2 * G), jnp.float32)],
        compiler_params=pltpu.CompilerParams(vmem_limit_bytes=vmem_limit),
    )(x2d, wih_cat, gib_cat, whh_stk, bhn_cat, h0_cat)
    return y, hn


# -----------------------------------------------------------------------------
# TrajGru forward (matches nn.GRU(in_dim, out_dim, num_layers=layer,
# batch_first=True, bidirectional=True) applied to batch_grid_traj[:, :, 0:2]).
# -----------------------------------------------------------------------------
def _pad_cols(a, g):
    pad = g - a.shape[-1]
    if pad == 0:
        return a
    return jnp.pad(a, [(0, 0)] * (a.ndim - 1) + [(0, pad)])


def _prep_layer(dirs, H, G, i_kernel):
    """Pack per-direction weights for the fused kernel."""
    wih, gib, whh, bhn = [], [], [], []
    for d in range(2):
        p = dirs[d]
        w_ih = p["w_ih"]                              # (I_orig, 3H)
        if w_ih.shape[0] < i_kernel:                  # zero rows for y pad lanes
            w_ih = jnp.pad(w_ih, ((0, i_kernel - w_ih.shape[0]), (0, 0)))
        wih.append(_pad_cols(w_ih, G))                # (i_kernel, G)
        # Fold b_ih plus the r/z parts of b_hh into the input projection.
        folded = p["b_ih"] + jnp.concatenate(
            [p["b_hh"][:, :2 * H], jnp.zeros_like(p["b_hh"][:, 2 * H:])], -1)
        gib.append(_pad_cols(folded, G))              # (1, G)
        whh.append(_pad_cols(p["w_hh"], G))           # (H, G)
        bhn.append(p["b_hh"][:, 2 * H:3 * H])         # (1, H)
    return (jnp.concatenate(wih, -1),                           # (i_kernel, 2G)
            jnp.concatenate(gib, -1),                           # (1, 2G)
            jnp.stack(whh, 0).astype(jnp.bfloat16),             # (2, H, G) bf16
            jnp.concatenate(bhn, -1))                           # (1, 2H)


def traj_gru_forward(params, batch_grid_traj, hs=None):
    x = batch_grid_traj[:, :, 0:2].astype(jnp.float32)          # (B, T, 2)
    B, T, _ = x.shape
    L = params["num_layers"]
    H = params["hidden"]
    G = _round_up(3 * H, 128)         # per-direction gate lane width
    P = _round_up(2 * H, 128)         # lane-dense per-step output width

    if hs is None:
        hs = jnp.zeros((2 * L, B, H), jnp.float32)

    layer_x = jnp.transpose(x, (1, 0, 2)).reshape(T * B, 2)     # time-major rows
    h_finals = []
    y = None
    for l in range(L):
        dirs = params["layers"][l]
        i_kernel = layer_x.shape[-1]
        wih_cat, gib_cat, whh_stk, bhn_cat = _prep_layer(dirs, H, G, i_kernel)
        h0_cat = jnp.concatenate([hs[2 * l], hs[2 * l + 1]], -1)  # (B, 2H)
        y, hn = run_bigru_layer(layer_x, wih_cat, gib_cat, whh_stk, bhn_cat,
                                h0_cat, T, B, H, G, P)
        h_finals.extend([hn[:, :H], hn[:, H:]])
        # Next layer consumes the padded y directly (its extra W_ih rows are
        # zero and y's pad lanes are exactly zero) -> no wrapper slice/concat.
        layer_x = y
        # TODO(synk): inter-layer dropout (cfg.dropout) is training-mode only
        # and stochastic; omitted (equivalent to eval / dropout=0).

    output = jnp.transpose(y.reshape(T, B, P), (1, 0, 2))[:, :, :2 * H]
    h_n = jnp.stack(h_finals, axis=0)                           # (2L, B, H)
    return output, h_n


# -----------------------------------------------------------------------------
# Deterministic parameter init (PyTorch-style uniform(-1/sqrt(H), 1/sqrt(H))).
# -----------------------------------------------------------------------------
def init_traj_gru_params(key, in_dim, hidden, num_layers):
    k = 1.0 / np.sqrt(hidden)
    layers = []
    for l in range(num_layers):
        I = in_dim if l == 0 else 2 * hidden
        dirs = []
        for d in range(2):
            kk = jax.random.fold_in(jax.random.fold_in(key, l), d)
            k0, k1, k2, k3 = jax.random.split(kk, 4)
            dirs.append({
                "w_ih": jax.random.uniform(k0, (I, 3 * hidden), jnp.float32, -k, k),
                "w_hh": jax.random.uniform(k1, (hidden, 3 * hidden), jnp.float32, -k, k),
                "b_ih": jax.random.uniform(k2, (1, 3 * hidden), jnp.float32, -k, k),
                "b_hh": jax.random.uniform(k3, (1, 3 * hidden), jnp.float32, -k, k),
            })
        layers.append(dirs)
    return {"num_layers": num_layers, "hidden": hidden, "in_dim": in_dim,
            "layers": layers}


# -----------------------------------------------------------------------------
# Pure-JAX f32 reference (same math, lax.scan) to validate the kernel.
# -----------------------------------------------------------------------------
def _gru_cell_ref(x_t, h, p):
    H = h.shape[1]
    gi = x_t @ p["w_ih"] + p["b_ih"][0]
    gh = h @ p["w_hh"] + p["b_hh"][0]
    r = jax.nn.sigmoid(gi[:, :H] + gh[:, :H])
    z = jax.nn.sigmoid(gi[:, H:2 * H] + gh[:, H:2 * H])
    n = jnp.tanh(gi[:, 2 * H:] + r * gh[:, 2 * H:])
    return (1.0 - z) * n + z * h


def traj_gru_reference(params, batch_grid_traj, hs=None):
    x = batch_grid_traj[:, :, 0:2].astype(jnp.float32)
    B, T, _ = x.shape
    L, H = params["num_layers"], params["hidden"]
    if hs is None:
        hs = jnp.zeros((2 * L, B, H), jnp.float32)
    layer_in = jnp.transpose(x, (1, 0, 2))
    h_finals = []
    for l in range(L):
        outs = []
        for d in range(2):
            p = params["layers"][l][d]
            xin = layer_in if d == 0 else layer_in[::-1]

            def step(h, x_t, p=p):
                h_new = _gru_cell_ref(x_t, h, p)
                return h_new, h_new

            hn, y = jax.lax.scan(step, hs[2 * l + d], xin)
            if d == 1:
                y = y[::-1]
            outs.append(y)
            h_finals.append(hn)
        layer_in = jnp.concatenate(outs, axis=-1)
    return jnp.transpose(layer_in, (1, 0, 2)), jnp.stack(h_finals, 0)


if __name__ == "__main__":
    # Small shapes consistent with the module: batch=2, seq=8, traj feature
    # dim=4 (only [:, :, 0:2] is used -> in_dim=2), hidden=32, layers=2.
    B, T, F = 2, 8, 4
    IN_DIM, HIDDEN, LAYERS = 2, 32, 2

    key = jax.random.PRNGKey(0)
    k_param, k_data = jax.random.split(key)
    params = init_traj_gru_params(k_param, IN_DIM, HIDDEN, LAYERS)
    batch_grid_traj = jax.random.normal(k_data, (B, T, F), jnp.float32)

    fwd = jax.jit(functools.partial(traj_gru_forward, params))
    output, h_n = fwd(batch_grid_traj)
    output = jax.block_until_ready(output)
    h_n = jax.block_until_ready(h_n)

    assert output.shape == (B, T, 2 * HIDDEN), output.shape
    assert h_n.shape == (2 * LAYERS, B, HIDDEN), h_n.shape

    ref_out, ref_hn = traj_gru_reference(params, batch_grid_traj)
    # bf16 recurrent-matmul inputs (f32 accumulation / gate math) -> slightly
    # looser tolerance vs. the pure-f32 reference.
    np.testing.assert_allclose(np.asarray(output), np.asarray(ref_out),
                               rtol=2e-2, atol=2e-2)
    np.testing.assert_allclose(np.asarray(h_n), np.asarray(ref_hn),
                               rtol=2e-2, atol=2e-2)

    print("KERNEL_OK")
</pallas_src>

<mosaic_0001>
module attributes {stable_mosaic.version = 11 : i64} {
  func.func @bigru_layer_kernel(%arg0: memref<16x2xf32, #tpu.memory_space<vmem>>, %arg1: memref<2x256xf32, #tpu.memory_space<vmem>>, %arg2: memref<1x256xf32, #tpu.memory_space<vmem>>, %arg3: memref<2x32x128xbf16, #tpu.memory_space<vmem>>, %arg4: memref<1x64xf32, #tpu.memory_space<vmem>>, %arg5: memref<2x64xf32, #tpu.memory_space<vmem>>, %arg6: memref<16x128xf32, #tpu.memory_space<vmem>>, %arg7: memref<2x64xf32, #tpu.memory_space<vmem>>, %arg8: memref<16x256xf32, #tpu.memory_space<vmem>>) attributes {dimension_semantics = [], scalar_prefetch = 0 : i64, scratch_operands = 1 : i64, tpu.core_type = #tpu.core_type<tc>} {
    %c0 = arith.constant 0 : index
    %c0_0 = arith.constant 0 : index
    %0 = vector.load %arg0[%c0, %c0_0] : memref<16x2xf32, #tpu.memory_space<vmem>>, vector<16x2xf32>
    %c0_1 = arith.constant 0 : index
    %c0_2 = arith.constant 0 : index
    %1 = vector.load %arg1[%c0_1, %c0_2] : memref<2x256xf32, #tpu.memory_space<vmem>>, vector<2x256xf32>
    %cst = arith.constant dense<0.000000e+00> : vector<16x256xf32>
    %2 = tpu.matmul %0, %1, %cst {dimension_numbers = #tpu.dot_dimension_numbers<[1], [0], [0], [1], [0, 0, 1, 1], [], []>} : vector<16x2xf32>, vector<2x256xf32>, vector<16x256xf32> -> vector<16x256xf32>
    %c0_3 = arith.constant 0 : index
    %c0_4 = arith.constant 0 : index
    %3 = vector.load %arg2[%c0_3, %c0_4] : memref<1x256xf32, #tpu.memory_space<vmem>>, vector<1x256xf32>
    %4 = vector.broadcast %3 : vector<1x256xf32> to vector<16x256xf32>
    %5 = arith.addf %2, %4 : vector<16x256xf32>
    %c0_5 = arith.constant 0 : index
    %c0_6 = arith.constant 0 : index
    %6 = vector.load %arg8[%c0_5, %c0_6] : memref<16x256xf32, #tpu.memory_space<vmem>>, vector<16x256xf32>
    tpu.vector_store %arg8[%c0_5, %c0_6], %5 {strides = array<i32>} : memref<16x256xf32, #tpu.memory_space<vmem>>, vector<16x256xf32>,
    %cst_7 = arith.constant 0.000000e+00 : f32
    %7 = vector.broadcast %cst_7 : f32 to vector<16x128xf32>
    %c0_8 = arith.constant 0 : index
    %c0_9 = arith.constant 0 : index
    %8 = vector.load %arg6[%c0_8, %c0_9] : memref<16x128xf32, #tpu.memory_space<vmem>>, vector<16x128xf32>
    tpu.vector_store %arg6[%c0_8, %c0_9], %7 {strides = array<i32>} : memref<16x128xf32, #tpu.memory_space<vmem>>, vector<16x128xf32>,
    %c0_10 = arith.constant 0 : index
    %c0_11 = arith.constant 0 : index
    %c0_12 = arith.constant 0 : index
    %9 = vector.load %arg3[%c0_10, %c0_11, %c0_12] : memref<2x32x128xbf16, #tpu.memory_space<vmem>>, vector<1x32x128xbf16>
    %10 = vector.shape_cast %9 : vector<1x32x128xbf16> to vector<32x128xbf16>
    %c1 = arith.constant 1 : index
    %c0_13 = arith.constant 0 : index
    %c0_14 = arith.constant 0 : index
    %11 = vector.load %arg3[%c1, %c0_13, %c0_14] : memref<2x32x128xbf16, #tpu.memory_space<vmem>>, vector<1x32x128xbf16>
    %12 = vector.shape_cast %11 : vector<1x32x128xbf16> to vector<32x128xbf16>
    %c0_15 = arith.constant 0 : index
    %c0_16 = arith.constant 0 : index
    %13 = vector.load %arg4[%c0_15, %c0_16] : memref<1x64xf32, #tpu.memory_space<vmem>>, vector<1x64xf32>
    %14 = vector.shape_cast %13 : vector<1x64xf32> to vector<1x64xf32>
    %15 = vector.broadcast %14 : vector<1x64xf32> to vector<2x64xf32>
    %16 = vector.extract_strided_slice %15 {offsets = [0, 0], sizes = [2, 32], strides = [1, 1]} : vector<2x64xf32> to vector<2x32xf32>
    %17 = vector.extract_strided_slice %15 {offsets = [0, 32], sizes = [2, 32], strides = [1, 1]} : vector<2x64xf32> to vector<2x32xf32>
    %c0_17 = arith.constant 0 : index
    %c0_18 = arith.constant 0 : index
    %18 = vector.load %arg5[%c0_17, %c0_18] : memref<2x64xf32, #tpu.memory_space<vmem>>, vector<2x32xf32>
    %c0_19 = arith.constant 0 : index
    %c32 = arith.constant 32 : index
    %19 = vector.load %arg5[%c0_19, %c32] : memref<2x64xf32, #tpu.memory_space<vmem>>, vector<2x32xf32>
    %20 = arith.truncf %18 : vector<2x32xf32> to vector<2x32xbf16>
    %cst_20 = arith.constant dense<0.000000e+00> : vector<2x128xf32>
    %21 = tpu.matmul %20, %10, %cst_20 {dimension_numbers = #tpu.dot_dimension_numbers<[1], [0], [0], [1], [0, 0, 1, 1], [], []>} : vector<2x32xbf16>, vector<32x128xbf16>, vector<2x128xf32> -> vector<2x128xf32>
    %22 = arith.truncf %19 : vector<2x32xf32> to vector<2x32xbf16>
    %cst_21 = arith.constant dense<0.000000e+00> : vector<2x128xf32>
    %23 = tpu.matmul %22, %12, %cst_21 {dimension_numbers = #tpu.dot_dimension_numbers<[1], [0], [0], [1], [0, 0, 1, 1], [], []>} : vector<2x32xbf16>, vector<32x128xbf16>, vector<2x128xf32> -> vector<2x128xf32>
    %c0_22 = arith.constant 0 : index
    %c0_23 = arith.constant 0 : index
    %24 = vector.load %arg8[%c0_22, %c0_23] : memref<16x256xf32, #tpu.memory_space<vmem>>, vector<2x128xf32>
    %c14 = arith.constant 14 : index
    %c128 = arith.constant 128 : index
    %25 = vector.load %arg8[%c14, %c128] : memref<16x256xf32, #tpu.memory_space<vmem>>, vector<2x128xf32>
    %26 = vector.extract_strided_slice %24 {offsets = [0, 0], sizes = [2, 32], strides = [1, 1]} : vector<2x128xf32> to vector<2x32xf32>
    %27 = vector.extract_strided_slice %21 {offsets = [0, 0], sizes = [2, 32], strides = [1, 1]} : vector<2x128xf32> to vector<2x32xf32>
    %28 = arith.addf %26, %27 : vector<2x32xf32>
    %29 = arith.negf %28 : vector<2x32xf32>
    %30 = math.exp %29 : vector<2x32xf32>
    %cst_24 = arith.constant 1.000000e+00 : f32
    %31 = vector.broadcast %cst_24 : f32 to vector<2x32xf32>
    %32 = arith.addf %31, %30 : vector<2x32xf32>
    %33 = arith.divf %31, %32 : vector<2x32xf32>
    %34 = vector.extract_strided_slice %24 {offsets = [0, 32], sizes = [2, 32], strides = [1, 1]} : vector<2x128xf32> to vector<2x32xf32>
    %35 = vector.extract_strided_slice %21 {offsets = [0, 32], sizes = [2, 32], strides = [1, 1]} : vector<2x128xf32> to vector<2x32xf32>
    %36 = arith.addf %34, %35 : vector<2x32xf32>
    %37 = arith.negf %36 : vector<2x32xf32>
    %38 = math.exp %37 : vector<2x32xf32>
    %cst_25 = arith.constant 1.000000e+00 : f32
    %39 = vector.broadcast %cst_25 : f32 to vector<2x32xf32>
    %40 = arith.addf %39, %38 : vector<2x32xf32>
    %41 = arith.divf %39, %40 : vector<2x32xf32>
    %42 = vector.extract_strided_slice %24 {offsets = [0, 64], sizes = [2, 32], strides = [1, 1]} : vector<2x128xf32> to vector<2x32xf32>
    %43 = vector.extract_strided_slice %21 {offsets = [0, 64], sizes = [2, 32], strides = [1, 1]} : vector<2x128xf32> to vector<2x32xf32>
    %44 = arith.addf %43, %16 : vector<2x32xf32>
    %45 = arith.mulf %33, %44 : vector<2x32xf32>
    %46 = arith.addf %42, %45 : vector<2x32xf32>
    %47 = math.tanh %46 : vector<2x32xf32>
    %cst_26 = arith.constant 1.000000e+00 : f32
    %48 = vector.broadcast %cst_26 : f32 to vector<2x32xf32>
    %49 = arith.subf %48, %41 : vector<2x32xf32>
    %50 = arith.mulf %49, %47 : vector<2x32xf32>
    %51 = arith.mulf %41, %18 : vector<2x32xf32>
    %52 = arith.addf %50, %51 : vector<2x32xf32>
    %53 = vector.extract_strided_slice %25 {offsets = [0, 0], sizes = [2, 32], strides = [1, 1]} : vector<2x128xf32> to vector<2x32xf32>
    %54 = vector.extract_strided_slice %23 {offsets = [0, 0], sizes = [2, 32], strides = [1, 1]} : vector<2x128xf32> to vector<2x32xf32>
    %55 = arith.addf %53, %54 : vector<2x32xf32>
    %56 = arith.negf %55 : vector<2x32xf32>
    %57 = math.exp %56 : vector<2x32xf32>
    %cst_27 = arith.constant 1.000000e+00 : f32
    %58 = vector.broadcast %cst_27 : f32 to vector<2x32xf32>
    %59 = arith.addf %58, %57 : vector<2x32xf32>
    %60 = arith.divf %58, %59 : vector<2x32xf32>
    %61 = vector.extract_strided_slice %25 {offsets = [0, 32], sizes = [2, 32], strides = [1, 1]} : vector<2x128xf32> to vector<2x32xf32>
    %62 = vector.extract_strided_slice %23 {offsets = [0, 32], sizes = [2, 32], strides = [1, 1]} : vector<2x128xf32> to vector<2x32xf32>
    %63 = arith.addf %61, %62 : vector<2x32xf32>
    %64 = arith.negf %63 : vector<2x32xf32>
    %65 = math.exp %64 : vector<2x32xf32>
    %cst_28 = arith.constant 1.000000e+00 : f32
    %66 = vector.broadcast %cst_28 : f32 to vector<2x32xf32>
    %67 = arith.addf %66, %65 : vector<2x32xf32>
    %68 = arith.divf %66, %67 : vector<2x32xf32>
    %69 = vector.extract_strided_slice %25 {offsets = [0, 64], sizes = [2, 32], strides = [1, 1]} : vector<2x128xf32> to vector<2x32xf32>
    %70 = vector.extract_strided_slice %23 {offsets = [0, 64], sizes = [2, 32], strides = [1, 1]} : vector<2x128xf32> to vector<2x32xf32>
    %71 = arith.addf %70, %17 : vector<2x32xf32>
    %72 = arith.mulf %60, %71 : vector<2x32xf32>
    %73 = arith.addf %69, %72 : vector<2x32xf32>
    %74 = math.tanh %73 : vector<2x32xf32>
    %cst_29 = arith.constant 1.000000e+00 : f32
    %75 = vector.broadcast %cst_29 : f32 to vector<2x32xf32>
    %76 = arith.subf %75, %68 : vector<2x32xf32>
    %77 = arith.mulf %76, %74 : vector<2x32xf32>
    %78 = arith.mulf %68, %19 : vector<2x32xf32>
    %79 = arith.addf %77, %78 : vector<2x32xf32>
    %c0_30 = arith.constant 0 : index
    %c0_31 = arith.constant 0 : index
    %80 = vector.load %arg6[%c0_30, %c0_31] : memref<16x128xf32, #tpu.memory_space<vmem>>, vector<2x32xf32>
    tpu.vector_store %arg6[%c0_30, %c0_31], %52 {strides = array<i32>} : memref<16x128xf32, #tpu.memory_space<vmem>>, vector<2x32xf32>,
    %c14_32 = arith.constant 14 : index
    %c32_33 = arith.constant 32 : index
    %81 = vector.load %arg6[%c14_32, %c32_33] : memref<16x128xf32, #tpu.memory_space<vmem>>, vector<2x32xf32>
    tpu.vector_store %arg6[%c14_32, %c32_33], %79 {strides = array<i32>} : memref<16x128xf32, #tpu.memory_space<vmem>>, vector<2x32xf32>,
    %82 = arith.truncf %52 : vector<2x32xf32> to vector<2x32xbf16>
    %cst_34 = arith.constant dense<0.000000e+00> : vector<2x128xf32>
    %83 = tpu.matmul %82, %10, %cst_34 {dimension_numbers = #tpu.dot_dimension_numbers<[1], [0], [0], [1], [0, 0, 1, 1], [], []>} : vector<2x32xbf16>, vector<32x128xbf16>, vector<2x128xf32> -> vector<2x128xf32>
    %84 = arith.truncf %79 : vector<2x32xf32> to vector<2x32xbf16>
    %cst_35 = arith.constant dense<0.000000e+00> : vector<2x128xf32>
    %85 = tpu.matmul %84, %12, %cst_35 {dimension_numbers = #tpu.dot_dimension_numbers<[1], [0], [0], [1], [0, 0, 1, 1], [], []>} : vector<2x32xbf16>, vector<32x128xbf16>, vector<2x128xf32> -> vector<2x128xf32>
    %c2 = arith.constant 2 : index
    %c0_36 = arith.constant 0 : index
    %86 = vector.load %arg8[%c2, %c0_36] : memref<16x256xf32, #tpu.memory_space<vmem>>, vector<2x128xf32>
    %c12 = arith.constant 12 : index
    %c128_37 = arith.constant 128 : index
    %87 = vector.load %arg8[%c12, %c128_37] : memref<16x256xf32, #tpu.memory_space<vmem>>, vector<2x128xf32>
    %88 = vector.extract_strided_slice %86 {offsets = [0, 0], sizes = [2, 32], strides = [1, 1]} : vector<2x128xf32> to vector<2x32xf32>
    %89 = vector.extract_strided_slice %83 {offsets = [0, 0], sizes = [2, 32], strides = [1, 1]} : vector<2x128xf32> to vector<2x32xf32>
    %90 = arith.addf %88, %89 : vector<2x32xf32>
    %91 = arith.negf %90 : vector<2x32xf32>
    %92 = math.exp %91 : vector<2x32xf32>
    %cst_38 = arith.constant 1.000000e+00 : f32
    %93 = vector.broadcast %cst_38 : f32 to vector<2x32xf32>
    %94 = arith.addf %93, %92 : vector<2x32xf32>
    %95 = arith.divf %93, %94 : vector<2x32xf32>
    %96 = vector.extract_strided_slice %86 {offsets = [0, 32], sizes = [2, 32], strides = [1, 1]} : vector<2x128xf32> to vector<2x32xf32>
    %97 = vector.extract_strided_slice %83 {offsets = [0, 32], sizes = [2, 32], strides = [1, 1]} : vector<2x128xf32> to vector<2x32xf32>
    %98 = arith.addf %96, %97 : vector<2x32xf32>
    %99 = arith.negf %98 : vector<2x32xf32>
    %100 = math.exp %99 : vector<2x32xf32>
    %cst_39 = arith.constant 1.000000e+00 : f32
    %101 = vector.broadcast %cst_39 : f32 to vector<2x32xf32>
    %102 = arith.addf %101, %100 : vector<2x32xf32>
    %103 = arith.divf %101, %102 : vector<2x32xf32>
    %104 = vector.extract_strided_slice %86 {offsets = [0, 64], sizes = [2, 32], strides = [1, 1]} : vector<2x128xf32> to vector<2x32xf32>
    %105 = vector.extract_strided_slice %83 {offsets = [0, 64], sizes = [2, 32], strides = [1, 1]} : vector<2x128xf32> to vector<2x32xf32>
    %106 = arith.addf %105, %16 : vector<2x32xf32>
    %107 = arith.mulf %95, %106 : vector<2x32xf32>
    %108 = arith.addf %104, %107 : vector<2x32xf32>
    %109 = math.tanh %108 : vector<2x32xf32>
    %cst_40 = arith.constant 1.000000e+00 : f32
    %110 = vector.broadcast %cst_40 : f32 to vector<2x32xf32>
    %111 = arith.subf %110, %103 : vector<2x32xf32>
    %112 = arith.mulf %111, %109 : vector<2x32xf32>
    %113 = arith.mulf %103, %52 : vector<2x32xf32>
    %114 = arith.addf %112, %113 : vector<2x32xf32>
    %115 = vector.extract_strided_slice %87 {offsets = [0, 0], sizes = [2, 32], strides = [1, 1]} : vector<2x128xf32> to vector<2x32xf32>
    %116 = vector.extract_strided_slice %85 {offsets = [0, 0], sizes = [2, 32], strides = [1, 1]} : vector<2x128xf32> to vector<2x32xf32>
    %117 = arith.addf %115, %116 : vector<2x32xf32>
    %118 = arith.negf %117 : vector<2x32xf32>
    %119 = math.exp %118 : vector<2x32xf32>
    %cst_41 = arith.constant 1.000000e+00 : f32
    %120 = vector.broadcast %cst_41 : f32 to vector<2x32xf32>
    %121 = arith.addf %120, %119 : vector<2x32xf32>
    %122 = arith.divf %120, %121 : vector<2x32xf32>
    %123 = vector.extract_strided_slice %87 {offsets = [0, 32], sizes = [2, 32], strides = [1, 1]} : vector<2x128xf32> to vector<2x32xf32>
    %124 = vector.extract_strided_slice %85 {offsets = [0, 32], sizes = [2, 32], strides = [1, 1]} : vector<2x128xf32> to vector<2x32xf32>
    %125 = arith.addf %123, %124 : vector<2x32xf32>
    %126 = arith.negf %125 : vector<2x32xf32>
    %127 = math.exp %126 : vector<2x32xf32>
    %cst_42 = arith.constant 1.000000e+00 : f32
    %128 = vector.broadcast %cst_42 : f32 to vector<2x32xf32>
    %129 = arith.addf %128, %127 : vector<2x32xf32>
    %130 = arith.divf %128, %129 : vector<2x32xf32>
    %131 = vector.extract_strided_slice %87 {offsets = [0, 64], sizes = [2, 32], strides = [1, 1]} : vector<2x128xf32> to vector<2x32xf32>
    %132 = vector.extract_strided_slice %85 {offsets = [0, 64], sizes = [2, 32], strides = [1, 1]} : vector<2x128xf32> to vector<2x32xf32>
    %133 = arith.addf %132, %17 : vector<2x32xf32>
    %134 = arith.mulf %122, %133 : vector<2x32xf32>
    %135 = arith.addf %131, %134 : vector<2x32xf32>
    %136 = math.tanh %135 : vector<2x32xf32>
    %cst_43 = arith.constant 1.000000e+00 : f32
    %137 = vector.broadcast %cst_43 : f32 to vector<2x32xf32>
    %138 = arith.subf %137, %130 : vector<2x32xf32>
    %139 = arith.mulf %138, %136 : vector<2x32xf32>
    %140 = arith.mulf %130, %79 : vector<2x32xf32>
    %141 = arith.addf %139, %140 : vector<2x32xf32>
    %c2_44 = arith.constant 2 : index
    %c0_45 = arith.constant 0 : index
    %142 = vector.load %arg6[%c2_44, %c0_45] : memref<16x128xf32, #tpu.memory_space<vmem>>, vector<2x32xf32>
    tpu.vector_store %arg6[%c2_44, %c0_45], %114 {strides = array<i32>} : memref<16x128xf32, #tpu.memory_space<vmem>>, vector<2x32xf32>,
    %c12_46 = arith.constant 12 : index
    %c32_47 = arith.constant 32 : index
    %143 = vector.load %arg6[%c12_46, %c32_47] : memref<16x128xf32, #tpu.memory_space<vmem>>, vector<2x32xf32>
    tpu.vector_store %arg6[%c12_46, %c32_47], %141 {strides = array<i32>} : memref<16x128xf32, #tpu.memory_space<vmem>>, vector<2x32xf32>,
    %144 = arith.truncf %114 : vector<2x32xf32> to vector<2x32xbf16>
    %cst_48 = arith.constant dense<0.000000e+00> : vector<2x128xf32>
    %145 = tpu.matmul %144, %10, %cst_48 {dimension_numbers = #tpu.dot_dimension_numbers<[1], [0], [0], [1], [0, 0, 1, 1], [], []>} : vector<2x32xbf16>, vector<32x128xbf16>, vector<2x128xf32> -> vector<2x128xf32>
    %146 = arith.truncf %141 : vector<2x32xf32> to vector<2x32xbf16>
    %cst_49 = arith.constant dense<0.000000e+00> : vector<2x128xf32>
    %147 = tpu.matmul %146, %12, %cst_49 {dimension_numbers = #tpu.dot_dimension_numbers<[1], [0], [0], [1], [0, 0, 1, 1], [], []>} : vector<2x32xbf16>, vector<32x128xbf16>, vector<2x128xf32> -> vector<2x128xf32>
    %c4 = arith.constant 4 : index
    %c0_50 = arith.constant 0 : index
    %148 = vector.load %arg8[%c4, %c0_50] : memref<16x256xf32, #tpu.memory_space<vmem>>, vector<2x128xf32>
    %c10 = arith.constant 10 : index
    %c128_51 = arith.constant 128 : index
    %149 = vector.load %arg8[%c10, %c128_51] : memref<16x256xf32, #tpu.memory_space<vmem>>, vector<2x128xf32>
    %150 = vector.extract_strided_slice %148 {offsets = [0, 0], sizes = [2, 32], strides = [1, 1]} : vector<2x128xf32> to vector<2x32xf32>
    %151 = vector.extract_strided_slice %145 {offsets = [0, 0], sizes = [2, 32], strides = [1, 1]} : vector<2x128xf32> to vector<2x32xf32>
    %152 = arith.addf %150, %151 : vector<2x32xf32>
    %153 = arith.negf %152 : vector<2x32xf32>
    %154 = math.exp %153 : vector<2x32xf32>
    %cst_52 = arith.constant 1.000000e+00 : f32
    %155 = vector.broadcast %cst_52 : f32 to vector<2x32xf32>
    %156 = arith.addf %155, %154 : vector<2x32xf32>
    %157 = arith.divf %155, %156 : vector<2x32xf32>
    %158 = vector.extract_strided_slice %148 {offsets = [0, 32], sizes = [2, 32], strides = [1, 1]} : vector<2x128xf32> to vector<2x32xf32>
    %159 = vector.extract_strided_slice %145 {offsets = [0, 32], sizes = [2, 32], strides = [1, 1]} : vector<2x128xf32> to vector<2x32xf32>
    %160 = arith.addf %158, %159 : vector<2x32xf32>
    %161 = arith.negf %160 : vector<2x32xf32>
    %162 = math.exp %161 : vector<2x32xf32>
    %cst_53 = arith.constant 1.000000e+00 : f32
    %163 = vector.broadcast %cst_53 : f32 to vector<2x32xf32>
    %164 = arith.addf %163, %162 : vector<2x32xf32>
    %165 = arith.divf %163, %164 : vector<2x32xf32>
    %166 = vector.extract_strided_slice %148 {offsets = [0, 64], sizes = [2, 32], strides = [1, 1]} : vector<2x128xf32> to vector<2x32xf32>
    %167 = vector.extract_strided_slice %145 {offsets = [0, 64], sizes = [2, 32], strides = [1, 1]} : vector<2x128xf32> to vector<2x32xf32>
    %168 = arith.addf %167, %16 : vector<2x32xf32>
    %169 = arith.mulf %157, %168 : vector<2x32xf32>
    %170 = arith.addf %166, %169 : vector<2x32xf32>
    %171 = math.tanh %170 : vector<2x32xf32>
    %cst_54 = arith.constant 1.000000e+00 : f32
    %172 = vector.broadcast %cst_54 : f32 to vector<2x32xf32>
    %173 = arith.subf %172, %165 : vector<2x32xf32>
    %174 = arith.mulf %173, %171 : vector<2x32xf32>
    %175 = arith.mulf %165, %114 : vector<2x32xf32>
    %176 = arith.addf %174, %175 : vector<2x32xf32>
    %177 = vector.extract_strided_slice %149 {offsets = [0, 0], sizes = [2, 32], strides = [1, 1]} : vector<2x128xf32> to vector<2x32xf32>
    %178 = vector.extract_strided_slice %147 {offsets = [0, 0], sizes = [2, 32], strides = [1, 1]} : vector<2x128xf32> to vector<2x32xf32>
    %179 = arith.addf %177, %178 : vector<2x32xf32>
    %180 = arith.negf %179 : vector<2x32xf32>
    %181 = math.exp %180 : vector<2x32xf32>
    %cst_55 = arith.constant 1.000000e+00 : f32
    %182 = vector.broadcast %cst_55 : f32 to vector<2x32xf32>
    %183 = arith.addf %182, %181 : vector<2x32xf32>
    %184 = arith.divf %182, %183 : vector<2x32xf32>
    %185 = vector.extract_strided_slice %149 {offsets = [0, 32], sizes = [2, 32], strides = [1, 1]} : vector<2x128xf32> to vector<2x32xf32>
    %186 = vector.extract_strided_slice %147 {offsets = [0, 32], sizes = [2, 32], strides = [1, 1]} : vector<2x128xf32> to vector<2x32xf32>
    %187 = arith.addf %185, %186 : vector<2x32xf32>
    %188 = arith.negf %187 : vector<2x32xf32>
    %189 = math.exp %188 : vector<2x32xf32>
    %cst_56 = arith.constant 1.000000e+00 : f32
    %190 = vector.broadcast %cst_56 : f32 to vector<2x32xf32>
    %191 = arith.addf %190, %189 : vector<2x32xf32>
    %192 = arith.divf %190, %191 : vector<2x32xf32>
    %193 = vector.extract_strided_slice %149 {offsets = [0, 64], sizes = [2, 32], strides = [1, 1]} : vector<2x128xf32> to vector<2x32xf32>
    %194 = vector.extract_strided_slice %147 {offsets = [0, 64], sizes = [2, 32], strides = [1, 1]} : vector<2x128xf32> to vector<2x32xf32>
    %195 = arith.addf %194, %17 : vector<2x32xf32>
    %196 = arith.mulf %184, %195 : vector<2x32xf32>
    %197 = arith.addf %193, %196 : vector<2x32xf32>
    %198 = math.tanh %197 : vector<2x32xf32>
    %cst_57 = arith.constant 1.000000e+00 : f32
    %199 = vector.broadcast %cst_57 : f32 to vector<2x32xf32>
    %200 = arith.subf %199, %192 : vector<2x32xf32>
    %201 = arith.mulf %200, %198 : vector<2x32xf32>
    %202 = arith.mulf %192, %141 : vector<2x32xf32>
    %203 = arith.addf %201, %202 : vector<2x32xf32>
    %c4_58 = arith.constant 4 : index
    %c0_59 = arith.constant 0 : index
    %204 = vector.load %arg6[%c4_58, %c0_59] : memref<16x128xf32, #tpu.memory_space<vmem>>, vector<2x32xf32>
    tpu.vector_store %arg6[%c4_58, %c0_59], %176 {strides = array<i32>} : memref<16x128xf32, #tpu.memory_space<vmem>>, vector<2x32xf32>,
    %c10_60 = arith.constant 10 : index
    %c32_61 = arith.constant 32 : index
    %205 = vector.load %arg6[%c10_60, %c32_61] : memref<16x128xf32, #tpu.memory_space<vmem>>, vector<2x32xf32>
    tpu.vector_store %arg6[%c10_60, %c32_61], %203 {strides = array<i32>} : memref<16x128xf32, #tpu.memory_space<vmem>>, vector<2x32xf32>,
    %206 = arith.truncf %176 : vector<2x32xf32> to vector<2x32xbf16>
    %cst_62 = arith.constant dense<0.000000e+00> : vector<2x128xf32>
    %207 = tpu.matmul %206, %10, %cst_62 {dimension_numbers = #tpu.dot_dimension_numbers<[1], [0], [0], [1], [0, 0, 1, 1], [], []>} : vector<2x32xbf16>, vector<32x128xbf16>, vector<2x128xf32> -> vector<2x128xf32>
    %208 = arith.truncf %203 : vector<2x32xf32> to vector<2x32xbf16>
    %cst_63 = arith.constant dense<0.000000e+00> : vector<2x128xf32>
    %209 = tpu.matmul %208, %12, %cst_63 {dimension_numbers = #tpu.dot_dimension_numbers<[1], [0], [0], [1], [0, 0, 1, 1], [], []>} : vector<2x32xbf16>, vector<32x128xbf16>, vector<2x128xf32> -> vector<2x128xf32>
    %c6 = arith.constant 6 : index
    %c0_64 = arith.constant 0 : index
    %210 = vector.load %arg8[%c6, %c0_64] : memref<16x256xf32, #tpu.memory_space<vmem>>, vector<2x128xf32>
    %c8 = arith.constant 8 : index
    %c128_65 = arith.constant 128 : index
    %211 = vector.load %arg8[%c8, %c128_65] : memref<16x256xf32, #tpu.memory_space<vmem>>, vector<2x128xf32>
    %212 = vector.extract_strided_slice %210 {offsets = [0, 0], sizes = [2, 32], strides = [1, 1]} : vector<2x128xf32> to vector<2x32xf32>
    %213 = vector.extract_strided_slice %207 {offsets = [0, 0], sizes = [2, 32], strides = [1, 1]} : vector<2x128xf32> to vector<2x32xf32>
    %214 = arith.addf %212, %213 : vector<2x32xf32>
    %215 = arith.negf %214 : vector<2x32xf32>
    %216 = math.exp %215 : vector<2x32xf32>
    %cst_66 = arith.constant 1.000000e+00 : f32
    %217 = vector.broadcast %cst_66 : f32 to vector<2x32xf32>
    %218 = arith.addf %217, %216 : vector<2x32xf32>
    %219 = arith.divf %217, %218 : vector<2x32xf32>
    %220 = vector.extract_strided_slice %210 {offsets = [0, 32], sizes = [2, 32], strides = [1, 1]} : vector<2x128xf32> to vector<2x32xf32>
    %221 = vector.extract_strided_slice %207 {offsets = [0, 32], sizes = [2, 32], strides = [1, 1]} : vector<2x128xf32> to vector<2x32xf32>
    %222 = arith.addf %220, %221 : vector<2x32xf32>
    %223 = arith.negf %222 : vector<2x32xf32>
    %224 = math.exp %223 : vector<2x32xf32>
    %cst_67 = arith.constant 1.000000e+00 : f32
    %225 = vector.broadcast %cst_67 : f32 to vector<2x32xf32>
    %226 = arith.addf %225, %224 : vector<2x32xf32>
    %227 = arith.divf %225, %226 : vector<2x32xf32>
    %228 = vector.extract_strided_slice %210 {offsets = [0, 64], sizes = [2, 32], strides = [1, 1]} : vector<2x128xf32> to vector<2x32xf32>
    %229 = vector.extract_strided_slice %207 {offsets = [0, 64], sizes = [2, 32], strides = [1, 1]} : vector<2x128xf32> to vector<2x32xf32>
    %230 = arith.addf %229, %16 : vector<2x32xf32>
    %231 = arith.mulf %219, %230 : vector<2x32xf32>
    %232 = arith.addf %228, %231 : vector<2x32xf32>
    %233 = math.tanh %232 : vector<2x32xf32>
    %cst_68 = arith.constant 1.000000e+00 : f32
    %234 = vector.broadcast %cst_68 : f32 to vector<2x32xf32>
    %235 = arith.subf %234, %227 : vector<2x32xf32>
    %236 = arith.mulf %235, %233 : vector<2x32xf32>
    %237 = arith.mulf %227, %176 : vector<2x32xf32>
    %238 = arith.addf %236, %237 : vector<2x32xf32>
    %239 = vector.extract_strided_slice %211 {offsets = [0, 0], sizes = [2, 32], strides = [1, 1]} : vector<2x128xf32> to vector<2x32xf32>
    %240 = vector.extract_strided_slice %209 {offsets = [0, 0], sizes = [2, 32], strides = [1, 1]} : vector<2x128xf32> to vector<2x32xf32>
    %241 = arith.addf %239, %240 : vector<2x32xf32>
    %242 = arith.negf %241 : vector<2x32xf32>
    %243 = math.exp %242 : vector<2x32xf32>
    %cst_69 = arith.constant 1.000000e+00 : f32
    %244 = vector.broadcast %cst_69 : f32 to vector<2x32xf32>
    %245 = arith.addf %244, %243 : vector<2x32xf32>
    %246 = arith.divf %244, %245 : vector<2x32xf32>
    %247 = vector.extract_strided_slice %211 {offsets = [0, 32], sizes = [2, 32], strides = [1, 1]} : vector<2x128xf32> to vector<2x32xf32>
    %248 = vector.extract_strided_slice %209 {offsets = [0, 32], sizes = [2, 32], strides = [1, 1]} : vector<2x128xf32> to vector<2x32xf32>
    %249 = arith.addf %247, %248 : vector<2x32xf32>
    %250 = arith.negf %249 : vector<2x32xf32>
    %251 = math.exp %250 : vector<2x32xf32>
    %cst_70 = arith.constant 1.000000e+00 : f32
    %252 = vector.broadcast %cst_70 : f32 to vector<2x32xf32>
    %253 = arith.addf %252, %251 : vector<2x32xf32>
    %254 = arith.divf %252, %253 : vector<2x32xf32>
    %255 = vector.extract_strided_slice %211 {offsets = [0, 64], sizes = [2, 32], strides = [1, 1]} : vector<2x128xf32> to vector<2x32xf32>
    %256 = vector.extract_strided_slice %209 {offsets = [0, 64], sizes = [2, 32], strides = [1, 1]} : vector<2x128xf32> to vector<2x32xf32>
    %257 = arith.addf %256, %17 : vector<2x32xf32>
    %258 = arith.mulf %246, %257 : vector<2x32xf32>
    %259 = arith.addf %255, %258 : vector<2x32xf32>
    %260 = math.tanh %259 : vector<2x32xf32>
    %cst_71 = arith.constant 1.000000e+00 : f32
    %261 = vector.broadcast %cst_71 : f32 to vector<2x32xf32>
    %262 = arith.subf %261, %254 : vector<2x32xf32>
    %263 = arith.mulf %262, %260 : vector<2x32xf32>
    %264 = arith.mulf %254, %203 : vector<2x32xf32>
    %265 = arith.addf %263, %264 : vector<2x32xf32>
    %c6_72 = arith.constant 6 : index
    %c0_73 = arith.constant 0 : index
    %266 = vector.load %arg6[%c6_72, %c0_73] : memref<16x128xf32, #tpu.memory_space<vmem>>, vector<2x32xf32>
    tpu.vector_store %arg6[%c6_72, %c0_73], %238 {strides = array<i32>} : memref<16x128xf32, #tpu.memory_space<vmem>>, vector<2x32xf32>,
    %c8_74 = arith.constant 8 : index
    %c32_75 = arith.constant 32 : index
    %267 = vector.load %arg6[%c8_74, %c32_75] : memref<16x128xf32, #tpu.memory_space<vmem>>, vector<2x32xf32>
    tpu.vector_store %arg6[%c8_74, %c32_75], %265 {strides = array<i32>} : memref<16x128xf32, #tpu.memory_space<vmem>>, vector<2x32xf32>,
    %268 = arith.truncf %238 : vector<2x32xf32> to vector<2x32xbf16>
    %cst_76 = arith.constant dense<0.000000e+00> : vector<2x128xf32>
    %269 = tpu.matmul %268, %10, %cst_76 {dimension_numbers = #tpu.dot_dimension_numbers<[1], [0], [0], [1], [0, 0, 1, 1], [], []>} : vector<2x32xbf16>, vector<32x128xbf16>, vector<2x128xf32> -> vector<2x128xf32>
    %270 = arith.truncf %265 : vector<2x32xf32> to vector<2x32xbf16>
    %cst_77 = arith.constant dense<0.000000e+00> : vector<2x128xf32>
    %271 = tpu.matmul %270, %12, %cst_77 {dimension_numbers = #tpu.dot_dimension_numbers<[1], [0], [0], [1], [0, 0, 1, 1], [], []>} : vector<2x32xbf16>, vector<32x128xbf16>, vector<2x128xf32> -> vector<2x128xf32>
    %c8_78 = arith.constant 8 : index
    %c0_79 = arith.constant 0 : index
    %272 = vector.load %arg8[%c8_78, %c0_79] : memref<16x256xf32, #tpu.memory_space<vmem>>, vector<2x128xf32>
    %c6_80 = arith.constant 6 : index
    %c128_81 = arith.constant 128 : index
    %273 = vector.load %arg8[%c6_80, %c128_81] : memref<16x256xf32, #tpu.memory_space<vmem>>, vector<2x128xf32>
    %274 = vector.extract_strided_slice %272 {offsets = [0, 0], sizes = [2, 32], strides = [1, 1]} : vector<2x128xf32> to vector<2x32xf32>
    %275 = vector.extract_strided_slice %269 {offsets = [0, 0], sizes = [2, 32], strides = [1, 1]} : vector<2x128xf32> to vector<2x32xf32>
    %276 = arith.addf %274, %275 : vector<2x32xf32>
    %277 = arith.negf %276 : vector<2x32xf32>
    %278 = math.exp %277 : vector<2x32xf32>
    %cst_82 = arith.constant 1.000000e+00 : f32
    %279 = vector.broadcast %cst_82 : f32 to vector<2x32xf32>
    %280 = arith.addf %279, %278 : vector<2x32xf32>
    %281 = arith.divf %279, %280 : vector<2x32xf32>
    %282 = vector.extract_strided_slice %272 {offsets = [0, 32], sizes = [2, 32], strides = [1, 1]} : vector<2x128xf32> to vector<2x32xf32>
    %283 = vector.extract_strided_slice %269 {offsets = [0, 32], sizes = [2, 32], strides = [1, 1]} : vector<2x128xf32> to vector<2x32xf32>
    %284 = arith.addf %282, %283 : vector<2x32xf32>
    %285 = arith.negf %284 : vector<2x32xf32>
    %286 = math.exp %285 : vector<2x32xf32>
    %cst_83 = arith.constant 1.000000e+00 : f32
    %287 = vector.broadcast %cst_83 : f32 to vector<2x32xf32>
    %288 = arith.addf %287, %286 : vector<2x32xf32>
    %289 = arith.divf %287, %288 : vector<2x32xf32>
    %290 = vector.extract_strided_slice %272 {offsets = [0, 64], sizes = [2, 32], strides = [1, 1]} : vector<2x128xf32> to vector<2x32xf32>
    %291 = vector.extract_strided_slice %269 {offsets = [0, 64], sizes = [2, 32], strides = [1, 1]} : vector<2x128xf32> to vector<2x32xf32>
    %292 = arith.addf %291, %16 : vector<2x32xf32>
    %293 = arith.mulf %281, %292 : vector<2x32xf32>
    %294 = arith.addf %290, %293 : vector<2x32xf32>
    %295 = math.tanh %294 : vector<2x32xf32>
    %cst_84 = arith.constant 1.000000e+00 : f32
    %296 = vector.broadcast %cst_84 : f32 to vector<2x32xf32>
    %297 = arith.subf %296, %289 : vector<2x32xf32>
    %298 = arith.mulf %297, %295 : vector<2x32xf32>
    %299 = arith.mulf %289, %238 : vector<2x32xf32>
    %300 = arith.addf %298, %299 : vector<2x32xf32>
    %301 = vector.extract_strided_slice %273 {offsets = [0, 0], sizes = [2, 32], strides = [1, 1]} : vector<2x128xf32> to vector<2x32xf32>
    %302 = vector.extract_strided_slice %271 {offsets = [0, 0], sizes = [2, 32], strides = [1, 1]} : vector<2x128xf32> to vector<2x32xf32>
    %303 = arith.addf %301, %302 : vector<2x32xf32>
    %304 = arith.negf %303 : vector<2x32xf32>
    %305 = math.exp %304 : vector<2x32xf32>
    %cst_85 = arith.constant 1.000000e+00 : f32
    %306 = vector.broadcast %cst_85 : f32 to vector<2x32xf32>
    %307 = arith.addf %306, %305 : vector<2x32xf32>
    %308 = arith.divf %306, %307 : vector<2x32xf32>
    %309 = vector.extract_strided_slice %273 {offsets = [0, 32], sizes = [2, 32], strides = [1, 1]} : vector<2x128xf32> to vector<2x32xf32>
    %310 = vector.extract_strided_slice %271 {offsets = [0, 32], sizes = [2, 32], strides = [1, 1]} : vector<2x128xf32> to vector<2x32xf32>
    %311 = arith.addf %309, %310 : vector<2x32xf32>
    %312 = arith.negf %311 : vector<2x32xf32>
    %313 = math.exp %312 : vector<2x32xf32>
    %cst_86 = arith.constant 1.000000e+00 : f32
    %314 = vector.broadcast %cst_86 : f32 to vector<2x32xf32>
    %315 = arith.addf %314, %313 : vector<2x32xf32>
    %316 = arith.divf %314, %315 : vector<2x32xf32>
    %317 = vector.extract_strided_slice %273 {offsets = [0, 64], sizes = [2, 32], strides = [1, 1]} : vector<2x128xf32> to vector<2x32xf32>
    %318 = vector.extract_strided_slice %271 {offsets = [0, 64], sizes = [2, 32], strides = [1, 1]} : vector<2x128xf32> to vector<2x32xf32>
    %319 = arith.addf %318, %17 : vector<2x32xf32>
    %320 = arith.mulf %308, %319 : vector<2x32xf32>
    %321 = arith.addf %317, %320 : vector<2x32xf32>
    %322 = math.tanh %321 : vector<2x32xf32>
    %cst_87 = arith.constant 1.000000e+00 : f32
    %323 = vector.broadcast %cst_87 : f32 to vector<2x32xf32>
    %324 = arith.subf %323, %316 : vector<2x32xf32>
    %325 = arith.mulf %324, %322 : vector<2x32xf32>
    %326 = arith.mulf %316, %265 : vector<2x32xf32>
    %327 = arith.addf %325, %326 : vector<2x32xf32>
    %c8_88 = arith.constant 8 : index
    %c0_89 = arith.constant 0 : index
    %328 = vector.load %arg6[%c8_88, %c0_89] : memref<16x128xf32, #tpu.memory_space<vmem>>, vector<2x32xf32>
    tpu.vector_store %arg6[%c8_88, %c0_89], %300 {strides = array<i32>} : memref<16x128xf32, #tpu.memory_space<vmem>>, vector<2x32xf32>,
    %c6_90 = arith.constant 6 : index
    %c32_91 = arith.constant 32 : index
    %329 = vector.load %arg6[%c6_90, %c32_91] : memref<16x128xf32, #tpu.memory_space<vmem>>, vector<2x32xf32>
    tpu.vector_store %arg6[%c6_90, %c32_91], %327 {strides = array<i32>} : memref<16x128xf32, #tpu.memory_space<vmem>>, vector<2x32xf32>,
    %330 = arith.truncf %300 : vector<2x32xf32> to vector<2x32xbf16>
    %cst_92 = arith.constant dense<0.000000e+00> : vector<2x128xf32>
    %331 = tpu.matmul %330, %10, %cst_92 {dimension_numbers = #tpu.dot_dimension_numbers<[1], [0], [0], [1], [0, 0, 1, 1], [], []>} : vector<2x32xbf16>, vector<32x128xbf16>, vector<2x128xf32> -> vector<2x128xf32>
    %332 = arith.truncf %327 : vector<2x32xf32> to vector<2x32xbf16>
    %cst_93 = arith.constant dense<0.000000e+00> : vector<2x128xf32>
    %333 = tpu.matmul %332, %12, %cst_93 {dimension_numbers = #tpu.dot_dimension_numbers<[1], [0], [0], [1], [0, 0, 1, 1], [], []>} : vector<2x32xbf16>, vector<32x128xbf16>, vector<2x128xf32> -> vector<2x128xf32>
    %c10_94 = arith.constant 10 : index
    %c0_95 = arith.constant 0 : index
    %334 = vector.load %arg8[%c10_94, %c0_95] : memref<16x256xf32, #tpu.memory_space<vmem>>, vector<2x128xf32>
    %c4_96 = arith.constant 4 : index
    %c128_97 = arith.constant 128 : index
    %335 = vector.load %arg8[%c4_96, %c128_97] : memref<16x256xf32, #tpu.memory_space<vmem>>, vector<2x128xf32>
    %336 = vector.extract_strided_slice %334 {offsets = [0, 0], sizes = [2, 32], strides = [1, 1]} : vector<2x128xf32> to vector<2x32xf32>
    %337 = vector.extract_strided_slice %331 {offsets = [0, 0], sizes = [2, 32], strides = [1, 1]} : vector<2x128xf32> to vector<2x32xf32>
    %338 = arith.addf %336, %337 : vector<2x32xf32>
    %339 = arith.negf %338 : vector<2x32xf32>
    %340 = math.exp %339 : vector<2x32xf32>
    %cst_98 = arith.constant 1.000000e+00 : f32
    %341 = vector.broadcast %cst_98 : f32 to vector<2x32xf32>
    %342 = arith.addf %341, %340 : vector<2x32xf32>
    %343 = arith.divf %341, %342 : vector<2x32xf32>
    %344 = vector.extract_strided_slice %334 {offsets = [0, 32], sizes = [2, 32], strides = [1, 1]} : vector<2x128xf32> to vector<2x32xf32>
    %345 = vector.extract_strided_slice %331 {offsets = [0, 32], sizes = [2, 32], strides = [1, 1]} : vector<2x128xf32> to vector<2x32xf32>
    %346 = arith.addf %344, %345 : vector<2x32xf32>
    %347 = arith.negf %346 : vector<2x32xf32>
    %348 = math.exp %347 : vector<2x32xf32>
    %cst_99 = arith.constant 1.000000e+00 : f32
    %349 = vector.broadcast %cst_99 : f32 to vector<2x32xf32>
    %350 = arith.addf %349, %348 : vector<2x32xf32>
    %351 = arith.divf %349, %350 : vector<2x32xf32>
    %352 = vector.extract_strided_slice %334 {offsets = [0, 64], sizes = [2, 32], strides = [1, 1]} : vector<2x128xf32> to vector<2x32xf32>
    %353 = vector.extract_strided_slice %331 {offsets = [0, 64], sizes = [2, 32], strides = [1, 1]} : vector<2x128xf32> to vector<2x32xf32>
    %354 = arith.addf %353, %16 : vector<2x32xf32>
    %355 = arith.mulf %343, %354 : vector<2x32xf32>
    %356 = arith.addf %352, %355 : vector<2x32xf32>
    %357 = math.tanh %356 : vector<2x32xf32>
    %cst_100 = arith.constant 1.000000e+00 : f32
    %358 = vector.broadcast %cst_100 : f32 to vector<2x32xf32>
    %359 = arith.subf %358, %351 : vector<2x32xf32>
    %360 = arith.mulf %359, %357 : vector<2x32xf32>
    %361 = arith.mulf %351, %300 : vector<2x32xf32>
    %362 = arith.addf %360, %361 : vector<2x32xf32>
    %363 = vector.extract_strided_slice %335 {offsets = [0, 0], sizes = [2, 32], strides = [1, 1]} : vector<2x128xf32> to vector<2x32xf32>
    %364 = vector.extract_strided_slice %333 {offsets = [0, 0], sizes = [2, 32], strides = [1, 1]} : vector<2x128xf32> to vector<2x32xf32>
    %365 = arith.addf %363, %364 : vector<2x32xf32>
    %366 = arith.negf %365 : vector<2x32xf32>
    %367 = math.exp %366 : vector<2x32xf32>
    %cst_101 = arith.constant 1.000000e+00 : f32
    %368 = vector.broadcast %cst_101 : f32 to vector<2x32xf32>
    %369 = arith.addf %368, %367 : vector<2x32xf32>
    %370 = arith.divf %368, %369 : vector<2x32xf32>
    %371 = vector.extract_strided_slice %335 {offsets = [0, 32], sizes = [2, 32], strides = [1, 1]} : vector<2x128xf32> to vector<2x32xf32>
    %372 = vector.extract_strided_slice %333 {offsets = [0, 32], sizes = [2, 32], strides = [1, 1]} : vector<2x128xf32> to vector<2x32xf32>
    %373 = arith.addf %371, %372 : vector<2x32xf32>
    %374 = arith.negf %373 : vector<2x32xf32>
    %375 = math.exp %374 : vector<2x32xf32>
    %cst_102 = arith.constant 1.000000e+00 : f32
    %376 = vector.broadcast %cst_102 : f32 to vector<2x32xf32>
    %377 = arith.addf %376, %375 : vector<2x32xf32>
    %378 = arith.divf %376, %377 : vector<2x32xf32>
    %379 = vector.extract_strided_slice %335 {offsets = [0, 64], sizes = [2, 32], strides = [1, 1]} : vector<2x128xf32> to vector<2x32xf32>
    %380 = vector.extract_strided_slice %333 {offsets = [0, 64], sizes = [2, 32], strides = [1, 1]} : vector<2x128xf32> to vector<2x32xf32>
    %381 = arith.addf %380, %17 : vector<2x32xf32>
    %382 = arith.mulf %370, %381 : vector<2x32xf32>
    %383 = arith.addf %379, %382 : vector<2x32xf32>
    %384 = math.tanh %383 : vector<2x32xf32>
    %cst_103 = arith.constant 1.000000e+00 : f32
    %385 = vector.broadcast %cst_103 : f32 to vector<2x32xf32>
    %386 = arith.subf %385, %378 : vector<2x32xf32>
    %387 = arith.mulf %386, %384 : vector<2x32xf32>
    %388 = arith.mulf %378, %327 : vector<2x32xf32>
    %389 = arith.addf %387, %388 : vector<2x32xf32>
    %c10_104 = arith.constant 10 : index
    %c0_105 = arith.constant 0 : index
    %390 = vector.load %arg6[%c10_104, %c0_105] : memref<16x128xf32, #tpu.memory_space<vmem>>, vector<2x32xf32>
    tpu.vector_store %arg6[%c10_104, %c0_105], %362 {strides = array<i32>} : memref<16x128xf32, #tpu.memory_space<vmem>>, vector<2x32xf32>,
    %c4_106 = arith.constant 4 : index
    %c32_107 = arith.constant 32 : index
    %391 = vector.load %arg6[%c4_106, %c32_107] : memref<16x128xf32, #tpu.memory_space<vmem>>, vector<2x32xf32>
    tpu.vector_store %arg6[%c4_106, %c32_107], %389 {strides = array<i32>} : memref<16x128xf32, #tpu.memory_space<vmem>>, vector<2x32xf32>,
    %392 = arith.truncf %362 : vector<2x32xf32> to vector<2x32xbf16>
    %cst_108 = arith.constant dense<0.000000e+00> : vector<2x128xf32>
    %393 = tpu.matmul %392, %10, %cst_108 {dimension_numbers = #tpu.dot_dimension_numbers<[1], [0], [0], [1], [0, 0, 1, 1], [], []>} : vector<2x32xbf16>, vector<32x128xbf16>, vector<2x128xf32> -> vector<2x128xf32>
    %394 = arith.truncf %389 : vector<2x32xf32> to vector<2x32xbf16>
    %cst_109 = arith.constant dense<0.000000e+00> : vector<2x128xf32>
    %395 = tpu.matmul %394, %12, %cst_109 {dimension_numbers = #tpu.dot_dimension_numbers<[1], [0], [0], [1], [0, 0, 1, 1], [], []>} : vector<2x32xbf16>, vector<32x128xbf16>, vector<2x128xf32> -> vector<2x128xf32>
    %c12_110 = arith.constant 12 : index
    %c0_111 = arith.constant 0 : index
    %396 = vector.load %arg8[%c12_110, %c0_111] : memref<16x256xf32, #tpu.memory_space<vmem>>, vector<2x128xf32>
    %c2_112 = arith.constant 2 : index
    %c128_113 = arith.constant 128 : index
    %397 = vector.load %arg8[%c2_112, %c128_113] : memref<16x256xf32, #tpu.memory_space<vmem>>, vector<2x128xf32>
    %398 = vector.extract_strided_slice %396 {offsets = [0, 0], sizes = [2, 32], strides = [1, 1]} : vector<2x128xf32> to vector<2x32xf32>
    %399 = vector.extract_strided_slice %393 {offsets = [0, 0], sizes = [2, 32], strides = [1, 1]} : vector<2x128xf32> to vector<2x32xf32>
    %400 = arith.addf %398, %399 : vector<2x32xf32>
    %401 = arith.negf %400 : vector<2x32xf32>
    %402 = math.exp %401 : vector<2x32xf32>
    %cst_114 = arith.constant 1.000000e+00 : f32
    %403 = vector.broadcast %cst_114 : f32 to vector<2x32xf32>
    %404 = arith.addf %403, %402 : vector<2x32xf32>
    %405 = arith.divf %403, %404 : vector<2x32xf32>
    %406 = vector.extract_strided_slice %396 {offsets = [0, 32], sizes = [2, 32], strides = [1, 1]} : vector<2x128xf32> to vector<2x32xf32>
    %407 = vector.extract_strided_slice %393 {offsets = [0, 32], sizes = [2, 32], strides = [1, 1]} : vector<2x128xf32> to vector<2x32xf32>
    %408 = arith.addf %406, %407 : vector<2x32xf32>
    %409 = arith.negf %408 : vector<2x32xf32>
    %410 = math.exp %409 : vector<2x32xf32>
    %cst_115 = arith.constant 1.000000e+00 : f32
    %411 = vector.broadcast %cst_115 : f32 to vector<2x32xf32>
    %412 = arith.addf %411, %410 : vector<2x32xf32>
    %413 = arith.divf %411, %412 : vector<2x32xf32>
    %414 = vector.extract_strided_slice %396 {offsets = [0, 64], sizes = [2, 32], strides = [1, 1]} : vector<2x128xf32> to vector<2x32xf32>
    %415 = vector.extract_strided_slice %393 {offsets = [0, 64], sizes = [2, 32], strides = [1, 1]} : vector<2x128xf32> to vector<2x32xf32>
    %416 = arith.addf %415, %16 : vector<2x32xf32>
    %417 = arith.mulf %405, %416 : vector<2x32xf32>
    %418 = arith.addf %414, %417 : vector<2x32xf32>
    %419 = math.tanh %418 : vector<2x32xf32>
    %cst_116 = arith.constant 1.000000e+00 : f32
    %420 = vector.broadcast %cst_116 : f32 to vector<2x32xf32>
    %421 = arith.subf %420, %413 : vector<2x32xf32>
    %422 = arith.mulf %421, %419 : vector<2x32xf32>
    %423 = arith.mulf %413, %362 : vector<2x32xf32>
    %424 = arith.addf %422, %423 : vector<2x32xf32>
    %425 = vector.extract_strided_slice %397 {offsets = [0, 0], sizes = [2, 32], strides = [1, 1]} : vector<2x128xf32> to vector<2x32xf32>
    %426 = vector.extract_strided_slice %395 {offsets = [0, 0], sizes = [2, 32], strides = [1, 1]} : vector<2x128xf32> to vector<2x32xf32>
    %427 = arith.addf %425, %426 : vector<2x32xf32>
    %428 = arith.negf %427 : vector<2x32xf32>
    %429 = math.exp %428 : vector<2x32xf32>
    %cst_117 = arith.constant 1.000000e+00 : f32
    %430 = vector.broadcast %cst_117 : f32 to vector<2x32xf32>
    %431 = arith.addf %430, %429 : vector<2x32xf32>
    %432 = arith.divf %430, %431 : vector<2x32xf32>
    %433 = vector.extract_strided_slice %397 {offsets = [0, 32], sizes = [2, 32], strides = [1, 1]} : vector<2x128xf32> to vector<2x32xf32>
    %434 = vector.extract_strided_slice %395 {offsets = [0, 32], sizes = [2, 32], strides = [1, 1]} : vector<2x128xf32> to vector<2x32xf32>
    %435 = arith.addf %433, %434 : vector<2x32xf32>
    %436 = arith.negf %435 : vector<2x32xf32>
    %437 = math.exp %436 : vector<2x32xf32>
    %cst_118 = arith.constant 1.000000e+00 : f32
    %438 = vector.broadcast %cst_118 : f32 to vector<2x32xf32>
    %439 = arith.addf %438, %437 : vector<2x32xf32>
    %440 = arith.divf %438, %439 : vector<2x32xf32>
    %441 = vector.extract_strided_slice %397 {offsets = [0, 64], sizes = [2, 32], strides = [1, 1]} : vector<2x128xf32> to vector<2x32xf32>
    %442 = vector.extract_strided_slice %395 {offsets = [0, 64], sizes = [2, 32], strides = [1, 1]} : vector<2x128xf32> to vector<2x32xf32>
    %443 = arith.addf %442, %17 : vector<2x32xf32>
    %444 = arith.mulf %432, %443 : vector<2x32xf32>
    %445 = arith.addf %441, %444 : vector<2x32xf32>
    %446 = math.tanh %445 : vector<2x32xf32>
    %cst_119 = arith.constant 1.000000e+00 : f32
    %447 = vector.broadcast %cst_119 : f32 to vector<2x32xf32>
    %448 = arith.subf %447, %440 : vector<2x32xf32>
    %449 = arith.mulf %448, %446 : vector<2x32xf32>
    %450 = arith.mulf %440, %389 : vector<2x32xf32>
    %451 = arith.addf %449, %450 : vector<2x32xf32>
    %c12_120 = arith.constant 12 : index
    %c0_121 = arith.constant 0 : index
    %452 = vector.load %arg6[%c12_120, %c0_121] : memref<16x128xf32, #tpu.memory_space<vmem>>, vector<2x32xf32>
    tpu.vector_store %arg6[%c12_120, %c0_121], %424 {strides = array<i32>} : memref<16x128xf32, #tpu.memory_space<vmem>>, vector<2x32xf32>,
    %c2_122 = arith.constant 2 : index
    %c32_123 = arith.constant 32 : index
    %453 = vector.load %arg6[%c2_122, %c32_123] : memref<16x128xf32, #tpu.memory_space<vmem>>, vector<2x32xf32>
    tpu.vector_store %arg6[%c2_122, %c32_123], %451 {strides = array<i32>} : memref<16x128xf32, #tpu.memory_space<vmem>>, vector<2x32xf32>,
    %454 = arith.truncf %424 : vector<2x32xf32> to vector<2x32xbf16>
    %cst_124 = arith.constant dense<0.000000e+00> : vector<2x128xf32>
    %455 = tpu.matmul %454, %10, %cst_124 {dimension_numbers = #tpu.dot_dimension_numbers<[1], [0], [0], [1], [0, 0, 1, 1], [], []>} : vector<2x32xbf16>, vector<32x128xbf16>, vector<2x128xf32> -> vector<2x128xf32>
    %456 = arith.truncf %451 : vector<2x32xf32> to vector<2x32xbf16>
    %cst_125 = arith.constant dense<0.000000e+00> : vector<2x128xf32>
    %457 = tpu.matmul %456, %12, %cst_125 {dimension_numbers = #tpu.dot_dimension_numbers<[1], [0], [0], [1], [0, 0, 1, 1], [], []>} : vector<2x32xbf16>, vector<32x128xbf16>, vector<2x128xf32> -> vector<2x128xf32>
    %c14_126 = arith.constant 14 : index
    %c0_127 = arith.constant 0 : index
    %458 = vector.load %arg8[%c14_126, %c0_127] : memref<16x256xf32, #tpu.memory_space<vmem>>, vector<2x128xf32>
    %c0_128 = arith.constant 0 : index
    %c128_129 = arith.constant 128 : index
    %459 = vector.load %arg8[%c0_128, %c128_129] : memref<16x256xf32, #tpu.memory_space<vmem>>, vector<2x128xf32>
    %460 = vector.extract_strided_slice %458 {offsets = [0, 0], sizes = [2, 32], strides = [1, 1]} : vector<2x128xf32> to vector<2x32xf32>
    %461 = vector.extract_strided_slice %455 {offsets = [0, 0], sizes = [2, 32], strides = [1, 1]} : vector<2x128xf32> to vector<2x32xf32>
    %462 = arith.addf %460, %461 : vector<2x32xf32>
    %463 = arith.negf %462 : vector<2x32xf32>
    %464 = math.exp %463 : vector<2x32xf32>
    %cst_130 = arith.constant 1.000000e+00 : f32
    %465 = vector.broadcast %cst_130 : f32 to vector<2x32xf32>
    %466 = arith.addf %465, %464 : vector<2x32xf32>
    %467 = arith.divf %465, %466 : vector<2x32xf32>
    %468 = vector.extract_strided_slice %458 {offsets = [0, 32], sizes = [2, 32], strides = [1, 1]} : vector<2x128xf32> to vector<2x32xf32>
    %469 = vector.extract_strided_slice %455 {offsets = [0, 32], sizes = [2, 32], strides = [1, 1]} : vector<2x128xf32> to vector<2x32xf32>
    %470 = arith.addf %468, %469 : vector<2x32xf32>
    %471 = arith.negf %470 : vector<2x32xf32>
    %472 = math.exp %471 : vector<2x32xf32>
    %cst_131 = arith.constant 1.000000e+00 : f32
    %473 = vector.broadcast %cst_131 : f32 to vector<2x32xf32>
    %474 = arith.addf %473, %472 : vector<2x32xf32>
    %475 = arith.divf %473, %474 : vector<2x32xf32>
    %476 = vector.extract_strided_slice %458 {offsets = [0, 64], sizes = [2, 32], strides = [1, 1]} : vector<2x128xf32> to vector<2x32xf32>
    %477 = vector.extract_strided_slice %455 {offsets = [0, 64], sizes = [2, 32], strides = [1, 1]} : vector<2x128xf32> to vector<2x32xf32>
    %478 = arith.addf %477, %16 : vector<2x32xf32>
    %479 = arith.mulf %467, %478 : vector<2x32xf32>
    %480 = arith.addf %476, %479 : vector<2x32xf32>
    %481 = math.tanh %480 : vector<2x32xf32>
    %cst_132 = arith.constant 1.000000e+00 : f32
    %482 = vector.broadcast %cst_132 : f32 to vector<2x32xf32>
    %483 = arith.subf %482, %475 : vector<2x32xf32>
    %484 = arith.mulf %483, %481 : vector<2x32xf32>
    %485 = arith.mulf %475, %424 : vector<2x32xf32>
    %486 = arith.addf %484, %485 : vector<2x32xf32>
    %487 = vector.extract_strided_slice %459 {offsets = [0, 0], sizes = [2, 32], strides = [1, 1]} : vector<2x128xf32> to vector<2x32xf32>
    %488 = vector.extract_strided_slice %457 {offsets = [0, 0], sizes = [2, 32], strides = [1, 1]} : vector<2x128xf32> to vector<2x32xf32>
    %489 = arith.addf %487, %488 : vector<2x32xf32>
    %490 = arith.negf %489 : vector<2x32xf32>
    %491 = math.exp %490 : vector<2x32xf32>
    %cst_133 = arith.constant 1.000000e+00 : f32
    %492 = vector.broadcast %cst_133 : f32 to vector<2x32xf32>
    %493 = arith.addf %492, %491 : vector<2x32xf32>
    %494 = arith.divf %492, %493 : vector<2x32xf32>
    %495 = vector.extract_strided_slice %459 {offsets = [0, 32], sizes = [2, 32], strides = [1, 1]} : vector<2x128xf32> to vector<2x32xf32>
    %496 = vector.extract_strided_slice %457 {offsets = [0, 32], sizes = [2, 32], strides = [1, 1]} : vector<2x128xf32> to vector<2x32xf32>
    %497 = arith.addf %495, %496 : vector<2x32xf32>
    %498 = arith.negf %497 : vector<2x32xf32>
    %499 = math.exp %498 : vector<2x32xf32>
    %cst_134 = arith.constant 1.000000e+00 : f32
    %500 = vector.broadcast %cst_134 : f32 to vector<2x32xf32>
    %501 = arith.addf %500, %499 : vector<2x32xf32>
    %502 = arith.divf %500, %501 : vector<2x32xf32>
    %503 = vector.extract_strided_slice %459 {offsets = [0, 64], sizes = [2, 32], strides = [1, 1]} : vector<2x128xf32> to vector<2x32xf32>
    %504 = vector.extract_strided_slice %457 {offsets = [0, 64], sizes = [2, 32], strides = [1, 1]} : vector<2x128xf32> to vector<2x32xf32>
    %505 = arith.addf %504, %17 : vector<2x32xf32>
    %506 = arith.mulf %494, %505 : vector<2x32xf32>
    %507 = arith.addf %503, %506 : vector<2x32xf32>
    %508 = math.tanh %507 : vector<2x32xf32>
    %cst_135 = arith.constant 1.000000e+00 : f32
    %509 = vector.broadcast %cst_135 : f32 to vector<2x32xf32>
    %510 = arith.subf %509, %502 : vector<2x32xf32>
    %511 = arith.mulf %510, %508 : vector<2x32xf32>
    %512 = arith.mulf %502, %451 : vector<2x32xf32>
    %513 = arith.addf %511, %512 : vector<2x32xf32>
    %c14_136 = arith.constant 14 : index
    %c0_137 = arith.constant 0 : index
    %514 = vector.load %arg6[%c14_136, %c0_137] : memref<16x128xf32, #tpu.memory_space<vmem>>, vector<2x32xf32>
    tpu.vector_store %arg6[%c14_136, %c0_137], %486 {strides = array<i32>} : memref<16x128xf32, #tpu.memory_space<vmem>>, vector<2x32xf32>,
    %c0_138 = arith.constant 0 : index
    %c32_139 = arith.constant 32 : index
    %515 = vector.load %arg6[%c0_138, %c32_139] : memref<16x128xf32, #tpu.memory_space<vmem>>, vector<2x32xf32>
    tpu.vector_store %arg6[%c0_138, %c32_139], %513 {strides = array<i32>} : memref<16x128xf32, #tpu.memory_space<vmem>>, vector<2x32xf32>,
    %c0_140 = arith.constant 0 : index
    %c0_141 = arith.constant 0 : index
    %516 = vector.load %arg7[%c0_140, %c0_141] : memref<2x64xf32, #tpu.memory_space<vmem>>, vector<2x32xf32>
    tpu.vector_store %arg7[%c0_140, %c0_141], %486 {strides = array<i32>} : memref<2x64xf32, #tpu.memory_space<vmem>>, vector<2x32xf32>,
    %c0_142 = arith.constant 0 : index
    %c32_143 = arith.constant 32 : index
    %517 = vector.load %arg7[%c0_142, %c32_143] : memref<2x64xf32, #tpu.memory_space<vmem>>, vector<2x32xf32>
    tpu.vector_store %arg7[%c0_142, %c32_143], %513 {strides = array<i32>} : memref<2x64xf32, #tpu.memory_space<vmem>>, vector<2x32xf32>,
    return
  }
}

module attributes {stable_mosaic.version = 11 : i64} {
  func.func @bigru_layer_kernel(%arg0: memref<16x128xf32, #tpu.memory_space<vmem>>, %arg1: memref<128x256xf32, #tpu.memory_space<vmem>>, %arg2: memref<1x256xf32, #tpu.memory_space<vmem>>, %arg3: memref<2x32x128xbf16, #tpu.memory_space<vmem>>, %arg4: memref<1x64xf32, #tpu.memory_space<vmem>>, %arg5: memref<2x64xf32, #tpu.memory_space<vmem>>, %arg6: memref<16x128xf32, #tpu.memory_space<vmem>>, %arg7: memref<2x64xf32, #tpu.memory_space<vmem>>, %arg8: memref<16x256xf32, #tpu.memory_space<vmem>>) attributes {dimension_semantics = [], scalar_prefetch = 0 : i64, scratch_operands = 1 : i64, tpu.core_type = #tpu.core_type<tc>} {
    %c0 = arith.constant 0 : index
    %c0_0 = arith.constant 0 : index
    %0 = vector.load %arg0[%c0, %c0_0] : memref<16x128xf32, #tpu.memory_space<vmem>>, vector<16x128xf32>
    %c0_1 = arith.constant 0 : index
    %c0_2 = arith.constant 0 : index
    %1 = vector.load %arg1[%c0_1, %c0_2] : memref<128x256xf32, #tpu.memory_space<vmem>>, vector<128x256xf32>
    %cst = arith.constant dense<0.000000e+00> : vector<16x256xf32>
    %2 = tpu.matmul %0, %1, %cst {dimension_numbers = #tpu.dot_dimension_numbers<[1], [0], [0], [1], [0, 0, 1, 1], [], []>} : vector<16x128xf32>, vector<128x256xf32>, vector<16x256xf32> -> vector<16x256xf32>
    %c0_3 = arith.constant 0 : index
    %c0_4 = arith.constant 0 : index
    %3 = vector.load %arg2[%c0_3, %c0_4] : memref<1x256xf32, #tpu.memory_space<vmem>>, vector<1x256xf32>
    %4 = vector.broadcast %3 : vector<1x256xf32> to vector<16x256xf32>
    %5 = arith.addf %2, %4 : vector<16x256xf32>
    %c0_5 = arith.constant 0 : index
    %c0_6 = arith.constant 0 : index
    %6 = vector.load %arg8[%c0_5, %c0_6] : memref<16x256xf32, #tpu.memory_space<vmem>>, vector<16x256xf32>
    tpu.vector_store %arg8[%c0_5, %c0_6], %5 {strides = array<i32>} : memref<16x256xf32, #tpu.memory_space<vmem>>, vector<16x256xf32>,
    %cst_7 = arith.constant 0.000000e+00 : f32
    %7 = vector.broadcast %cst_7 : f32 to vector<16x128xf32>
    %c0_8 = arith.constant 0 : index
    %c0_9 = arith.constant 0 : index
    %8 = vector.load %arg6[%c0_8, %c0_9] : memref<16x128xf32, #tpu.memory_space<vmem>>, vector<16x128xf32>
    tpu.vector_store %arg6[%c0_8, %c0_9], %7 {strides = array<i32>} : memref<16x128xf32, #tpu.memory_space<vmem>>, vector<16x128xf32>,
    %c0_10 = arith.constant 0 : index
    %c0_11 = arith.constant 0 : index
    %c0_12 = arith.constant 0 : index
    %9 = vector.load %arg3[%c0_10, %c0_11, %c0_12] : memref<2x32x128xbf16, #tpu.memory_space<vmem>>, vector<1x32x128xbf16>
    %10 = vector.shape_cast %9 : vector<1x32x128xbf16> to vector<32x128xbf16>
    %c1 = arith.constant 1 : index
    %c0_13 = arith.constant 0 : index
    %c0_14 = arith.constant 0 : index
    %11 = vector.load %arg3[%c1, %c0_13, %c0_14] : memref<2x32x128xbf16, #tpu.memory_space<vmem>>, vector<1x32x128xbf16>
    %12 = vector.shape_cast %11 : vector<1x32x128xbf16> to vector<32x128xbf16>
    %c0_15 = arith.constant 0 : index
    %c0_16 = arith.constant 0 : index
    %13 = vector.load %arg4[%c0_15, %c0_16] : memref<1x64xf32, #tpu.memory_space<vmem>>, vector<1x64xf32>
    %14 = vector.shape_cast %13 : vector<1x64xf32> to vector<1x64xf32>
    %15 = vector.broadcast %14 : vector<1x64xf32> to vector<2x64xf32>
    %16 = vector.extract_strided_slice %15 {offsets = [0, 0], sizes = [2, 32], strides = [1, 1]} : vector<2x64xf32> to vector<2x32xf32>
    %17 = vector.extract_strided_slice %15 {offsets = [0, 32], sizes = [2, 32], strides = [1, 1]} : vector<2x64xf32> to vector<2x32xf32>
    %c0_17 = arith.constant 0 : index
    %c0_18 = arith.constant 0 : index
    %18 = vector.load %arg5[%c0_17, %c0_18] : memref<2x64xf32, #tpu.memory_space<vmem>>, vector<2x32xf32>
    %c0_19 = arith.constant 0 : index
    %c32 = arith.constant 32 : index
    %19 = vector.load %arg5[%c0_19, %c32] : memref<2x64xf32, #tpu.memory_space<vmem>>, vector<2x32xf32>
    %20 = arith.truncf %18 : vector<2x32xf32> to vector<2x32xbf16>
    %cst_20 = arith.constant dense<0.000000e+00> : vector<2x128xf32>
    %21 = tpu.matmul %20, %10, %cst_20 {dimension_numbers = #tpu.dot_dimension_numbers<[1], [0], [0], [1], [0, 0, 1, 1], [], []>} : vector<2x32xbf16>, vector<32x128xbf16>, vector<2x128xf32> -> vector<2x128xf32>
    %22 = arith.truncf %19 : vector<2x32xf32> to vector<2x32xbf16>
    %cst_21 = arith.constant dense<0.000000e+00> : vector<2x128xf32>
    %23 = tpu.matmul %22, %12, %cst_21 {dimension_numbers = #tpu.dot_dimension_numbers<[1], [0], [0], [1], [0, 0, 1, 1], [], []>} : vector<2x32xbf16>, vector<32x128xbf16>, vector<2x128xf32> -> vector<2x128xf32>
    %c0_22 = arith.constant 0 : index
    %c0_23 = arith.constant 0 : index
    %24 = vector.load %arg8[%c0_22, %c0_23] : memref<16x256xf32, #tpu.memory_space<vmem>>, vector<2x128xf32>
    %c14 = arith.constant 14 : index
    %c128 = arith.constant 128 : index
    %25 = vector.load %arg8[%c14, %c128] : memref<16x256xf32, #tpu.memory_space<vmem>>, vector<2x128xf32>
    %26 = vector.extract_strided_slice %24 {offsets = [0, 0], sizes = [2, 32], strides = [1, 1]} : vector<2x128xf32> to vector<2x32xf32>
    %27 = vector.extract_strided_slice %21 {offsets = [0, 0], sizes = [2, 32], strides = [1, 1]} : vector<2x128xf32> to vector<2x32xf32>
    %28 = arith.addf %26, %27 : vector<2x32xf32>
    %29 = arith.negf %28 : vector<2x32xf32>
    %30 = math.exp %29 : vector<2x32xf32>
    %cst_24 = arith.constant 1.000000e+00 : f32
    %31 = vector.broadcast %cst_24 : f32 to vector<2x32xf32>
    %32 = arith.addf %31, %30 : vector<2x32xf32>
    %33 = arith.divf %31, %32 : vector<2x32xf32>
    %34 = vector.extract_strided_slice %24 {offsets = [0, 32], sizes = [2, 32], strides = [1, 1]} : vector<2x128xf32> to vector<2x32xf32>
    %35 = vector.extract_strided_slice %21 {offsets = [0, 32], sizes = [2, 32], strides = [1, 1]} : vector<2x128xf32> to vector<2x32xf32>
    %36 = arith.addf %34, %35 : vector<2x32xf32>
    %37 = arith.negf %36 : vector<2x32xf32>
    %38 = math.exp %37 : vector<2x32xf32>
    %cst_25 = arith.constant 1.000000e+00 : f32
    %39 = vector.broadcast %cst_25 : f32 to vector<2x32xf32>
    %40 = arith.addf %39, %38 : vector<2x32xf32>
    %41 = arith.divf %39, %40 : vector<2x32xf32>
    %42 = vector.extract_strided_slice %24 {offsets = [0, 64], sizes = [2, 32], strides = [1, 1]} : vector<2x128xf32> to vector<2x32xf32>
    %43 = vector.extract_strided_slice %21 {offsets = [0, 64], sizes = [2, 32], strides = [1, 1]} : vector<2x128xf32> to vector<2x32xf32>
    %44 = arith.addf %43, %16 : vector<2x32xf32>
    %45 = arith.mulf %33, %44 : vector<2x32xf32>
    %46 = arith.addf %42, %45 : vector<2x32xf32>
    %47 = math.tanh %46 : vector<2x32xf32>
    %cst_26 = arith.constant 1.000000e+00 : f32
    %48 = vector.broadcast %cst_26 : f32 to vector<2x32xf32>
    %49 = arith.subf %48, %41 : vector<2x32xf32>
    %50 = arith.mulf %49, %47 : vector<2x32xf32>
    %51 = arith.mulf %41, %18 : vector<2x32xf32>
    %52 = arith.addf %50, %51 : vector<2x32xf32>
    %53 = vector.extract_strided_slice %25 {offsets = [0, 0], sizes = [2, 32], strides = [1, 1]} : vector<2x128xf32> to vector<2x32xf32>
    %54 = vector.extract_strided_slice %23 {offsets = [0, 0], sizes = [2, 32], strides = [1, 1]} : vector<2x128xf32> to vector<2x32xf32>
    %55 = arith.addf %53, %54 : vector<2x32xf32>
    %56 = arith.negf %55 : vector<2x32xf32>
    %57 = math.exp %56 : vector<2x32xf32>
    %cst_27 = arith.constant 1.000000e+00 : f32
    %58 = vector.broadcast %cst_27 : f32 to vector<2x32xf32>
    %59 = arith.addf %58, %57 : vector<2x32xf32>
    %60 = arith.divf %58, %59 : vector<2x32xf32>
    %61 = vector.extract_strided_slice %25 {offsets = [0, 32], sizes = [2, 32], strides = [1, 1]} : vector<2x128xf32> to vector<2x32xf32>
    %62 = vector.extract_strided_slice %23 {offsets = [0, 32], sizes = [2, 32], strides = [1, 1]} : vector<2x128xf32> to vector<2x32xf32>
    %63 = arith.addf %61, %62 : vector<2x32xf32>
    %64 = arith.negf %63 : vector<2x32xf32>
    %65 = math.exp %64 : vector<2x32xf32>
    %cst_28 = arith.constant 1.000000e+00 : f32
    %66 = vector.broadcast %cst_28 : f32 to vector<2x32xf32>
    %67 = arith.addf %66, %65 : vector<2x32xf32>
    %68 = arith.divf %66, %67 : vector<2x32xf32>
    %69 = vector.extract_strided_slice %25 {offsets = [0, 64], sizes = [2, 32], strides = [1, 1]} : vector<2x128xf32> to vector<2x32xf32>
    %70 = vector.extract_strided_slice %23 {offsets = [0, 64], sizes = [2, 32], strides = [1, 1]} : vector<2x128xf32> to vector<2x32xf32>
    %71 = arith.addf %70, %17 : vector<2x32xf32>
    %72 = arith.mulf %60, %71 : vector<2x32xf32>
    %73 = arith.addf %69, %72 : vector<2x32xf32>
    %74 = math.tanh %73 : vector<2x32xf32>
    %cst_29 = arith.constant 1.000000e+00 : f32
    %75 = vector.broadcast %cst_29 : f32 to vector<2x32xf32>
    %76 = arith.subf %75, %68 : vector<2x32xf32>
    %77 = arith.mulf %76, %74 : vector<2x32xf32>
    %78 = arith.mulf %68, %19 : vector<2x32xf32>
    %79 = arith.addf %77, %78 : vector<2x32xf32>
    %c0_30 = arith.constant 0 : index
    %c0_31 = arith.constant 0 : index
    %80 = vector.load %arg6[%c0_30, %c0_31] : memref<16x128xf32, #tpu.memory_space<vmem>>, vector<2x32xf32>
    tpu.vector_store %arg6[%c0_30, %c0_31], %52 {strides = array<i32>} : memref<16x128xf32, #tpu.memory_space<vmem>>, vector<2x32xf32>,
    %c14_32 = arith.constant 14 : index
    %c32_33 = arith.constant 32 : index
    %81 = vector.load %arg6[%c14_32, %c32_33] : memref<16x128xf32, #tpu.memory_space<vmem>>, vector<2x32xf32>
    tpu.vector_store %arg6[%c14_32, %c32_33], %79 {strides = array<i32>} : memref<16x128xf32, #tpu.memory_space<vmem>>, vector<2x32xf32>,
    %82 = arith.truncf %52 : vector<2x32xf32> to vector<2x32xbf16>
    %cst_34 = arith.constant dense<0.000000e+00> : vector<2x128xf32>
    %83 = tpu.matmul %82, %10, %cst_34 {dimension_numbers = #tpu.dot_dimension_numbers<[1], [0], [0], [1], [0, 0, 1, 1], [], []>} : vector<2x32xbf16>, vector<32x128xbf16>, vector<2x128xf32> -> vector<2x128xf32>
    %84 = arith.truncf %79 : vector<2x32xf32> to vector<2x32xbf16>
    %cst_35 = arith.constant dense<0.000000e+00> : vector<2x128xf32>
    %85 = tpu.matmul %84, %12, %cst_35 {dimension_numbers = #tpu.dot_dimension_numbers<[1], [0], [0], [1], [0, 0, 1, 1], [], []>} : vector<2x32xbf16>, vector<32x128xbf16>, vector<2x128xf32> -> vector<2x128xf32>
    %c2 = arith.constant 2 : index
    %c0_36 = arith.constant 0 : index
    %86 = vector.load %arg8[%c2, %c0_36] : memref<16x256xf32, #tpu.memory_space<vmem>>, vector<2x128xf32>
    %c12 = arith.constant 12 : index
    %c128_37 = arith.constant 128 : index
    %87 = vector.load %arg8[%c12, %c128_37] : memref<16x256xf32, #tpu.memory_space<vmem>>, vector<2x128xf32>
    %88 = vector.extract_strided_slice %86 {offsets = [0, 0], sizes = [2, 32], strides = [1, 1]} : vector<2x128xf32> to vector<2x32xf32>
    %89 = vector.extract_strided_slice %83 {offsets = [0, 0], sizes = [2, 32], strides = [1, 1]} : vector<2x128xf32> to vector<2x32xf32>
    %90 = arith.addf %88, %89 : vector<2x32xf32>
    %91 = arith.negf %90 : vector<2x32xf32>
    %92 = math.exp %91 : vector<2x32xf32>
    %cst_38 = arith.constant 1.000000e+00 : f32
    %93 = vector.broadcast %cst_38 : f32 to vector<2x32xf32>
    %94 = arith.addf %93, %92 : vector<2x32xf32>
    %95 = arith.divf %93, %94 : vector<2x32xf32>
    %96 = vector.extract_strided_slice %86 {offsets = [0, 32], sizes = [2, 32], strides = [1, 1]} : vector<2x128xf32> to vector<2x32xf32>
    %97 = vector.extract_strided_slice %83 {offsets = [0, 32], sizes = [2, 32], strides = [1, 1]} : vector<2x128xf32> to vector<2x32xf32>
    %98 = arith.addf %96, %97 : vector<2x32xf32>
    %99 = arith.negf %98 : vector<2x32xf32>
    %100 = math.exp %99 : vector<2x32xf32>
    %cst_39 = arith.constant 1.000000e+00 : f32
    %101 = vector.broadcast %cst_39 : f32 to vector<2x32xf32>
    %102 = arith.addf %101, %100 : vector<2x32xf32>
    %103 = arith.divf %101, %102 : vector<2x32xf32>
    %104 = vector.extract_strided_slice %86 {offsets = [0, 64], sizes = [2, 32], strides = [1, 1]} : vector<2x128xf32> to vector<2x32xf32>
    %105 = vector.extract_strided_slice %83 {offsets = [0, 64], sizes = [2, 32], strides = [1, 1]} : vector<2x128xf32> to vector<2x32xf32>
    %106 = arith.addf %105, %16 : vector<2x32xf32>
    %107 = arith.mulf %95, %106 : vector<2x32xf32>
    %108 = arith.addf %104, %107 : vector<2x32xf32>
    %109 = math.tanh %108 : vector<2x32xf32>
    %cst_40 = arith.constant 1.000000e+00 : f32
    %110 = vector.broadcast %cst_40 : f32 to vector<2x32xf32>
    %111 = arith.subf %110, %103 : vector<2x32xf32>
    %112 = arith.mulf %111, %109 : vector<2x32xf32>
    %113 = arith.mulf %103, %52 : vector<2x32xf32>
    %114 = arith.addf %112, %113 : vector<2x32xf32>
    %115 = vector.extract_strided_slice %87 {offsets = [0, 0], sizes = [2, 32], strides = [1, 1]} : vector<2x128xf32> to vector<2x32xf32>
    %116 = vector.extract_strided_slice %85 {offsets = [0, 0], sizes = [2, 32], strides = [1, 1]} : vector<2x128xf32> to vector<2x32xf32>
    %117 = arith.addf %115, %116 : vector<2x32xf32>
    %118 = arith.negf %117 : vector<2x32xf32>
    %119 = math.exp %118 : vector<2x32xf32>
    %cst_41 = arith.constant 1.000000e+00 : f32
    %120 = vector.broadcast %cst_41 : f32 to vector<2x32xf32>
    %121 = arith.addf %120, %119 : vector<2x32xf32>
    %122 = arith.divf %120, %121 : vector<2x32xf32>
    %123 = vector.extract_strided_slice %87 {offsets = [0, 32], sizes = [2, 32], strides = [1, 1]} : vector<2x128xf32> to vector<2x32xf32>
    %124 = vector.extract_strided_slice %85 {offsets = [0, 32], sizes = [2, 32], strides = [1, 1]} : vector<2x128xf32> to vector<2x32xf32>
    %125 = arith.addf %123, %124 : vector<2x32xf32>
    %126 = arith.negf %125 : vector<2x32xf32>
    %127 = math.exp %126 : vector<2x32xf32>
    %cst_42 = arith.constant 1.000000e+00 : f32
    %128 = vector.broadcast %cst_42 : f32 to vector<2x32xf32>
    %129 = arith.addf %128, %127 : vector<2x32xf32>
    %130 = arith.divf %128, %129 : vector<2x32xf32>
    %131 = vector.extract_strided_slice %87 {offsets = [0, 64], sizes = [2, 32], strides = [1, 1]} : vector<2x128xf32> to vector<2x32xf32>
    %132 = vector.extract_strided_slice %85 {offsets = [0, 64], sizes = [2, 32], strides = [1, 1]} : vector<2x128xf32> to vector<2x32xf32>
    %133 = arith.addf %132, %17 : vector<2x32xf32>
    %134 = arith.mulf %122, %133 : vector<2x32xf32>
    %135 = arith.addf %131, %134 : vector<2x32xf32>
    %136 = math.tanh %135 : vector<2x32xf32>
    %cst_43 = arith.constant 1.000000e+00 : f32
    %137 = vector.broadcast %cst_43 : f32 to vector<2x32xf32>
    %138 = arith.subf %137, %130 : vector<2x32xf32>
    %139 = arith.mulf %138, %136 : vector<2x32xf32>
    %140 = arith.mulf %130, %79 : vector<2x32xf32>
    %141 = arith.addf %139, %140 : vector<2x32xf32>
    %c2_44 = arith.constant 2 : index
    %c0_45 = arith.constant 0 : index
    %142 = vector.load %arg6[%c2_44, %c0_45] : memref<16x128xf32, #tpu.memory_space<vmem>>, vector<2x32xf32>
    tpu.vector_store %arg6[%c2_44, %c0_45], %114 {strides = array<i32>} : memref<16x128xf32, #tpu.memory_space<vmem>>, vector<2x32xf32>,
    %c12_46 = arith.constant 12 : index
    %c32_47 = arith.constant 32 : index
    %143 = vector.load %arg6[%c12_46, %c32_47] : memref<16x128xf32, #tpu.memory_space<vmem>>, vector<2x32xf32>
    tpu.vector_store %arg6[%c12_46, %c32_47], %141 {strides = array<i32>} : memref<16x128xf32, #tpu.memory_space<vmem>>, vector<2x32xf32>,
    %144 = arith.truncf %114 : vector<2x32xf32> to vector<2x32xbf16>
    %cst_48 = arith.constant dense<0.000000e+00> : vector<2x128xf32>
    %145 = tpu.matmul %144, %10, %cst_48 {dimension_numbers = #tpu.dot_dimension_numbers<[1], [0], [0], [1], [0, 0, 1, 1], [], []>} : vector<2x32xbf16>, vector<32x128xbf16>, vector<2x128xf32> -> vector<2x128xf32>
    %146 = arith.truncf %141 : vector<2x32xf32> to vector<2x32xbf16>
    %cst_49 = arith.constant dense<0.000000e+00> : vector<2x128xf32>
    %147 = tpu.matmul %146, %12, %cst_49 {dimension_numbers = #tpu.dot_dimension_numbers<[1], [0], [0], [1], [0, 0, 1, 1], [], []>} : vector<2x32xbf16>, vector<32x128xbf16>, vector<2x128xf32> -> vector<2x128xf32>
    %c4 = arith.constant 4 : index
    %c0_50 = arith.constant 0 : index
    %148 = vector.load %arg8[%c4, %c0_50] : memref<16x256xf32, #tpu.memory_space<vmem>>, vector<2x128xf32>
    %c10 = arith.constant 10 : index
    %c128_51 = arith.constant 128 : index
    %149 = vector.load %arg8[%c10, %c128_51] : memref<16x256xf32, #tpu.memory_space<vmem>>, vector<2x128xf32>
    %150 = vector.extract_strided_slice %148 {offsets = [0, 0], sizes = [2, 32], strides = [1, 1]} : vector<2x128xf32> to vector<2x32xf32>
    %151 = vector.extract_strided_slice %145 {offsets = [0, 0], sizes = [2, 32], strides = [1, 1]} : vector<2x128xf32> to vector<2x32xf32>
    %152 = arith.addf %150, %151 : vector<2x32xf32>
    %153 = arith.negf %152 : vector<2x32xf32>
    %154 = math.exp %153 : vector<2x32xf32>
    %cst_52 = arith.constant 1.000000e+00 : f32
    %155 = vector.broadcast %cst_52 : f32 to vector<2x32xf32>
    %156 = arith.addf %155, %154 : vector<2x32xf32>
    %157 = arith.divf %155, %156 : vector<2x32xf32>
    %158 = vector.extract_strided_slice %148 {offsets = [0, 32], sizes = [2, 32], strides = [1, 1]} : vector<2x128xf32> to vector<2x32xf32>
    %159 = vector.extract_strided_slice %145 {offsets = [0, 32], sizes = [2, 32], strides = [1, 1]} : vector<2x128xf32> to vector<2x32xf32>
    %160 = arith.addf %158, %159 : vector<2x32xf32>
    %161 = arith.negf %160 : vector<2x32xf32>
    %162 = math.exp %161 : vector<2x32xf32>
    %cst_53 = arith.constant 1.000000e+00 : f32
    %163 = vector.broadcast %cst_53 : f32 to vector<2x32xf32>
    %164 = arith.addf %163, %162 : vector<2x32xf32>
    %165 = arith.divf %163, %164 : vector<2x32xf32>
    %166 = vector.extract_strided_slice %148 {offsets = [0, 64], sizes = [2, 32], strides = [1, 1]} : vector<2x128xf32> to vector<2x32xf32>
    %167 = vector.extract_strided_slice %145 {offsets = [0, 64], sizes = [2, 32], strides = [1, 1]} : vector<2x128xf32> to vector<2x32xf32>
    %168 = arith.addf %167, %16 : vector<2x32xf32>
    %169 = arith.mulf %157, %168 : vector<2x32xf32>
    %170 = arith.addf %166, %169 : vector<2x32xf32>
    %171 = math.tanh %170 : vector<2x32xf32>
    %cst_54 = arith.constant 1.000000e+00 : f32
    %172 = vector.broadcast %cst_54 : f32 to vector<2x32xf32>
    %173 = arith.subf %172, %165 : vector<2x32xf32>
    %174 = arith.mulf %173, %171 : vector<2x32xf32>
    %175 = arith.mulf %165, %114 : vector<2x32xf32>
    %176 = arith.addf %174, %175 : vector<2x32xf32>
    %177 = vector.extract_strided_slice %149 {offsets = [0, 0], sizes = [2, 32], strides = [1, 1]} : vector<2x128xf32> to vector<2x32xf32>
    %178 = vector.extract_strided_slice %147 {offsets = [0, 0], sizes = [2, 32], strides = [1, 1]} : vector<2x128xf32> to vector<2x32xf32>
    %179 = arith.addf %177, %178 : vector<2x32xf32>
    %180 = arith.negf %179 : vector<2x32xf32>
    %181 = math.exp %180 : vector<2x32xf32>
    %cst_55 = arith.constant 1.000000e+00 : f32
    %182 = vector.broadcast %cst_55 : f32 to vector<2x32xf32>
    %183 = arith.addf %182, %181 : vector<2x32xf32>
    %184 = arith.divf %182, %183 : vector<2x32xf32>
    %185 = vector.extract_strided_slice %149 {offsets = [0, 32], sizes = [2, 32], strides = [1, 1]} : vector<2x128xf32> to vector<2x32xf32>
    %186 = vector.extract_strided_slice %147 {offsets = [0, 32], sizes = [2, 32], strides = [1, 1]} : vector<2x128xf32> to vector<2x32xf32>
    %187 = arith.addf %185, %186 : vector<2x32xf32>
    %188 = arith.negf %187 : vector<2x32xf32>
    %189 = math.exp %188 : vector<2x32xf32>
    %cst_56 = arith.constant 1.000000e+00 : f32
    %190 = vector.broadcast %cst_56 : f32 to vector<2x32xf32>
    %191 = arith.addf %190, %189 : vector<2x32xf32>
    %192 = arith.divf %190, %191 : vector<2x32xf32>
    %193 = vector.extract_strided_slice %149 {offsets = [0, 64], sizes = [2, 32], strides = [1, 1]} : vector<2x128xf32> to vector<2x32xf32>
    %194 = vector.extract_strided_slice %147 {offsets = [0, 64], sizes = [2, 32], strides = [1, 1]} : vector<2x128xf32> to vector<2x32xf32>
    %195 = arith.addf %194, %17 : vector<2x32xf32>
    %196 = arith.mulf %184, %195 : vector<2x32xf32>
    %197 = arith.addf %193, %196 : vector<2x32xf32>
    %198 = math.tanh %197 : vector<2x32xf32>
    %cst_57 = arith.constant 1.000000e+00 : f32
    %199 = vector.broadcast %cst_57 : f32 to vector<2x32xf32>
    %200 = arith.subf %199, %192 : vector<2x32xf32>
    %201 = arith.mulf %200, %198 : vector<2x32xf32>
    %202 = arith.mulf %192, %141 : vector<2x32xf32>
    %203 = arith.addf %201, %202 : vector<2x32xf32>
    %c4_58 = arith.constant 4 : index
    %c0_59 = arith.constant 0 : index
    %204 = vector.load %arg6[%c4_58, %c0_59] : memref<16x128xf32, #tpu.memory_space<vmem>>, vector<2x32xf32>
    tpu.vector_store %arg6[%c4_58, %c0_59], %176 {strides = array<i32>} : memref<16x128xf32, #tpu.memory_space<vmem>>, vector<2x32xf32>,
    %c10_60 = arith.constant 10 : index
    %c32_61 = arith.constant 32 : index
    %205 = vector.load %arg6[%c10_60, %c32_61] : memref<16x128xf32, #tpu.memory_space<vmem>>, vector<2x32xf32>
    tpu.vector_store %arg6[%c10_60, %c32_61], %203 {strides = array<i32>} : memref<16x128xf32, #tpu.memory_space<vmem>>, vector<2x32xf32>,
    %206 = arith.truncf %176 : vector<2x32xf32> to vector<2x32xbf16>
    %cst_62 = arith.constant dense<0.000000e+00> : vector<2x128xf32>
    %207 = tpu.matmul %206, %10, %cst_62 {dimension_numbers = #tpu.dot_dimension_numbers<[1], [0], [0], [1], [0, 0, 1, 1], [], []>} : vector<2x32xbf16>, vector<32x128xbf16>, vector<2x128xf32> -> vector<2x128xf32>
    %208 = arith.truncf %203 : vector<2x32xf32> to vector<2x32xbf16>
    %cst_63 = arith.constant dense<0.000000e+00> : vector<2x128xf32>
    %209 = tpu.matmul %208, %12, %cst_63 {dimension_numbers = #tpu.dot_dimension_numbers<[1], [0], [0], [1], [0, 0, 1, 1], [], []>} : vector<2x32xbf16>, vector<32x128xbf16>, vector<2x128xf32> -> vector<2x128xf32>
    %c6 = arith.constant 6 : index
    %c0_64 = arith.constant 0 : index
    %210 = vector.load %arg8[%c6, %c0_64] : memref<16x256xf32, #tpu.memory_space<vmem>>, vector<2x128xf32>
    %c8 = arith.constant 8 : index
    %c128_65 = arith.constant 128 : index
    %211 = vector.load %arg8[%c8, %c128_65] : memref<16x256xf32, #tpu.memory_space<vmem>>, vector<2x128xf32>
    %212 = vector.extract_strided_slice %210 {offsets = [0, 0], sizes = [2, 32], strides = [1, 1]} : vector<2x128xf32> to vector<2x32xf32>
    %213 = vector.extract_strided_slice %207 {offsets = [0, 0], sizes = [2, 32], strides = [1, 1]} : vector<2x128xf32> to vector<2x32xf32>
    %214 = arith.addf %212, %213 : vector<2x32xf32>
    %215 = arith.negf %214 : vector<2x32xf32>
    %216 = math.exp %215 : vector<2x32xf32>
    %cst_66 = arith.constant 1.000000e+00 : f32
    %217 = vector.broadcast %cst_66 : f32 to vector<2x32xf32>
    %218 = arith.addf %217, %216 : vector<2x32xf32>
    %219 = arith.divf %217, %218 : vector<2x32xf32>
    %220 = vector.extract_strided_slice %210 {offsets = [0, 32], sizes = [2, 32], strides = [1, 1]} : vector<2x128xf32> to vector<2x32xf32>
    %221 = vector.extract_strided_slice %207 {offsets = [0, 32], sizes = [2, 32], strides = [1, 1]} : vector<2x128xf32> to vector<2x32xf32>
    %222 = arith.addf %220, %221 : vector<2x32xf32>
    %223 = arith.negf %222 : vector<2x32xf32>
    %224 = math.exp %223 : vector<2x32xf32>
    %cst_67 = arith.constant 1.000000e+00 : f32
    %225 = vector.broadcast %cst_67 : f32 to vector<2x32xf32>
    %226 = arith.addf %225, %224 : vector<2x32xf32>
    %227 = arith.divf %225, %226 : vector<2x32xf32>
    %228 = vector.extract_strided_slice %210 {offsets = [0, 64], sizes = [2, 32], strides = [1, 1]} : vector<2x128xf32> to vector<2x32xf32>
    %229 = vector.extract_strided_slice %207 {offsets = [0, 64], sizes = [2, 32], strides = [1, 1]} : vector<2x128xf32> to vector<2x32xf32>
    %230 = arith.addf %229, %16 : vector<2x32xf32>
    %231 = arith.mulf %219, %230 : vector<2x32xf32>
    %232 = arith.addf %228, %231 : vector<2x32xf32>
    %233 = math.tanh %232 : vector<2x32xf32>
    %cst_68 = arith.constant 1.000000e+00 : f32
    %234 = vector.broadcast %cst_68 : f32 to vector<2x32xf32>
    %235 = arith.subf %234, %227 : vector<2x32xf32>
    %236 = arith.mulf %235, %233 : vector<2x32xf32>
    %237 = arith.mulf %227, %176 : vector<2x32xf32>
    %238 = arith.addf %236, %237 : vector<2x32xf32>
    %239 = vector.extract_strided_slice %211 {offsets = [0, 0], sizes = [2, 32], strides = [1, 1]} : vector<2x128xf32> to vector<2x32xf32>
    %240 = vector.extract_strided_slice %209 {offsets = [0, 0], sizes = [2, 32], strides = [1, 1]} : vector<2x128xf32> to vector<2x32xf32>
    %241 = arith.addf %239, %240 : vector<2x32xf32>
    %242 = arith.negf %241 : vector<2x32xf32>
    %243 = math.exp %242 : vector<2x32xf32>
    %cst_69 = arith.constant 1.000000e+00 : f32
    %244 = vector.broadcast %cst_69 : f32 to vector<2x32xf32>
    %245 = arith.addf %244, %243 : vector<2x32xf32>
    %246 = arith.divf %244, %245 : vector<2x32xf32>
    %247 = vector.extract_strided_slice %211 {offsets = [0, 32], sizes = [2, 32], strides = [1, 1]} : vector<2x128xf32> to vector<2x32xf32>
    %248 = vector.extract_strided_slice %209 {offsets = [0, 32], sizes = [2, 32], strides = [1, 1]} : vector<2x128xf32> to vector<2x32xf32>
    %249 = arith.addf %247, %248 : vector<2x32xf32>
    %250 = arith.negf %249 : vector<2x32xf32>
    %251 = math.exp %250 : vector<2x32xf32>
    %cst_70 = arith.constant 1.000000e+00 : f32
    %252 = vector.broadcast %cst_70 : f32 to vector<2x32xf32>
    %253 = arith.addf %252, %251 : vector<2x32xf32>
    %254 = arith.divf %252, %253 : vector<2x32xf32>
    %255 = vector.extract_strided_slice %211 {offsets = [0, 64], sizes = [2, 32], strides = [1, 1]} : vector<2x128xf32> to vector<2x32xf32>
    %256 = vector.extract_strided_slice %209 {offsets = [0, 64], sizes = [2, 32], strides = [1, 1]} : vector<2x128xf32> to vector<2x32xf32>
    %257 = arith.addf %256, %17 : vector<2x32xf32>
    %258 = arith.mulf %246, %257 : vector<2x32xf32>
    %259 = arith.addf %255, %258 : vector<2x32xf32>
    %260 = math.tanh %259 : vector<2x32xf32>
    %cst_71 = arith.constant 1.000000e+00 : f32
    %261 = vector.broadcast %cst_71 : f32 to vector<2x32xf32>
    %262 = arith.subf %261, %254 : vector<2x32xf32>
    %263 = arith.mulf %262, %260 : vector<2x32xf32>
    %264 = arith.mulf %254, %203 : vector<2x32xf32>
    %265 = arith.addf %263, %264 : vector<2x32xf32>
    %c6_72 = arith.constant 6 : index
    %c0_73 = arith.constant 0 : index
    %266 = vector.load %arg6[%c6_72, %c0_73] : memref<16x128xf32, #tpu.memory_space<vmem>>, vector<2x32xf32>
    tpu.vector_store %arg6[%c6_72, %c0_73], %238 {strides = array<i32>} : memref<16x128xf32, #tpu.memory_space<vmem>>, vector<2x32xf32>,
    %c8_74 = arith.constant 8 : index
    %c32_75 = arith.constant 32 : index
    %267 = vector.load %arg6[%c8_74, %c32_75] : memref<16x128xf32, #tpu.memory_space<vmem>>, vector<2x32xf32>
    tpu.vector_store %arg6[%c8_74, %c32_75], %265 {strides = array<i32>} : memref<16x128xf32, #tpu.memory_space<vmem>>, vector<2x32xf32>,
    %268 = arith.truncf %238 : vector<2x32xf32> to vector<2x32xbf16>
    %cst_76 = arith.constant dense<0.000000e+00> : vector<2x128xf32>
    %269 = tpu.matmul %268, %10, %cst_76 {dimension_numbers = #tpu.dot_dimension_numbers<[1], [0], [0], [1], [0, 0, 1, 1], [], []>} : vector<2x32xbf16>, vector<32x128xbf16>, vector<2x128xf32> -> vector<2x128xf32>
    %270 = arith.truncf %265 : vector<2x32xf32> to vector<2x32xbf16>
    %cst_77 = arith.constant dense<0.000000e+00> : vector<2x128xf32>
    %271 = tpu.matmul %270, %12, %cst_77 {dimension_numbers = #tpu.dot_dimension_numbers<[1], [0], [0], [1], [0, 0, 1, 1], [], []>} : vector<2x32xbf16>, vector<32x128xbf16>, vector<2x128xf32> -> vector<2x128xf32>
    %c8_78 = arith.constant 8 : index
    %c0_79 = arith.constant 0 : index
    %272 = vector.load %arg8[%c8_78, %c0_79] : memref<16x256xf32, #tpu.memory_space<vmem>>, vector<2x128xf32>
    %c6_80 = arith.constant 6 : index
    %c128_81 = arith.constant 128 : index
    %273 = vector.load %arg8[%c6_80, %c128_81] : memref<16x256xf32, #tpu.memory_space<vmem>>, vector<2x128xf32>
    %274 = vector.extract_strided_slice %272 {offsets = [0, 0], sizes = [2, 32], strides = [1, 1]} : vector<2x128xf32> to vector<2x32xf32>
    %275 = vector.extract_strided_slice %269 {offsets = [0, 0], sizes = [2, 32], strides = [1, 1]} : vector<2x128xf32> to vector<2x32xf32>
    %276 = arith.addf %274, %275 : vector<2x32xf32>
    %277 = arith.negf %276 : vector<2x32xf32>
    %278 = math.exp %277 : vector<2x32xf32>
    %cst_82 = arith.constant 1.000000e+00 : f32
    %279 = vector.broadcast %cst_82 : f32 to vector<2x32xf32>
    %280 = arith.addf %279, %278 : vector<2x32xf32>
    %281 = arith.divf %279, %280 : vector<2x32xf32>
    %282 = vector.extract_strided_slice %272 {offsets = [0, 32], sizes = [2, 32], strides = [1, 1]} : vector<2x128xf32> to vector<2x32xf32>
    %283 = vector.extract_strided_slice %269 {offsets = [0, 32], sizes = [2, 32], strides = [1, 1]} : vector<2x128xf32> to vector<2x32xf32>
    %284 = arith.addf %282, %283 : vector<2x32xf32>
    %285 = arith.negf %284 : vector<2x32xf32>
    %286 = math.exp %285 : vector<2x32xf32>
    %cst_83 = arith.constant 1.000000e+00 : f32
    %287 = vector.broadcast %cst_83 : f32 to vector<2x32xf32>
    %288 = arith.addf %287, %286 : vector<2x32xf32>
    %289 = arith.divf %287, %288 : vector<2x32xf32>
    %290 = vector.extract_strided_slice %272 {offsets = [0, 64], sizes = [2, 32], strides = [1, 1]} : vector<2x128xf32> to vector<2x32xf32>
    %291 = vector.extract_strided_slice %269 {offsets = [0, 64], sizes = [2, 32], strides = [1, 1]} : vector<2x128xf32> to vector<2x32xf32>
    %292 = arith.addf %291, %16 : vector<2x32xf32>
    %293 = arith.mulf %281, %292 : vector<2x32xf32>
    %294 = arith.addf %290, %293 : vector<2x32xf32>
    %295 = math.tanh %294 : vector<2x32xf32>
    %cst_84 = arith.constant 1.000000e+00 : f32
    %296 = vector.broadcast %cst_84 : f32 to vector<2x32xf32>
    %297 = arith.subf %296, %289 : vector<2x32xf32>
    %298 = arith.mulf %297, %295 : vector<2x32xf32>
    %299 = arith.mulf %289, %238 : vector<2x32xf32>
    %300 = arith.addf %298, %299 : vector<2x32xf32>
    %301 = vector.extract_strided_slice %273 {offsets = [0, 0], sizes = [2, 32], strides = [1, 1]} : vector<2x128xf32> to vector<2x32xf32>
    %302 = vector.extract_strided_slice %271 {offsets = [0, 0], sizes = [2, 32], strides = [1, 1]} : vector<2x128xf32> to vector<2x32xf32>
    %303 = arith.addf %301, %302 : vector<2x32xf32>
    %304 = arith.negf %303 : vector<2x32xf32>
    %305 = math.exp %304 : vector<2x32xf32>
    %cst_85 = arith.constant 1.000000e+00 : f32
    %306 = vector.broadcast %cst_85 : f32 to vector<2x32xf32>
    %307 = arith.addf %306, %305 : vector<2x32xf32>
    %308 = arith.divf %306, %307 : vector<2x32xf32>
    %309 = vector.extract_strided_slice %273 {offsets = [0, 32], sizes = [2, 32], strides = [1, 1]} : vector<2x128xf32> to vector<2x32xf32>
    %310 = vector.extract_strided_slice %271 {offsets = [0, 32], sizes = [2, 32], strides = [1, 1]} : vector<2x128xf32> to vector<2x32xf32>
    %311 = arith.addf %309, %310 : vector<2x32xf32>
    %312 = arith.negf %311 : vector<2x32xf32>
    %313 = math.exp %312 : vector<2x32xf32>
    %cst_86 = arith.constant 1.000000e+00 : f32
    %314 = vector.broadcast %cst_86 : f32 to vector<2x32xf32>
    %315 = arith.addf %314, %313 : vector<2x32xf32>
    %316 = arith.divf %314, %315 : vector<2x32xf32>
    %317 = vector.extract_strided_slice %273 {offsets = [0, 64], sizes = [2, 32], strides = [1, 1]} : vector<2x128xf32> to vector<2x32xf32>
    %318 = vector.extract_strided_slice %271 {offsets = [0, 64], sizes = [2, 32], strides = [1, 1]} : vector<2x128xf32> to vector<2x32xf32>
    %319 = arith.addf %318, %17 : vector<2x32xf32>
    %320 = arith.mulf %308, %319 : vector<2x32xf32>
    %321 = arith.addf %317, %320 : vector<2x32xf32>
    %322 = math.tanh %321 : vector<2x32xf32>
    %cst_87 = arith.constant 1.000000e+00 : f32
    %323 = vector.broadcast %cst_87 : f32 to vector<2x32xf32>
    %324 = arith.subf %323, %316 : vector<2x32xf32>
    %325 = arith.mulf %324, %322 : vector<2x32xf32>
    %326 = arith.mulf %316, %265 : vector<2x32xf32>
    %327 = arith.addf %325, %326 : vector<2x32xf32>
    %c8_88 = arith.constant 8 : index
    %c0_89 = arith.constant 0 : index
    %328 = vector.load %arg6[%c8_88, %c0_89] : memref<16x128xf32, #tpu.memory_space<vmem>>, vector<2x32xf32>
    tpu.vector_store %arg6[%c8_88, %c0_89], %300 {strides = array<i32>} : memref<16x128xf32, #tpu.memory_space<vmem>>, vector<2x32xf32>,
    %c6_90 = arith.constant 6 : index
    %c32_91 = arith.constant 32 : index
    %329 = vector.load %arg6[%c6_90, %c32_91] : memref<16x128xf32, #tpu.memory_space<vmem>>, vector<2x32xf32>
    tpu.vector_store %arg6[%c6_90, %c32_91], %327 {strides = array<i32>} : memref<16x128xf32, #tpu.memory_space<vmem>>, vector<2x32xf32>,
    %330 = arith.truncf %300 : vector<2x32xf32> to vector<2x32xbf16>
    %cst_92 = arith.constant dense<0.000000e+00> : vector<2x128xf32>
    %331 = tpu.matmul %330, %10, %cst_92 {dimension_numbers = #tpu.dot_dimension_numbers<[1], [0], [0], [1], [0, 0, 1, 1], [], []>} : vector<2x32xbf16>, vector<32x128xbf16>, vector<2x128xf32> -> vector<2x128xf32>
    %332 = arith.truncf %327 : vector<2x32xf32> to vector<2x32xbf16>
    %cst_93 = arith.constant dense<0.000000e+00> : vector<2x128xf32>
    %333 = tpu.matmul %332, %12, %cst_93 {dimension_numbers = #tpu.dot_dimension_numbers<[1], [0], [0], [1], [0, 0, 1, 1], [], []>} : vector<2x32xbf16>, vector<32x128xbf16>, vector<2x128xf32> -> vector<2x128xf32>
    %c10_94 = arith.constant 10 : index
    %c0_95 = arith.constant 0 : index
    %334 = vector.load %arg8[%c10_94, %c0_95] : memref<16x256xf32, #tpu.memory_space<vmem>>, vector<2x128xf32>
    %c4_96 = arith.constant 4 : index
    %c128_97 = arith.constant 128 : index
    %335 = vector.load %arg8[%c4_96, %c128_97] : memref<16x256xf32, #tpu.memory_space<vmem>>, vector<2x128xf32>
    %336 = vector.extract_strided_slice %334 {offsets = [0, 0], sizes = [2, 32], strides = [1, 1]} : vector<2x128xf32> to vector<2x32xf32>
    %337 = vector.extract_strided_slice %331 {offsets = [0, 0], sizes = [2, 32], strides = [1, 1]} : vector<2x128xf32> to vector<2x32xf32>
    %338 = arith.addf %336, %337 : vector<2x32xf32>
    %339 = arith.negf %338 : vector<2x32xf32>
    %340 = math.exp %339 : vector<2x32xf32>
    %cst_98 = arith.constant 1.000000e+00 : f32
    %341 = vector.broadcast %cst_98 : f32 to vector<2x32xf32>
    %342 = arith.addf %341, %340 : vector<2x32xf32>
    %343 = arith.divf %341, %342 : vector<2x32xf32>
    %344 = vector.extract_strided_slice %334 {offsets = [0, 32], sizes = [2, 32], strides = [1, 1]} : vector<2x128xf32> to vector<2x32xf32>
    %345 = vector.extract_strided_slice %331 {offsets = [0, 32], sizes = [2, 32], strides = [1, 1]} : vector<2x128xf32> to vector<2x32xf32>
    %346 = arith.addf %344, %345 : vector<2x32xf32>
    %347 = arith.negf %346 : vector<2x32xf32>
    %348 = math.exp %347 : vector<2x32xf32>
    %cst_99 = arith.constant 1.000000e+00 : f32
    %349 = vector.broadcast %cst_99 : f32 to vector<2x32xf32>
    %350 = arith.addf %349, %348 : vector<2x32xf32>
    %351 = arith.divf %349, %350 : vector<2x32xf32>
    %352 = vector.extract_strided_slice %334 {offsets = [0, 64], sizes = [2, 32], strides = [1, 1]} : vector<2x128xf32> to vector<2x32xf32>
    %353 = vector.extract_strided_slice %331 {offsets = [0, 64], sizes = [2, 32], strides = [1, 1]} : vector<2x128xf32> to vector<2x32xf32>
    %354 = arith.addf %353, %16 : vector<2x32xf32>
    %355 = arith.mulf %343, %354 : vector<2x32xf32>
    %356 = arith.addf %352, %355 : vector<2x32xf32>
    %357 = math.tanh %356 : vector<2x32xf32>
    %cst_100 = arith.constant 1.000000e+00 : f32
    %358 = vector.broadcast %cst_100 : f32 to vector<2x32xf32>
    %359 = arith.subf %358, %351 : vector<2x32xf32>
    %360 = arith.mulf %359, %357 : vector<2x32xf32>
    %361 = arith.mulf %351, %300 : vector<2x32xf32>
    %362 = arith.addf %360, %361 : vector<2x32xf32>
    %363 = vector.extract_strided_slice %335 {offsets = [0, 0], sizes = [2, 32], strides = [1, 1]} : vector<2x128xf32> to vector<2x32xf32>
    %364 = vector.extract_strided_slice %333 {offsets = [0, 0], sizes = [2, 32], strides = [1, 1]} : vector<2x128xf32> to vector<2x32xf32>
    %365 = arith.addf %363, %364 : vector<2x32xf32>
    %366 = arith.negf %365 : vector<2x32xf32>
    %367 = math.exp %366 : vector<2x32xf32>
    %cst_101 = arith.constant 1.000000e+00 : f32
    %368 = vector.broadcast %cst_101 : f32 to vector<2x32xf32>
    %369 = arith.addf %368, %367 : vector<2x32xf32>
    %370 = arith.divf %368, %369 : vector<2x32xf32>
    %371 = vector.extract_strided_slice %335 {offsets = [0, 32], sizes = [2, 32], strides = [1, 1]} : vector<2x128xf32> to vector<2x32xf32>
    %372 = vector.extract_strided_slice %333 {offsets = [0, 32], sizes = [2, 32], strides = [1, 1]} : vector<2x128xf32> to vector<2x32xf32>
    %373 = arith.addf %371, %372 : vector<2x32xf32>
    %374 = arith.negf %373 : vector<2x32xf32>
    %375 = math.exp %374 : vector<2x32xf32>
    %cst_102 = arith.constant 1.000000e+00 : f32
    %376 = vector.broadcast %cst_102 : f32 to vector<2x32xf32>
    %377 = arith.addf %376, %375 : vector<2x32xf32>
    %378 = arith.divf %376, %377 : vector<2x32xf32>
    %379 = vector.extract_strided_slice %335 {offsets = [0, 64], sizes = [2, 32], strides = [1, 1]} : vector<2x128xf32> to vector<2x32xf32>
    %380 = vector.extract_strided_slice %333 {offsets = [0, 64], sizes = [2, 32], strides = [1, 1]} : vector<2x128xf32> to vector<2x32xf32>
    %381 = arith.addf %380, %17 : vector<2x32xf32>
    %382 = arith.mulf %370, %381 : vector<2x32xf32>
    %383 = arith.addf %379, %382 : vector<2x32xf32>
    %384 = math.tanh %383 : vector<2x32xf32>
    %cst_103 = arith.constant 1.000000e+00 : f32
    %385 = vector.broadcast %cst_103 : f32 to vector<2x32xf32>
    %386 = arith.subf %385, %378 : vector<2x32xf32>
    %387 = arith.mulf %386, %384 : vector<2x32xf32>
    %388 = arith.mulf %378, %327 : vector<2x32xf32>
    %389 = arith.addf %387, %388 : vector<2x32xf32>
    %c10_104 = arith.constant 10 : index
    %c0_105 = arith.constant 0 : index
    %390 = vector.load %arg6[%c10_104, %c0_105] : memref<16x128xf32, #tpu.memory_space<vmem>>, vector<2x32xf32>
    tpu.vector_store %arg6[%c10_104, %c0_105], %362 {strides = array<i32>} : memref<16x128xf32, #tpu.memory_space<vmem>>, vector<2x32xf32>,
    %c4_106 = arith.constant 4 : index
    %c32_107 = arith.constant 32 : index
    %391 = vector.load %arg6[%c4_106, %c32_107] : memref<16x128xf32, #tpu.memory_space<vmem>>, vector<2x32xf32>
    tpu.vector_store %arg6[%c4_106, %c32_107], %389 {strides = array<i32>} : memref<16x128xf32, #tpu.memory_space<vmem>>, vector<2x32xf32>,
    %392 = arith.truncf %362 : vector<2x32xf32> to vector<2x32xbf16>
    %cst_108 = arith.constant dense<0.000000e+00> : vector<2x128xf32>
    %393 = tpu.matmul %392, %10, %cst_108 {dimension_numbers = #tpu.dot_dimension_numbers<[1], [0], [0], [1], [0, 0, 1, 1], [], []>} : vector<2x32xbf16>, vector<32x128xbf16>, vector<2x128xf32> -> vector<2x128xf32>
    %394 = arith.truncf %389 : vector<2x32xf32> to vector<2x32xbf16>
    %cst_109 = arith.constant dense<0.000000e+00> : vector<2x128xf32>
    %395 = tpu.matmul %394, %12, %cst_109 {dimension_numbers = #tpu.dot_dimension_numbers<[1], [0], [0], [1], [0, 0, 1, 1], [], []>} : vector<2x32xbf16>, vector<32x128xbf16>, vector<2x128xf32> -> vector<2x128xf32>
    %c12_110 = arith.constant 12 : index
    %c0_111 = arith.constant 0 : index
    %396 = vector.load %arg8[%c12_110, %c0_111] : memref<16x256xf32, #tpu.memory_space<vmem>>, vector<2x128xf32>
    %c2_112 = arith.constant 2 : index
    %c128_113 = arith.constant 128 : index
    %397 = vector.load %arg8[%c2_112, %c128_113] : memref<16x256xf32, #tpu.memory_space<vmem>>, vector<2x128xf32>
    %398 = vector.extract_strided_slice %396 {offsets = [0, 0], sizes = [2, 32], strides = [1, 1]} : vector<2x128xf32> to vector<2x32xf32>
    %399 = vector.extract_strided_slice %393 {offsets = [0, 0], sizes = [2, 32], strides = [1, 1]} : vector<2x128xf32> to vector<2x32xf32>
    %400 = arith.addf %398, %399 : vector<2x32xf32>
    %401 = arith.negf %400 : vector<2x32xf32>
    %402 = math.exp %401 : vector<2x32xf32>
    %cst_114 = arith.constant 1.000000e+00 : f32
    %403 = vector.broadcast %cst_114 : f32 to vector<2x32xf32>
    %404 = arith.addf %403, %402 : vector<2x32xf32>
    %405 = arith.divf %403, %404 : vector<2x32xf32>
    %406 = vector.extract_strided_slice %396 {offsets = [0, 32], sizes = [2, 32], strides = [1, 1]} : vector<2x128xf32> to vector<2x32xf32>
    %407 = vector.extract_strided_slice %393 {offsets = [0, 32], sizes = [2, 32], strides = [1, 1]} : vector<2x128xf32> to vector<2x32xf32>
    %408 = arith.addf %406, %407 : vector<2x32xf32>
    %409 = arith.negf %408 : vector<2x32xf32>
    %410 = math.exp %409 : vector<2x32xf32>
    %cst_115 = arith.constant 1.000000e+00 : f32
    %411 = vector.broadcast %cst_115 : f32 to vector<2x32xf32>
    %412 = arith.addf %411, %410 : vector<2x32xf32>
    %413 = arith.divf %411, %412 : vector<2x32xf32>
    %414 = vector.extract_strided_slice %396 {offsets = [0, 64], sizes = [2, 32], strides = [1, 1]} : vector<2x128xf32> to vector<2x32xf32>
    %415 = vector.extract_strided_slice %393 {offsets = [0, 64], sizes = [2, 32], strides = [1, 1]} : vector<2x128xf32> to vector<2x32xf32>
    %416 = arith.addf %415, %16 : vector<2x32xf32>
    %417 = arith.mulf %405, %416 : vector<2x32xf32>
    %418 = arith.addf %414, %417 : vector<2x32xf32>
    %419 = math.tanh %418 : vector<2x32xf32>
    %cst_116 = arith.constant 1.000000e+00 : f32
    %420 = vector.broadcast %cst_116 : f32 to vector<2x32xf32>
    %421 = arith.subf %420, %413 : vector<2x32xf32>
    %422 = arith.mulf %421, %419 : vector<2x32xf32>
    %423 = arith.mulf %413, %362 : vector<2x32xf32>
    %424 = arith.addf %422, %423 : vector<2x32xf32>
    %425 = vector.extract_strided_slice %397 {offsets = [0, 0], sizes = [2, 32], strides = [1, 1]} : vector<2x128xf32> to vector<2x32xf32>
    %426 = vector.extract_strided_slice %395 {offsets = [0, 0], sizes = [2, 32], strides = [1, 1]} : vector<2x128xf32> to vector<2x32xf32>
    %427 = arith.addf %425, %426 : vector<2x32xf32>
    %428 = arith.negf %427 : vector<2x32xf32>
    %429 = math.exp %428 : vector<2x32xf32>
    %cst_117 = arith.constant 1.000000e+00 : f32
    %430 = vector.broadcast %cst_117 : f32 to vector<2x32xf32>
    %431 = arith.addf %430, %429 : vector<2x32xf32>
    %432 = arith.divf %430, %431 : vector<2x32xf32>
    %433 = vector.extract_strided_slice %397 {offsets = [0, 32], sizes = [2, 32], strides = [1, 1]} : vector<2x128xf32> to vector<2x32xf32>
    %434 = vector.extract_strided_slice %395 {offsets = [0, 32], sizes = [2, 32], strides = [1, 1]} : vector<2x128xf32> to vector<2x32xf32>
    %435 = arith.addf %433, %434 : vector<2x32xf32>
    %436 = arith.negf %435 : vector<2x32xf32>
    %437 = math.exp %436 : vector<2x32xf32>
    %cst_118 = arith.constant 1.000000e+00 : f32
    %438 = vector.broadcast %cst_118 : f32 to vector<2x32xf32>
    %439 = arith.addf %438, %437 : vector<2x32xf32>
    %440 = arith.divf %438, %439 : vector<2x32xf32>
    %441 = vector.extract_strided_slice %397 {offsets = [0, 64], sizes = [2, 32], strides = [1, 1]} : vector<2x128xf32> to vector<2x32xf32>
    %442 = vector.extract_strided_slice %395 {offsets = [0, 64], sizes = [2, 32], strides = [1, 1]} : vector<2x128xf32> to vector<2x32xf32>
    %443 = arith.addf %442, %17 : vector<2x32xf32>
    %444 = arith.mulf %432, %443 : vector<2x32xf32>
    %445 = arith.addf %441, %444 : vector<2x32xf32>
    %446 = math.tanh %445 : vector<2x32xf32>
    %cst_119 = arith.constant 1.000000e+00 : f32
    %447 = vector.broadcast %cst_119 : f32 to vector<2x32xf32>
    %448 = arith.subf %447, %440 : vector<2x32xf32>
    %449 = arith.mulf %448, %446 : vector<2x32xf32>
    %450 = arith.mulf %440, %389 : vector<2x32xf32>
    %451 = arith.addf %449, %450 : vector<2x32xf32>
    %c12_120 = arith.constant 12 : index
    %c0_121 = arith.constant 0 : index
    %452 = vector.load %arg6[%c12_120, %c0_121] : memref<16x128xf32, #tpu.memory_space<vmem>>, vector<2x32xf32>
    tpu.vector_store %arg6[%c12_120, %c0_121], %424 {strides = array<i32>} : memref<16x128xf32, #tpu.memory_space<vmem>>, vector<2x32xf32>,
    %c2_122 = arith.constant 2 : index
    %c32_123 = arith.constant 32 : index
    %453 = vector.load %arg6[%c2_122, %c32_123] : memref<16x128xf32, #tpu.memory_space<vmem>>, vector<2x32xf32>
    tpu.vector_store %arg6[%c2_122, %c32_123], %451 {strides = array<i32>} : memref<16x128xf32, #tpu.memory_space<vmem>>, vector<2x32xf32>,
    %454 = arith.truncf %424 : vector<2x32xf32> to vector<2x32xbf16>
    %cst_124 = arith.constant dense<0.000000e+00> : vector<2x128xf32>
    %455 = tpu.matmul %454, %10, %cst_124 {dimension_numbers = #tpu.dot_dimension_numbers<[1], [0], [0], [1], [0, 0, 1, 1], [], []>} : vector<2x32xbf16>, vector<32x128xbf16>, vector<2x128xf32> -> vector<2x128xf32>
    %456 = arith.truncf %451 : vector<2x32xf32> to vector<2x32xbf16>
    %cst_125 = arith.constant dense<0.000000e+00> : vector<2x128xf32>
    %457 = tpu.matmul %456, %12, %cst_125 {dimension_numbers = #tpu.dot_dimension_numbers<[1], [0], [0], [1], [0, 0, 1, 1], [], []>} : vector<2x32xbf16>, vector<32x128xbf16>, vector<2x128xf32> -> vector<2x128xf32>
    %c14_126 = arith.constant 14 : index
    %c0_127 = arith.constant 0 : index
    %458 = vector.load %arg8[%c14_126, %c0_127] : memref<16x256xf32, #tpu.memory_space<vmem>>, vector<2x128xf32>
    %c0_128 = arith.constant 0 : index
    %c128_129 = arith.constant 128 : index
    %459 = vector.load %arg8[%c0_128, %c128_129] : memref<16x256xf32, #tpu.memory_space<vmem>>, vector<2x128xf32>
    %460 = vector.extract_strided_slice %458 {offsets = [0, 0], sizes = [2, 32], strides = [1, 1]} : vector<2x128xf32> to vector<2x32xf32>
    %461 = vector.extract_strided_slice %455 {offsets = [0, 0], sizes = [2, 32], strides = [1, 1]} : vector<2x128xf32> to vector<2x32xf32>
    %462 = arith.addf %460, %461 : vector<2x32xf32>
    %463 = arith.negf %462 : vector<2x32xf32>
    %464 = math.exp %463 : vector<2x32xf32>
    %cst_130 = arith.constant 1.000000e+00 : f32
    %465 = vector.broadcast %cst_130 : f32 to vector<2x32xf32>
    %466 = arith.addf %465, %464 : vector<2x32xf32>
    %467 = arith.divf %465, %466 : vector<2x32xf32>
    %468 = vector.extract_strided_slice %458 {offsets = [0, 32], sizes = [2, 32], strides = [1, 1]} : vector<2x128xf32> to vector<2x32xf32>
    %469 = vector.extract_strided_slice %455 {offsets = [0, 32], sizes = [2, 32], strides = [1, 1]} : vector<2x128xf32> to vector<2x32xf32>
    %470 = arith.addf %468, %469 : vector<2x32xf32>
    %471 = arith.negf %470 : vector<2x32xf32>
    %472 = math.exp %471 : vector<2x32xf32>
    %cst_131 = arith.constant 1.000000e+00 : f32
    %473 = vector.broadcast %cst_131 : f32 to vector<2x32xf32>
    %474 = arith.addf %473, %472 : vector<2x32xf32>
    %475 = arith.divf %473, %474 : vector<2x32xf32>
    %476 = vector.extract_strided_slice %458 {offsets = [0, 64], sizes = [2, 32], strides = [1, 1]} : vector<2x128xf32> to vector<2x32xf32>
    %477 = vector.extract_strided_slice %455 {offsets = [0, 64], sizes = [2, 32], strides = [1, 1]} : vector<2x128xf32> to vector<2x32xf32>
    %478 = arith.addf %477, %16 : vector<2x32xf32>
    %479 = arith.mulf %467, %478 : vector<2x32xf32>
    %480 = arith.addf %476, %479 : vector<2x32xf32>
    %481 = math.tanh %480 : vector<2x32xf32>
    %cst_132 = arith.constant 1.000000e+00 : f32
    %482 = vector.broadcast %cst_132 : f32 to vector<2x32xf32>
    %483 = arith.subf %482, %475 : vector<2x32xf32>
    %484 = arith.mulf %483, %481 : vector<2x32xf32>
    %485 = arith.mulf %475, %424 : vector<2x32xf32>
    %486 = arith.addf %484, %485 : vector<2x32xf32>
    %487 = vector.extract_strided_slice %459 {offsets = [0, 0], sizes = [2, 32], strides = [1, 1]} : vector<2x128xf32> to vector<2x32xf32>
    %488 = vector.extract_strided_slice %457 {offsets = [0, 0], sizes = [2, 32], strides = [1, 1]} : vector<2x128xf32> to vector<2x32xf32>
    %489 = arith.addf %487, %488 : vector<2x32xf32>
    %490 = arith.negf %489 : vector<2x32xf32>
    %491 = math.exp %490 : vector<2x32xf32>
    %cst_133 = arith.constant 1.000000e+00 : f32
    %492 = vector.broadcast %cst_133 : f32 to vector<2x32xf32>
    %493 = arith.addf %492, %491 : vector<2x32xf32>
    %494 = arith.divf %492, %493 : vector<2x32xf32>
    %495 = vector.extract_strided_slice %459 {offsets = [0, 32], sizes = [2, 32], strides = [1, 1]} : vector<2x128xf32> to vector<2x32xf32>
    %496 = vector.extract_strided_slice %457 {offsets = [0, 32], sizes = [2, 32], strides = [1, 1]} : vector<2x128xf32> to vector<2x32xf32>
    %497 = arith.addf %495, %496 : vector<2x32xf32>
    %498 = arith.negf %497 : vector<2x32xf32>
    %499 = math.exp %498 : vector<2x32xf32>
    %cst_134 = arith.constant 1.000000e+00 : f32
    %500 = vector.broadcast %cst_134 : f32 to vector<2x32xf32>
    %501 = arith.addf %500, %499 : vector<2x32xf32>
    %502 = arith.divf %500, %501 : vector<2x32xf32>
    %503 = vector.extract_strided_slice %459 {offsets = [0, 64], sizes = [2, 32], strides = [1, 1]} : vector<2x128xf32> to vector<2x32xf32>
    %504 = vector.extract_strided_slice %457 {offsets = [0, 64], sizes = [2, 32], strides = [1, 1]} : vector<2x128xf32> to vector<2x32xf32>
    %505 = arith.addf %504, %17 : vector<2x32xf32>
    %506 = arith.mulf %494, %505 : vector<2x32xf32>
    %507 = arith.addf %503, %506 : vector<2x32xf32>
    %508 = math.tanh %507 : vector<2x32xf32>
    %cst_135 = arith.constant 1.000000e+00 : f32
    %509 = vector.broadcast %cst_135 : f32 to vector<2x32xf32>
    %510 = arith.subf %509, %502 : vector<2x32xf32>
    %511 = arith.mulf %510, %508 : vector<2x32xf32>
    %512 = arith.mulf %502, %451 : vector<2x32xf32>
    %513 = arith.addf %511, %512 : vector<2x32xf32>
    %c14_136 = arith.constant 14 : index
    %c0_137 = arith.constant 0 : index
    %514 = vector.load %arg6[%c14_136, %c0_137] : memref<16x128xf32, #tpu.memory_space<vmem>>, vector<2x32xf32>
    tpu.vector_store %arg6[%c14_136, %c0_137], %486 {strides = array<i32>} : memref<16x128xf32, #tpu.memory_space<vmem>>, vector<2x32xf32>,
    %c0_138 = arith.constant 0 : index
    %c32_139 = arith.constant 32 : index
    %515 = vector.load %arg6[%c0_138, %c32_139] : memref<16x128xf32, #tpu.memory_space<vmem>>, vector<2x32xf32>
    tpu.vector_store %arg6[%c0_138, %c32_139], %513 {strides = array<i32>} : memref<16x128xf32, #tpu.memory_space<vmem>>, vector<2x32xf32>,
    %c0_140 = arith.constant 0 : index
    %c0_141 = arith.constant 0 : index
    %516 = vector.load %arg7[%c0_140, %c0_141] : memref<2x64xf32, #tpu.memory_space<vmem>>, vector<2x32xf32>
    tpu.vector_store %arg7[%c0_140, %c0_141], %486 {strides = array<i32>} : memref<2x64xf32, #tpu.memory_space<vmem>>, vector<2x32xf32>,
    %c0_142 = arith.constant 0 : index
    %c32_143 = arith.constant 32 : index
    %517 = vector.load %arg7[%c0_142, %c32_143] : memref<2x64xf32, #tpu.memory_space<vmem>>, vector<2x32xf32>
    tpu.vector_store %arg7[%c0_142, %c32_143], %513 {strides = array<i32>} : memref<2x64xf32, #tpu.memory_space<vmem>>, vector<2x32xf32>,
    return
  }
}

</mosaic_0001>

<bundles_post_ra>
// kernel: traj_gru_forward.2
= control target key start
LH: loop header
LB: loop body
LE: loop exit
PB: predicated region body
PF: predicated region fallthrough
CT: control target
= control target key end

     0   :  { %13 = vsyncpa [#allocation4], 0  ;;  %s1929_s0 = inlined_call_operand.vmem [shape: f32[16,2], index: 0, kind: input, shape index: {}]   ;;  %s1930_s1 = inlined_call_operand.vmem [shape: f32[2,256], index: 1, kind: input, shape index: {}]   ;;  %s1931_s2 = inlined_call_operand.vmem [shape: f32[1,256], index: 2, kind: input, shape index: {}]   ;;  %s1932_s3 = inlined_call_operand.hbm [shape: bf16[2,32,128], index: 3, kind: input, shape index: {}]   ;;  %s1933_s4 = inlined_call_operand.hbm [shape: f32[1,64], index: 4, kind: input, shape index: {}]   ;;  %s1934_s5 = inlined_call_operand.vmem [shape: f32[2,64], index: 5, kind: input, shape index: {}]   ;;  %s1935_s6 = inlined_call_operand.vmem [shape: f32[16,128], index: 6, kind: output, shape index: {0}]   ;;  %s1936_s7 = inlined_call_operand.vmem [shape: f32[2,64], index: 7, kind: output, shape index: {1}]  }
   0x1   :  { %s25_s26 = sshll.u32 %s1932_s3, 4  ;;  %s26_s26 = int_to_ptr.hbm [resolvable:$true] %s25_s26 }
   0x2   :  { %14 = vsyncpa [#allocation6], 0  ;;  %s1533_s27 = smov [#allocation3]   ;;  %s39_s8 = sshll.u32 %s1933_s4, 4  ;;  %s40_s8 = int_to_ptr.hbm [resolvable:$true] %s39_s8 }
   0x3   :  { %s27_s28 = sshll.u32 %s1533_s27, 4  ;;  %s1534_s9 = smov 64   ;;  %s28_s28 = int_to_ptr.vmem [resolvable:$true] %s27_s28 }
   0x4   :  { %s1535_s10 = smov 4   ;;  %s1536_s11 = smov [#allocation5]  }
   0x5   :  { %33 = dma.hbm_to_vmem [thread:$0]  %s26_s26, 512, %s28_s28, [#allocation4], %s1534_s9, %s1534_s9, %s1535_s10  }
   0x6   :  { %s41_s12 = sshll.u32 %s1536_s11, 4  ;;  %s42_s12 = int_to_ptr.vmem [resolvable:$true] %s41_s12 }
   0x7   :  { %44 = dma.hbm_to_vmem [thread:$0]  %s40_s8, 16, %s42_s12, [#allocation6]  }
   0x8   :  { %1529 = dma.done.wait [#allocation4], 512  }
   0x9   :  { %1530 = vsyncadd [#allocation4], 4294966784 }
   0xa   :  { %1531 = dma.done.wait [#allocation6], 16  }
   0xb   :  { %1532 = vsyncadd [#allocation6], 4294967280  ;;  %v1591_v0 = vld [vmem:[%s1934_s5] sm:$0x3]  ;;  %v1384_v3 = vld [vmem:[#allocation5] ss:$0 sm:$0xff] }
   0xc   :  { %v58_v1 = vld [vmem:[%s1930_s1] sm:$0xf]  ;;  %v146_v2 = vpack.c.bf16 %v1591_v0, %v1591_v0  ;;  %s1537_s15 = smov 96   ;;  %s1538_s16 = smov 32   ;;  %vm76_vm0 = vcmask 1041408   ;;  %v57_v4 = vld [vmem:[%s1929_s0 + $0x8] sm:$0xff] }
   0xd   :  { %66 = vst [vmem:[#allocation1] ss:$4 sm:$0xff] %v58_v1  ;;  %279 = vrot.lane.b32.xlu1 %v1384_v3, %s1538_s16  ;;  %vm69_vm1 = vcmask 15360   ;;  %v1603_v5 = vld [vmem:[#allocation3 + $0x8] sm:$0xff]  ;;  %v56_v6 = vld [vmem:[%s1929_s0] sm:$0xff]  ;;  %v1615_v10 = vld [vmem:[#allocation3] sm:$0xff] }
   0xe   :  { %177 = vrot.lane.b32.xlu0 %v146_v2, %s1537_s15  ;;  %v1612_v9 = vld [vmem:[#allocation3 + $0x18] sm:$0xff]  ;;  %v1623_v11 = vld [vmem:[#allocation3 + $0x10] sm:$0xff]  ;;  %vm159_vm2 = vcmask 261120   ;;  %vm311_vm11 = vcmask 523526  }
   0xf   :  { %v1648_v13 = vld [vmem:[%s1931_s2] sm:$0x3] }
  0x10   :  { %v61_v14 = vperm.slane %v1648_v13, 0  ;;  %v62_v18 = vperm.slane %v1648_v13, 1 }
  0x14   :  { %v67_v7 = vld.sshfl [vmem:[#allocation1] sm:$0xff pattern:$0x73625140]  ;;  %v68_v8 = vld.sshfl [vmem:[#allocation1 + $0x8] sm:$0xff pattern:$0x73625140] }
  0x15   :  { %1375 = vmatpush.msk.msra.mxu2 %vm76_vm0, %v67_v7  ;;  %1317 = vmatpush.msk.msra.mxu0 %vm76_vm0, %v67_v7 }
  0x16   :  { %1319 = vmatmul.msk.f32.vlgmr.msra.gmra.mxu2 %vm69_vm1, %v57_v4  ;;  %1318 = vmatmul.msk.f32.vlgmr.msra.gmra.mxu0 %vm69_vm1, %v56_v6 }
  0x17   :  { %169 = vmatpush.bf16.msrb.mxu2 %v1603_v5  ;;  %229 = vrot.lane.b32.xlu0 %v1384_v3, %s1534_s9 }
  0x18   :  { %1376 = vmatpush.msk.msra.mxu3 %vm76_vm0, %v68_v8  ;;  %326 = vmatpush.bf16.msrb.mxu0 %v1603_v5 }
  0x19   :  { %1322 = vmatmul.msk.f32.vlgmr.msra.gmra.mxu3 %vm69_vm1, %v57_v4  ;;  %1320 = vmatpush.msk.msra.mxu1 %vm76_vm0, %v68_v8 }
  0x1a   :  { %200 = vmatpush.bf16.msrb.mxu3 %v1612_v9  ;;  %1321 = vmatmul.msk.f32.vlgmr.msra.gmra.mxu1 %vm69_vm1, %v56_v6 }
  0x1b   :  { %170 = vmatpush.bf16.msrb.mxu2 %v1615_v10  ;;  %347 = vmatpush.bf16.msrb.mxu1 %v1612_v9 }
  0x1c   :  { %327 = vmatpush.bf16.msrb.mxu0 %v1615_v10 }
  0x1e   :  { %1331 = vmatmul.msk.bf16.vlgmr.msrb.gmra.mxu2 %vm159_vm2, %v146_v2  ;;  %201 = vmatpush.bf16.msrb.mxu3 %v1623_v11 }
  0x1f   :  { %471 = vmatpush.bf16.msra.mxu2 %v1603_v5  ;;  %348 = vmatpush.bf16.msrb.mxu1 %v1623_v11 }
  0x20   :  { %616 = vmatpush.bf16.msra.mxu0 %v1603_v5 }
  0x22   :  { %492 = vmatpush.bf16.msra.mxu3 %v1612_v9 }
  0x23   :  { %472 = vmatpush.bf16.msra.mxu2 %v1615_v10  ;;  %637 = vmatpush.bf16.msra.mxu1 %v1612_v9 }
  0x24   :  { %617 = vmatpush.bf16.msra.mxu0 %v1615_v10 }
  0x26   :  { %493 = vmatpush.bf16.msra.mxu3 %v1623_v11 }
  0x27   :  { %757 = vmatpush.bf16.msrb.mxu2 %v1603_v5  ;;  %638 = vmatpush.bf16.msra.mxu1 %v1623_v11 }
  0x2b   :  { %758 = vmatpush.bf16.msrb.mxu2 %v1615_v10 }
  0x7f   :  { %v1658_v32 = vpop.permute.xlu1 %279 }
  0x80   :  { %v178_v12 = vpop.permute.xlu0 %177 }
  0x81   :  { %1340 = vmatmul.msk.bf16.vlgmr.msrb.gmra.mxu3 %vm159_vm2, %v178_v12 }
  0x82   :  { %777 = vmatpush.bf16.msrb.mxu3 %v1612_v9 }
  0x86   :  { %778 = vmatpush.bf16.msrb.mxu3 %v1623_v11 }
  0x89   :  { %v1654_v22 = vpop.permute.xlu0 %229 }
  0x93   :  { %v98_v15 = vpop.f32.mrf.mxu0 }
  0x94   :  { %v99_v16 = vadd.f32 %v98_v15, %v61_v14 }
  0x96   :  { %127 = vst [vmem:[#allocation2 + $0x10] sm:$0xff] %v99_v16 }
  0x99   :  { %v101_v17 = vpop.f32.mrf.mxu2 }
  0x9a   :  { %v102_v19 = vadd.f32 %v101_v17, %v61_v14 }
  0x9c   :  { %129 = vst [vmem:[#allocation2 + $0x18] sm:$0xff] %v102_v19  ;;  %v124_v20 = vpop.f32.mrf.mxu3 }
  0x9d   :  { %v125_v21 = vadd.f32 %v124_v20, %v62_v18  ;;  %v207_v26 = vld [vmem:[#allocation2 + $0x10] sm:$0x3] }
  0x9f   :  { %130 = vst [vmem:[#allocation2 + $0x8] sm:$0xff] %v125_v21 }
  0xa1   :  { %v172_v23 = vpop.f32.mrf.mxu2 }
  0xa2   :  { %v232_v24 = vadd.f32 %v1654_v22, %v172_v23  ;;  %v209_v27 = vadd.f32 %v207_v26, %v172_v23  ;;  %v1539_v23 = vmov 0.0  }
  0xa3   :  { %131 = vst [vmem:[%s1935_s6] sm:$0xff] %v1539_v23 }
  0xa4   :  { %234 = vrot.lane.b32.xlu1 %v232_v24, %s1534_s9  ;;  %v1341_v28 = vmul.f32 -1.442695, %v209_v27  ;;  %132 = vst [vmem:[%s1935_s6 + $0x8] sm:$0xff] %v1539_v23  ;;  %v301_v24 = vrot.slane %v1591_v0, 2 }
  0xa6   :  { %1385 = vpow2.f32 %v1341_v28  ;;  %v208_v49 = vld [vmem:[#allocation2 + $0x8] sm:$0xc0] }
  0xa9   :  { %v174_v25 = vpop.f32.mrf.mxu2 }
  0xac   :  { %v1386_v29 = vpop.eup %1385 }
  0xad   :  { %v213_v30 = vadd.f32 1.0, %v1386_v29 }
  0xaf   :  { %1387 = vrcp.f32 %v213_v30  ;;  %v225_v41 = vand.u32 2147483648, %v213_v30  ;;  %vm219_vm4 = vweird.f32 %v213_v30  ;;  %v223_v42 = vand.u32 2147483647, %v213_v30 }
  0xb1   :  { %v226_v44 = vor.u32 1.1754944e-38, %v225_v41  ;;  %vm224_vm6 = vcmp.eq.f32.partialorder %v223_v42, 8.507059e+37  ;;  %v354_v41 = vld [vmem:[#allocation2 + $0x10] sm:$0xc] }
  0xb5   :  { %v1388_v31 = vpop.eup %1387 }
  0xb6   :  { %v215_v33 = vmul.f32 %v1388_v31, %v213_v30  ;;  %vm220_vm3 = vweird.f32 %v1388_v31 }
  0xb7   :  { %vm221_vm5 = vmor %vm219_vm4, %vm220_vm3 }
  0xb8   :  { %v216_v36 = vsub.f32 1.0, %v215_v33 }
  0xba   :  { %v217_v38 = vmul.f32 %v1388_v31, %v216_v36 }
  0xbc   :  { %v218_v40 = vadd.f32 %v1388_v31, %v217_v38 }
  0xbe   :  { %v222_v43 = vsel %vm221_vm5, %v1388_v31, %v218_v40  ;;  %vm455_vm5 = vcmask 521476  }
  0xbf   :  { %v227_v46 = vsel %vm224_vm6, %v226_v44, %v222_v43 }
  0xc0   :  { %v244_v15 = vsub.f32 1.0, %v227_v46 }
 0x104   :  { %v203_v34 = vpop.f32.mrf.mxu3 }
 0x105   :  { %v282_v35 = vadd.f32 %v1658_v32, %v203_v34  ;;  %v257_v48 = vrot.slane %v203_v34, 2  ;;  %v121_v34 = vpop.f32.mrf.mxu1 }
 0x107   :  { %v284_v37 = vrot.slane %v282_v35, 2  ;;  %v259_v50 = vadd.f32 %v257_v48, %v208_v49  ;;  %v122_v35 = vadd.f32 %v121_v34, %v62_v18 }
 0x109   :  { %285 = vrot.lane.b32.xlu2 %v284_v37, %s1534_s9  ;;  %v1342_v51 = vmul.f32 -1.442695, %v259_v50  ;;  %128 = vst [vmem:[#allocation2] sm:$0xff] %v122_v35 }
 0x10b   :  { %1389 = vpow2.f32 %v1342_v51 }
 0x10c   :  { %v205_v39 = vpop.f32.mrf.mxu3 }
 0x111   :  { %v1390_v52 = vpop.eup %1389 }
 0x112   :  { %v263_v53 = vadd.f32 1.0, %v1390_v52 }
 0x114   :  { %1391 = vrcp.f32 %v263_v53  ;;  %vm269_vm7 = vweird.f32 %v263_v53  ;;  %v275_v59 = vand.u32 2147483648, %v263_v53  ;;  %v273_v60 = vand.u32 2147483647, %v263_v53 }
 0x116   :  { %v235_v45 = vpop.permute.xlu1 %234  ;;  %v276_v62 = vor.u32 1.1754944e-38, %v275_v59  ;;  %vm274_vm10 = vcmp.eq.f32.partialorder %v273_v60, 8.507059e+37 }
 0x117   :  { %v237_v47 = vmul.f32 %v235_v45, %v227_v46 }
 0x119   :  { %239 = vrot.lane.b32.xlu2 %v237_v47, %s1534_s9  ;;  %v355_v47 = vld [vmem:[#allocation2 + $0x8] sm:$0x30] }
 0x11a   :  { %v1392_v54 = vpop.eup %1391 }
 0x11b   :  { %v265_v55 = vmul.f32 %v1392_v54, %v263_v53  ;;  %vm270_vm8 = vweird.f32 %v1392_v54 }
 0x11c   :  { %vm271_vm9 = vmor %vm269_vm7, %vm270_vm8 }
 0x11d   :  { %v266_v56 = vsub.f32 1.0, %v265_v55 }
 0x11f   :  { %v267_v57 = vmul.f32 %v1392_v54, %v266_v56 }
 0x121   :  { %251 = vrot.lane.b32.xlu2 %v1591_v0, %s1538_s16  ;;  %v268_v58 = vadd.f32 %v1392_v54, %v267_v57 }
 0x123   :  { %v272_v61 = vsel %vm271_vm9, %v1392_v54, %v268_v58 }
 0x124   :  { %v277_v1 = vsel %vm274_vm10, %v276_v62, %v272_v61 }
 0x125   :  { %v295_v25 = vsub.f32 1.0, %v277_v1  ;;  %v303_v27 = vmul.f32 %v301_v24, %v277_v1 }
 0x163   :  { %v286_v63 = vpop.permute.xlu2 %285 }
 0x164   :  { %v288_v2 = vmul.f32 %v286_v63, %v277_v1 }
 0x166   :  { %290 = vrot.lane.b32.xlu0 %v288_v2, %s1534_s9 }
 0x173   :  { %v240_v3 = vpop.permute.xlu2 %239 }
 0x174   :  { %v242_v4 = vadd.f32 %v240_v3, %v207_v26 }
 0x176   :  { %1393 = vtanh.f32 %v242_v4 }
 0x17b   :  { %v252_v14 = vpop.permute.xlu2 %251 }
 0x17c   :  { %v1394_v6 = vpop.eup %1393  ;;  %v254_v17 = vmul.f32 %v252_v14, %v227_v46 }
 0x17d   :  { %246 = vrot.lane.b32.xlu1 %v1394_v6, %s1537_s15 }
 0x1d8   :  { %v291_v7 = vpop.permute.xlu0 %290 }
 0x1d9   :  { %v293_v8 = vadd.f32 %v291_v7, %v208_v49 }
 0x1db   :  { %1395 = vtanh.f32 %v293_v8 }
 0x1e1   :  { %v1396_v12 = vpop.eup %1395 }
 0x1e2   :  { %297 = vrot.lane.b32.xlu0 %v1396_v12, %s1537_s15 }
 0x1ef   :  { %v247_v16 = vpop.permute.xlu1 %246 }
 0x1f0   :  { %v249_v19 = vmul.f32 %v247_v16, %v244_v15 }
 0x1f2   :  { %v1668_v20 = vadd.f32 %v254_v17, %v249_v19 }
 0x1f4   :  { %v313_v21 = vpack.c.bf16 %v1668_v20, %v1668_v20 }
 0x1f6   :  { %315 = vrot.lane.b32.xlu1 %v313_v21, %s1537_s15 }
 0x254   :  { %v298_v26 = vpop.permute.xlu0 %297 }
 0x255   :  { %v300_v28 = vmul.f32 %v298_v26, %v295_v25 }
 0x257   :  { %v1680_v29 = vadd.f32 %v303_v27, %v300_v28 }
 0x259   :  { %v333_v30 = vpack.c.bf16 %v1680_v29, %v1680_v29  ;;  %312 = vst.msk [vmem:[%s1935_s6 + $0x8] sm:$0xc0] %vm311_vm11, %v1680_v29  ;;  %v445_v4 = vrot.slane %v1680_v29, 2 }
 0x25b   :  { %v335_v31 = vrot.slane %v333_v30, 3 }
 0x25d   :  { %336 = vrot.lane.b32.xlu2 %v335_v31, %s1537_s15 }
 0x268   :  { %v316_v0 = vpop.permute.xlu1 %315 }
 0x269   :  { %1343 = vmatmul.msk.bf16.vlgmr.msrb.gmra.mxu0 %vm159_vm2, %v316_v0  ;;  %v398_v0 = vrot.slane %v1668_v20, 6 }
 0x26a   :  { %894 = vmatpush.bf16.msrb.mxu0 %v1603_v5 }
 0x26e   :  { %895 = vmatpush.bf16.msrb.mxu0 %v1615_v10 }
 0x2b7   :  { %v337_v33 = vpop.permute.xlu2 %336 }
 0x2b8   :  { %1344 = vmatmul.msk.bf16.vlgmr.msrb.gmra.mxu1 %vm159_vm2, %v337_v33 }
 0x2b9   :  { %915 = vmatpush.bf16.msrb.mxu1 %v1612_v9 }
 0x2bd   :  { %916 = vmatpush.bf16.msrb.mxu1 %v1623_v11 }
 0x2e6   :  { %v329_v36 = vpop.f32.mrf.mxu0 }
 0x2e7   :  { %v379_v37 = vadd.f32 %v329_v36, %v1654_v22  ;;  %v357_v40 = vrot.slane %v329_v36, 6 }
 0x2e9   :  { %v381_v38 = vrot.slane %v379_v37, 6  ;;  %v359_v42 = vadd.f32 %v357_v40, %v354_v41 }
 0x2eb   :  { %382 = vrot.lane.b32.xlu0 %v381_v38, %s1534_s9  ;;  %v1345_v43 = vmul.f32 -1.442695, %v359_v42 }
 0x2ed   :  { %1397 = vpow2.f32 %v1345_v43 }
 0x2ee   :  { %v331_v39 = vpop.f32.mrf.mxu0 }
 0x2f3   :  { %v1398_v48 = vpop.eup %1397 }
 0x2f4   :  { %v363_v50 = vadd.f32 1.0, %v1398_v48 }
 0x2f6   :  { %v375_v8 = vand.u32 2147483648, %v363_v50  ;;  %vm369_vm1 = vweird.f32 %v363_v50  ;;  %v373_v14 = vand.u32 2147483647, %v363_v50 }
 0x2f8   :  { %v376_v16 = vor.u32 1.1754944e-38, %v375_v8  ;;  %vm374_vm4 = vcmp.eq.f32.partialorder %v373_v14, 8.507059e+37  ;;  %v500_v14 = vld [vmem:[#allocation2 + $0x8] sm:$0xc] }
 0x335   :  { %v350_v44 = vpop.f32.mrf.mxu1 }
 0x336   :  { %v403_v45 = vrot.slane %v350_v44, 4  ;;  %v425_v46 = vadd.f32 %v350_v44, %v1658_v32 }
 0x338   :  { %v405_v13 = vadd.f32 %v403_v45, %v355_v47  ;;  %v427_v18 = vrot.slane %v425_v46, 4 }
 0x33a   :  { %v1346_v49 = vmul.f32 -1.442695, %v405_v13  ;;  %428 = vrot.lane.b32.xlu2 %v427_v18, %s1534_s9 }
 0x33c   :  { %1399 = vpow2.f32 %v1346_v49 }
 0x33d   :  { %v352_v51 = vpop.f32.mrf.mxu1  ;;  %1401 = vrcp.f32 %v363_v50 }
 0x342   :  { %v1400_v52 = vpop.eup %1399 }
 0x343   :  { %v409_v53 = vadd.f32 1.0, %v1400_v52  ;;  %v1402_v54 = vpop.eup %1401 }
 0x344   :  { %v365_v55 = vmul.f32 %v1402_v54, %v363_v50  ;;  %vm370_vm0 = vweird.f32 %v1402_v54 }
 0x345   :  { %1403 = vrcp.f32 %v409_v53  ;;  %v421_v60 = vand.u32 2147483648, %v409_v53  ;;  %v419_v62 = vand.u32 2147483647, %v409_v53  ;;  %vm415_vm13 = vweird.f32 %v409_v53  ;;  %vm371_vm3 = vmor %vm369_vm1, %vm370_vm0 }
 0x346   :  { %v366_v58 = vsub.f32 1.0, %v365_v55 }
 0x347   :  { %v422_v2 = vor.u32 1.1754944e-38, %v421_v60  ;;  %vm420_vm15 = vcmp.eq.f32.partialorder %v419_v62, 8.507059e+37 }
 0x348   :  { %v367_v63 = vmul.f32 %v1402_v54, %v366_v58 }
 0x34a   :  { %v368_v6 = vadd.f32 %v1402_v54, %v367_v63 }
 0x34b   :  { %v1404_v56 = vpop.eup %1403 }
 0x34c   :  { %v411_v57 = vmul.f32 %v1404_v56, %v409_v53  ;;  %vm416_vm12 = vweird.f32 %v1404_v56  ;;  %v372_v15 = vsel %vm371_vm3, %v1402_v54, %v368_v6  ;;  %v499_v54 = vld [vmem:[#allocation2 + $0x10] sm:$0x30] }
 0x34d   :  { %vm417_vm14 = vmor %vm415_vm13, %vm416_vm12  ;;  %v377_v19 = vsel %vm374_vm4, %v376_v16, %v372_v15 }
 0x34e   :  { %v412_v59 = vsub.f32 1.0, %v411_v57  ;;  %v392_v31 = vsub.f32 1.0, %v377_v19  ;;  %v400_v34 = vmul.f32 %v398_v0, %v377_v19 }
 0x350   :  { %v413_v61 = vmul.f32 %v1404_v56, %v412_v59 }
 0x352   :  { %v414_v1 = vadd.f32 %v1404_v56, %v413_v61 }
 0x354   :  { %v418_v3 = vsel %vm417_vm14, %v1404_v56, %v414_v1 }
 0x355   :  { %v423_v7 = vsel %vm420_vm15, %v422_v2, %v418_v3  ;;  %vm600_vm15 = vcmask 519426  }
 0x356   :  { %v447_v12 = vmul.f32 %v445_v4, %v423_v7  ;;  %v438_v39 = vsub.f32 1.0, %v423_v7 }
 0x35d   :  { %v383_v17 = vpop.permute.xlu0 %382 }
 0x35e   :  { %v385_v21 = vmul.f32 %v383_v17, %v377_v19 }
 0x360   :  { %387 = vrot.lane.b32.xlu1 %v385_v21, %s1534_s9 }
 0x394   :  { %v429_v23 = vpop.permute.xlu2 %428 }
 0x395   :  { %v431_v24 = vmul.f32 %v429_v23, %v423_v7 }
 0x397   :  { %433 = vrot.lane.b32.xlu0 %v431_v24, %s1534_s9 }
 0x3d2   :  { %v388_v25 = vpop.permute.xlu1 %387 }
 0x3d3   :  { %v390_v26 = vadd.f32 %v388_v25, %v354_v41 }
 0x3d5   :  { %1405 = vtanh.f32 %v390_v26 }
 0x3db   :  { %v1406_v27 = vpop.eup %1405 }
 0x3dc   :  { %394 = vrot.lane.b32.xlu1 %v1406_v27, %s1537_s15 }
 0x409   :  { %v434_v28 = vpop.permute.xlu0 %433 }
 0x40a   :  { %v436_v29 = vadd.f32 %v434_v28, %v355_v47 }
 0x40c   :  { %1407 = vtanh.f32 %v436_v29 }
 0x412   :  { %v1408_v30 = vpop.eup %1407 }
 0x413   :  { %440 = vrot.lane.b32.xlu2 %v1408_v30, %s1537_s15 }
 0x44e   :  { %v395_v33 = vpop.permute.xlu1 %394 }
 0x44f   :  { %v397_v35 = vmul.f32 %v395_v33, %v392_v31 }
 0x451   :  { %v1708_v36 = vadd.f32 %v400_v34, %v397_v35 }
 0x453   :  { %v457_v37 = vpack.c.bf16 %v1708_v36, %v1708_v36 }
 0x455   :  { %v459_v38 = vrot.slane %v457_v37, 1 }
 0x457   :  { %460 = vrot.lane.b32.xlu0 %v459_v38, %s1537_s15 }
 0x46d   :  { %v441_v40 = vpop.permute.xlu2 %440 }
 0x46e   :  { %v443_v41 = vmul.f32 %v441_v40, %v438_v39 }
 0x470   :  { %v1713_v42 = vadd.f32 %v447_v12, %v443_v41 }
 0x472   :  { %v478_v43 = vpack.c.bf16 %v1713_v42, %v1713_v42  ;;  %456 = vst.msk [vmem:[%s1935_s6 + $0x8] sm:$0x30] %vm455_vm5, %v1713_v42 }
 0x474   :  { %v480_v44 = vrot.slane %v478_v43, 2  ;;  %v543_v43 = vrot.slane %v1708_v36, 6 }
 0x476   :  { %481 = vrot.lane.b32.xlu1 %v480_v44, %s1537_s15 }
 0x4c9   :  { %v461_v45 = vpop.permute.xlu0 %460 }
 0x4ca   :  { %1347 = vmatmul.msk.bf16.vlgmr.msra.gmra.mxu2 %vm159_vm2, %v461_v45 }
 0x4cb   :  { %1037 = vmatpush.bf16.msra.mxu2 %v1603_v5 }
 0x4cf   :  { %1038 = vmatpush.bf16.msra.mxu2 %v1615_v10 }
 0x4e8   :  { %v482_v46 = vpop.permute.xlu1 %481 }
 0x4e9   :  { %1348 = vmatmul.msk.bf16.vlgmr.msra.gmra.mxu3 %vm159_vm2, %v482_v46 }
 0x4ea   :  { %1058 = vmatpush.bf16.msra.mxu3 %v1612_v9 }
 0x4ee   :  { %1059 = vmatpush.bf16.msra.mxu3 %v1623_v11 }
 0x54d   :  { %v474_v47 = vpop.f32.mrf.mxu2 }
 0x54e   :  { %v524_v13 = vadd.f32 %v474_v47, %v1654_v22  ;;  %v502_v53 = vrot.slane %v474_v47, 4 }
 0x550   :  { %v526_v18 = vrot.slane %v524_v13, 4  ;;  %v504_v55 = vadd.f32 %v502_v53, %v499_v54 }
 0x552   :  { %527 = vrot.lane.b32.xlu2 %v526_v18, %s1534_s9  ;;  %v1349_v56 = vmul.f32 -1.442695, %v504_v55 }
 0x554   :  { %1409 = vpow2.f32 %v1349_v56 }
 0x555   :  { %v476_v48 = vpop.f32.mrf.mxu2 }
 0x55a   :  { %v1410_v57 = vpop.eup %1409 }
 0x55b   :  { %v508_v58 = vadd.f32 1.0, %v1410_v57 }
 0x55d   :  { %1411 = vrcp.f32 %v508_v58  ;;  %v520_v1 = vand.u32 2147483648, %v508_v58  ;;  %vm514_vm7 = vweird.f32 %v508_v58  ;;  %v518_v2 = vand.u32 2147483647, %v508_v58 }
 0x55f   :  { %v521_v4 = vor.u32 1.1754944e-38, %v520_v1  ;;  %vm519_vm9 = vcmp.eq.f32.partialorder %v518_v2, 8.507059e+37 }
 0x563   :  { %v1412_v59 = vpop.eup %1411 }
 0x564   :  { %v510_v60 = vmul.f32 %v1412_v59, %v508_v58  ;;  %vm515_vm6 = vweird.f32 %v1412_v59 }
 0x565   :  { %vm516_vm8 = vmor %vm514_vm7, %vm515_vm6 }
 0x566   :  { %v511_v61 = vsub.f32 1.0, %v510_v60 }
 0x568   :  { %v512_v62 = vmul.f32 %v1412_v59, %v511_v61 }
 0x56a   :  { %v513_v63 = vadd.f32 %v1412_v59, %v512_v62  ;;  %v645_v62 = vld [vmem:[#allocation2 + $0x8] sm:$0x3] }
 0x56c   :  { %v495_v49 = vpop.f32.mrf.mxu3  ;;  %v517_v3 = vsel %vm516_vm8, %v1412_v59, %v513_v63 }
 0x56d   :  { %v570_v50 = vadd.f32 %v495_v49, %v1658_v32  ;;  %v522_v7 = vsel %vm519_vm9, %v521_v4, %v517_v3  ;;  %v548_v12 = vrot.slane %v495_v49, 6  ;;  %v590_v49 = vrot.slane %v1713_v42, 2  ;;  %v644_v3 = vld [vmem:[#allocation2 + $0x10] sm:$0xc0] }
 0x56e   :  { %v537_v41 = vsub.f32 1.0, %v522_v7  ;;  %v545_v45 = vmul.f32 %v543_v43, %v522_v7 }
 0x56f   :  { %v572_v51 = vrot.slane %v570_v50, 6  ;;  %v550_v15 = vadd.f32 %v548_v12, %v500_v14 }
 0x571   :  { %573 = vrot.lane.b32.xlu1 %v572_v51, %s1534_s9  ;;  %v1350_v16 = vmul.f32 -1.442695, %v550_v15 }
 0x573   :  { %1413 = vpow2.f32 %v1350_v16 }
 0x574   :  { %v497_v52 = vpop.f32.mrf.mxu3 }
 0x579   :  { %v1414_v17 = vpop.eup %1413 }
 0x57a   :  { %v554_v19 = vadd.f32 1.0, %v1414_v17 }
 0x57c   :  { %1415 = vrcp.f32 %v554_v19  ;;  %v566_v27 = vand.u32 2147483648, %v554_v19  ;;  %vm560_vm12 = vweird.f32 %v554_v19  ;;  %v564_v28 = vand.u32 2147483647, %v554_v19 }
 0x57e   :  { %v567_v30 = vor.u32 1.1754944e-38, %v566_v27  ;;  %vm565_vm14 = vcmp.eq.f32.partialorder %v564_v28, 8.507059e+37 }
 0x582   :  { %v1416_v21 = vpop.eup %1415 }
 0x583   :  { %v556_v23 = vmul.f32 %v1416_v21, %v554_v19  ;;  %vm561_vm10 = vweird.f32 %v1416_v21 }
 0x584   :  { %vm562_vm13 = vmor %vm560_vm12, %vm561_vm10  ;;  %vm741_vm10 = vcmask 517376  }
 0x585   :  { %v557_v24 = vsub.f32 1.0, %v556_v23 }
 0x587   :  { %v558_v25 = vmul.f32 %v1416_v21, %v557_v24 }
 0x589   :  { %v559_v26 = vadd.f32 %v1416_v21, %v558_v25 }
 0x58b   :  { %v563_v29 = vsel %vm562_vm13, %v1416_v21, %v559_v26 }
 0x58c   :  { %v568_v0 = vsel %vm565_vm14, %v567_v30, %v563_v29 }
 0x58d   :  { %v583_v48 = vsub.f32 1.0, %v568_v0  ;;  %v592_v51 = vmul.f32 %v590_v49, %v568_v0 }
 0x5ac   :  { %v528_v6 = vpop.permute.xlu2 %527 }
 0x5ad   :  { %v530_v8 = vmul.f32 %v528_v6, %v522_v7 }
 0x5af   :  { %532 = vrot.lane.b32.xlu0 %v530_v8, %s1534_s9 }
 0x5e3   :  { %v574_v31 = vpop.permute.xlu1 %573 }
 0x5e4   :  { %v576_v33 = vmul.f32 %v574_v31, %v568_v0 }
 0x5e6   :  { %578 = vrot.lane.b32.xlu2 %v576_v33, %s1534_s9 }
 0x621   :  { %v533_v34 = vpop.permute.xlu0 %532 }
 0x622   :  { %v535_v35 = vadd.f32 %v533_v34, %v499_v54 }
 0x624   :  { %1417 = vtanh.f32 %v535_v35 }
 0x62a   :  { %v1418_v37 = vpop.eup %1417 }
 0x62b   :  { %539 = vrot.lane.b32.xlu0 %v1418_v37, %s1537_s15 }
 0x640   :  { %v579_v38 = vpop.permute.xlu2 %578 }
 0x641   :  { %v581_v39 = vadd.f32 %v579_v38, %v500_v14 }
 0x643   :  { %1419 = vtanh.f32 %v581_v39 }
 0x649   :  { %v1420_v40 = vpop.eup %1419 }
 0x64a   :  { %585 = vrot.lane.b32.xlu1 %v1420_v40, %s1537_s15 }
 0x69d   :  { %v540_v44 = vpop.permute.xlu0 %539 }
 0x69e   :  { %v542_v46 = vmul.f32 %v540_v44, %v537_v41 }
 0x6a0   :  { %v1738_v47 = vadd.f32 %v545_v45, %v542_v46 }
 0x6a2   :  { %v602_v13 = vpack.c.bf16 %v1738_v47, %v1738_v47 }
 0x6a4   :  { %v604_v18 = vrot.slane %v602_v13, 2 }
 0x6a6   :  { %605 = vrot.lane.b32.xlu2 %v604_v18, %s1537_s15 }
 0x6bc   :  { %v586_v50 = vpop.permute.xlu1 %585 }
 0x6bd   :  { %v588_v52 = vmul.f32 %v586_v50, %v583_v48  ;;  %v688_v50 = vrot.slane %v1738_v47, 6 }
 0x6bf   :  { %v593_v53 = vadd.f32 %v592_v51, %v588_v52 }
 0x6c1   :  { %v623_v54 = vpack.c.bf16 %v593_v53, %v593_v53  ;;  %601 = vst.msk [vmem:[%s1935_s6 + $0x8] sm:$0xc] %vm600_vm15, %v593_v53  ;;  %v731_v24 = vrot.slane %v593_v53, 2 }
 0x6c3   :  { %v625_v55 = vrot.slane %v623_v54, 1 }
 0x6c5   :  { %626 = vrot.lane.b32.xlu0 %v625_v55, %s1537_s15 }
 0x700   :  { %v606_v56 = vpop.permute.xlu2 %605 }
 0x701   :  { %1351 = vmatmul.msk.bf16.vlgmr.msra.gmra.mxu0 %vm159_vm2, %v606_v56 }
 0x702   :  { %1180 = vmatpush.bf16.msra.mxu0 %v1603_v5 }
 0x706   :  { %1181 = vmatpush.bf16.msra.mxu0 %v1615_v10 }
 0x737   :  { %v627_v42 = vpop.permute.xlu0 %626 }
 0x738   :  { %1352 = vmatmul.msk.bf16.vlgmr.msra.gmra.mxu1 %vm159_vm2, %v627_v42 }
 0x739   :  { %1201 = vmatpush.bf16.msra.mxu1 %v1612_v9 }
 0x73d   :  { %1202 = vmatpush.bf16.msra.mxu1 %v1623_v11 }
 0x77e   :  { %v619_v57 = vpop.f32.mrf.mxu0 }
 0x77f   :  { %v669_v58 = vadd.f32 %v619_v57, %v1654_v22  ;;  %v647_v9 = vrot.slane %v619_v57, 2 }
 0x781   :  { %v671_v59 = vrot.slane %v669_v58, 2  ;;  %v649_v4 = vadd.f32 %v647_v9, %v644_v3 }
 0x783   :  { %672 = vrot.lane.b32.xlu1 %v671_v59, %s1534_s9  ;;  %v1353_v6 = vmul.f32 -1.442695, %v649_v4 }
 0x786   :  { %v621_v60 = vpop.f32.mrf.mxu0 }
 0x7b5   :  { %v640_v61 = vpop.f32.mrf.mxu1 }
 0x7b6   :  { %v692_v63 = vadd.f32 %v645_v62, %v640_v61  ;;  %v712_v5 = vadd.f32 %v640_v61, %v1658_v32 }
 0x7b8   :  { %v1354_v10 = vmul.f32 -1.442695, %v692_v63  ;;  %714 = vrot.lane.b32.xlu2 %v712_v5, %s1534_s9 }
 0x7ba   :  { %1421 = vpow2.f32 %v1354_v10 }
 0x7bd   :  { %v642_v1 = vpop.f32.mrf.mxu1 }
 0x7c0   :  { %v1422_v2 = vpop.eup %1421 }
 0x7c1   :  { %v696_v11 = vadd.f32 1.0, %v1422_v2 }
 0x7c3   :  { %1423 = vrcp.f32 %v696_v11  ;;  %v708_v14 = vand.u32 2147483648, %v696_v11  ;;  %v706_v16 = vand.u32 2147483647, %v696_v11  ;;  %vm702_vm1 = vweird.f32 %v696_v11 }
 0x7c4   :  { %1425 = vpow2.f32 %v1353_v6 }
 0x7c5   :  { %v709_v21 = vor.u32 1.1754944e-38, %v708_v14  ;;  %vm707_vm4 = vcmp.eq.f32.partialorder %v706_v16, 8.507059e+37 }
 0x7c9   :  { %v1424_v7 = vpop.eup %1423 }
 0x7ca   :  { %v698_v8 = vmul.f32 %v1424_v7, %v696_v11  ;;  %vm703_vm0 = vweird.f32 %v1424_v7  ;;  %v1426_v19 = vpop.eup %1425 }
 0x7cb   :  { %vm704_vm3 = vmor %vm702_vm1, %vm703_vm0  ;;  %v653_v26 = vadd.f32 1.0, %v1426_v19 }
 0x7cc   :  { %v699_v12 = vsub.f32 1.0, %v698_v8 }
 0x7cd   :  { %1427 = vrcp.f32 %v653_v26  ;;  %v665_v33 = vand.u32 2147483648, %v653_v26  ;;  %vm659_vm7 = vweird.f32 %v653_v26  ;;  %v663_v34 = vand.u32 2147483647, %v653_v26 }
 0x7ce   :  { %v700_v15 = vmul.f32 %v1424_v7, %v699_v12 }
 0x7cf   :  { %v666_v37 = vor.u32 1.1754944e-38, %v665_v33  ;;  %vm664_vm9 = vcmp.eq.f32.partialorder %v663_v34, 8.507059e+37 }
 0x7d0   :  { %v701_v17 = vadd.f32 %v1424_v7, %v700_v15  ;;  %v785_v15 = vld [vmem:[#allocation2] sm:$0xc0] }
 0x7d2   :  { %v705_v23 = vsel %vm704_vm3, %v1424_v7, %v701_v17 }
 0x7d3   :  { %v710_v25 = vsel %vm707_vm4, %v709_v21, %v705_v23  ;;  %v1428_v28 = vpop.eup %1427 }
 0x7d4   :  { %v733_v27 = vmul.f32 %v731_v24, %v710_v25  ;;  %v655_v29 = vmul.f32 %v1428_v28, %v653_v26  ;;  %vm660_vm6 = vweird.f32 %v1428_v28  ;;  %v724_v42 = vsub.f32 1.0, %v710_v25 }
 0x7d5   :  { %vm661_vm8 = vmor %vm659_vm7, %vm660_vm6 }
 0x7d6   :  { %v656_v30 = vsub.f32 1.0, %v655_v29 }
 0x7d8   :  { %v657_v31 = vmul.f32 %v1428_v28, %v656_v30 }
 0x7da   :  { %v658_v0 = vadd.f32 %v1428_v28, %v657_v31 }
 0x7dc   :  { %v662_v35 = vsel %vm661_vm8, %v1428_v28, %v658_v0 }
 0x7dd   :  { %v667_v39 = vsel %vm664_vm9, %v666_v37, %v662_v35 }
 0x7de   :  { %v682_v49 = vsub.f32 1.0, %v667_v39  ;;  %v690_v52 = vmul.f32 %v688_v50, %v667_v39 }
 0x7f5   :  { %v673_v38 = vpop.permute.xlu1 %672 }
 0x7f6   :  { %v675_v40 = vmul.f32 %v673_v38, %v667_v39 }
 0x7f8   :  { %677 = vrot.lane.b32.xlu0 %v675_v40, %s1534_s9 }
 0x812   :  { %v715_v41 = vpop.permute.xlu2 %714 }
 0x813   :  { %v717_v43 = vmul.f32 %v715_v41, %v710_v25 }
 0x815   :  { %719 = vrot.lane.b32.xlu1 %v717_v43, %s1534_s9 }
 0x86a   :  { %v678_v44 = vpop.permute.xlu0 %677 }
 0x86b   :  { %v680_v45 = vadd.f32 %v678_v44, %v644_v3  ;;  %v784_v3 = vld [vmem:[#allocation2 + $0x18] sm:$0x3] }
 0x86d   :  { %1429 = vtanh.f32 %v680_v45 }
 0x873   :  { %v1430_v46 = vpop.eup %1429 }
 0x874   :  { %684 = vrot.lane.b32.xlu2 %v1430_v46, %s1537_s15 }
 0x887   :  { %v720_v13 = vpop.permute.xlu1 %719 }
 0x888   :  { %v722_v18 = vadd.f32 %v720_v13, %v645_v62 }
 0x88a   :  { %1431 = vtanh.f32 %v722_v18 }
 0x890   :  { %v1432_v48 = vpop.eup %1431 }
 0x891   :  { %726 = vrot.lane.b32.xlu0 %v1432_v48, %s1537_s15 }
 0x8ce   :  { %v685_v51 = vpop.permute.xlu2 %684 }
 0x8cf   :  { %v687_v53 = vmul.f32 %v685_v51, %v682_v49 }
 0x8d1   :  { %v1764_v54 = vadd.f32 %v690_v52, %v687_v53 }
 0x8d3   :  { %v743_v55 = vpack.c.bf16 %v1764_v54, %v1764_v54 }
 0x8d5   :  { %v745_v56 = vrot.slane %v743_v55, 3  ;;  %v824_v55 = vrot.slane %v1764_v54, 6 }
 0x8d7   :  { %746 = vrot.lane.b32.xlu1 %v745_v56, %s1537_s15 }
 0x903   :  { %v727_v57 = vpop.permute.xlu0 %726 }
 0x904   :  { %v729_v58 = vmul.f32 %v727_v57, %v724_v42 }
 0x906   :  { %v1769_v59 = vadd.f32 %v733_v27, %v729_v58 }
 0x908   :  { %v764_v60 = vpack.c.bf16 %v1769_v59, %v1769_v59  ;;  %742 = vst.msk [vmem:[%s1935_s6 + $0x8] sm:$0x3] %vm741_vm10, %v1769_v59 }
 0x90a   :  { %766 = vrot.lane.b32.xlu2 %v764_v60, %s1537_s15 }
 0x949   :  { %v747_v61 = vpop.permute.xlu1 %746 }
 0x94a   :  { %1355 = vmatmul.msk.bf16.vlgmr.msrb.gmra.mxu2 %vm159_vm2, %v747_v61 }
 0x964   :  { %v767_v62 = vpop.permute.xlu2 %766 }
 0x965   :  { %1356 = vmatmul.msk.bf16.vlgmr.msrb.gmra.mxu3 %vm159_vm2, %v767_v62  ;;  %v871_v62 = vrot.slane %v1769_v59, 2 }
 0x9cd   :  { %v760_v63 = vpop.f32.mrf.mxu2 }
 0x9ce   :  { %v806_v5 = vadd.f32 %v760_v63, %v1654_v22  ;;  %v786_v4 = vadd.f32 %v784_v3, %v760_v63 }
 0x9d0   :  { %808 = vrot.lane.b32.xlu0 %v806_v5, %s1534_s9  ;;  %v1357_v6 = vmul.f32 -1.442695, %v786_v4 }
 0x9d2   :  { %1433 = vpow2.f32 %v1357_v6 }
 0x9d5   :  { %v762_v10 = vpop.f32.mrf.mxu2 }
 0x9d8   :  { %v1434_v7 = vpop.eup %1433 }
 0x9d9   :  { %v790_v8 = vadd.f32 1.0, %v1434_v7 }
 0x9db   :  { %1435 = vrcp.f32 %v790_v8  ;;  %v802_v25 = vand.u32 2147483648, %v790_v8  ;;  %vm796_vm13 = vweird.f32 %v790_v8  ;;  %v800_v27 = vand.u32 2147483647, %v790_v8 }
 0x9dd   :  { %v803_v30 = vor.u32 1.1754944e-38, %v802_v25  ;;  %vm801_vm0 = vcmp.eq.f32.partialorder %v800_v27, 8.507059e+37 }
 0x9e1   :  { %v1436_v14 = vpop.eup %1435 }
 0x9e2   :  { %v792_v17 = vmul.f32 %v1436_v14, %v790_v8  ;;  %vm797_vm12 = vweird.f32 %v1436_v14 }
 0x9e3   :  { %vm798_vm14 = vmor %vm796_vm13, %vm797_vm12 }
 0x9e4   :  { %v793_v21 = vsub.f32 1.0, %v792_v17  ;;  %v922_v17 = vld [vmem:[#allocation2 + $0x18] sm:$0xc] }
 0x9e6   :  { %v794_v23 = vmul.f32 %v1436_v14, %v793_v21 }
 0x9e8   :  { %v780_v1 = vpop.f32.mrf.mxu3  ;;  %v795_v24 = vadd.f32 %v1436_v14, %v794_v23 }
 0x9e9   :  { %v851_v9 = vadd.f32 %v780_v1, %v1658_v32  ;;  %v829_v12 = vrot.slane %v780_v1, 2 }
 0x9ea   :  { %v799_v28 = vsel %vm798_vm14, %v1436_v14, %v795_v24 }
 0x9eb   :  { %v853_v2 = vrot.slane %v851_v9, 2  ;;  %v831_v16 = vadd.f32 %v829_v12, %v785_v15  ;;  %v804_v0 = vsel %vm801_vm0, %v803_v30, %v799_v28 }
 0x9ec   :  { %v818_v53 = vsub.f32 1.0, %v804_v0  ;;  %v826_v42 = vmul.f32 %v824_v55, %v804_v0 }
 0x9ed   :  { %854 = vrot.lane.b32.xlu1 %v853_v2, %s1534_s9  ;;  %v1358_v19 = vmul.f32 -1.442695, %v831_v16 }
 0x9ef   :  { %1437 = vpow2.f32 %v1358_v19 }
 0x9f0   :  { %v782_v11 = vpop.f32.mrf.mxu3 }
 0x9f5   :  { %v1438_v26 = vpop.eup %1437 }
 0x9f6   :  { %v835_v29 = vadd.f32 1.0, %v1438_v26 }
 0x9f8   :  { %1439 = vrcp.f32 %v835_v29  ;;  %v847_v40 = vand.u32 2147483648, %v835_v29  ;;  %vm841_vm3 = vweird.f32 %v835_v29  ;;  %v845_v41 = vand.u32 2147483647, %v835_v29 }
 0x9fa   :  { %v848_v44 = vor.u32 1.1754944e-38, %v847_v40  ;;  %vm846_vm6 = vcmp.eq.f32.partialorder %v845_v41, 8.507059e+37 }
 0x9fe   :  { %v1440_v34 = vpop.eup %1439 }
 0x9ff   :  { %v837_v35 = vmul.f32 %v1440_v34, %v835_v29  ;;  %vm842_vm1 = vweird.f32 %v1440_v34 }
 0xa00   :  { %vm843_vm4 = vmor %vm841_vm3, %vm842_vm1 }
 0xa01   :  { %v838_v37 = vsub.f32 1.0, %v837_v35 }
 0xa03   :  { %v839_v38 = vmul.f32 %v1440_v34, %v838_v37 }
 0xa05   :  { %v840_v39 = vadd.f32 %v1440_v34, %v839_v38 }
 0xa07   :  { %v844_v43 = vsel %vm843_vm4, %v1440_v34, %v840_v39  ;;  %v923_v39 = vld [vmem:[#allocation2] sm:$0x30] }
 0xa08   :  { %v849_v45 = vsel %vm846_vm6, %v848_v44, %v844_v43 }
 0xa09   :  { %v864_v61 = vsub.f32 1.0, %v849_v45  ;;  %v873_v5 = vmul.f32 %v871_v62, %v849_v45 }
 0xa42   :  { %v809_v31 = vpop.permute.xlu0 %808 }
 0xa43   :  { %v811_v33 = vmul.f32 %v809_v31, %v804_v0 }
 0xa45   :  { %813 = vrot.lane.b32.xlu2 %v811_v33, %s1534_s9 }
 0xa5f   :  { %v855_v46 = vpop.permute.xlu1 %854 }
 0xa60   :  { %v857_v13 = vmul.f32 %v855_v46, %v849_v45 }
 0xa62   :  { %859 = vrot.lane.b32.xlu0 %v857_v13, %s1534_s9 }
 0xa9f   :  { %v814_v18 = vpop.permute.xlu2 %813 }
 0xaa0   :  { %v816_v48 = vadd.f32 %v814_v18, %v784_v3 }
 0xaa2   :  { %1441 = vtanh.f32 %v816_v48 }
 0xaa8   :  { %v1442_v49 = vpop.eup %1441 }
 0xaa9   :  { %820 = vrot.lane.b32.xlu1 %v1442_v49, %s1537_s15 }
 0xad4   :  { %v860_v50 = vpop.permute.xlu0 %859 }
 0xad5   :  { %v862_v51 = vadd.f32 %v860_v50, %v785_v15 }
 0xad7   :  { %1443 = vtanh.f32 %v862_v51 }
 0xadd   :  { %v1444_v52 = vpop.eup %1443 }
 0xade   :  { %866 = vrot.lane.b32.xlu2 %v1444_v52, %s1537_s15 }
 0xb1b   :  { %v821_v56 = vpop.permute.xlu1 %820 }
 0xb1c   :  { %v823_v57 = vmul.f32 %v821_v56, %v818_v53 }
 0xb1e   :  { %v1790_v58 = vadd.f32 %v826_v42, %v823_v57 }
 0xb20   :  { %v881_v60 = vpack.c.bf16 %v1790_v58, %v1790_v58 }
 0xb22   :  { %883 = vrot.lane.b32.xlu0 %v881_v60, %s1537_s15 }
 0xb38   :  { %v867_v63 = vpop.permute.xlu2 %866 }
 0xb39   :  { %v869_v10 = vmul.f32 %v867_v63, %v864_v61 }
 0xb3b   :  { %v1796_v1 = vadd.f32 %v873_v5, %v869_v10  ;;  %v966_v10 = vrot.slane %v1790_v58, 6 }
 0xb3d   :  { %v901_v9 = vpack.c.bf16 %v1796_v1, %v1796_v1 }
 0xb3f   :  { %v903_v2 = vrot.slane %v901_v9, 3 }
 0xb41   :  { %904 = vrot.lane.b32.xlu1 %v903_v2, %s1537_s15 }
 0xb94   :  { %v884_v11 = vpop.permute.xlu0 %883 }
 0xb95   :  { %1359 = vmatmul.msk.bf16.vlgmr.msrb.gmra.mxu0 %vm159_vm2, %v884_v11 }
 0xbb3   :  { %v905_v3 = vpop.permute.xlu1 %904 }
 0xbb4   :  { %1360 = vmatmul.msk.bf16.vlgmr.msrb.gmra.mxu1 %vm159_vm2, %v905_v3 }
 0xc12   :  { %v897_v4 = vpop.f32.mrf.mxu0 }
 0xc13   :  { %v947_v59 = vadd.f32 %v897_v4, %v1654_v22  ;;  %v925_v16 = vrot.slane %v897_v4, 6 }
 0xc15   :  { %v949_v6 = vrot.slane %v947_v59, 6  ;;  %v927_v19 = vadd.f32 %v925_v16, %v922_v17 }
 0xc17   :  { %950 = vrot.lane.b32.xlu2 %v949_v6, %s1534_s9  ;;  %v1361_v21 = vmul.f32 -1.442695, %v927_v19 }
 0xc19   :  { %1445 = vpow2.f32 %v1361_v21 }
 0xc1a   :  { %v899_v7 = vpop.f32.mrf.mxu0 }
 0xc1b   :  { %v1013_v7 = vrot.slane %v1796_v1, 2 }
 0xc1f   :  { %v1446_v23 = vpop.eup %1445 }
 0xc20   :  { %v931_v24 = vadd.f32 1.0, %v1446_v23 }
 0xc22   :  { %1447 = vrcp.f32 %v931_v24  ;;  %v943_v30 = vand.u32 2147483648, %v931_v24  ;;  %vm937_vm8 = vweird.f32 %v931_v24  ;;  %v941_v31 = vand.u32 2147483647, %v931_v24 }
 0xc24   :  { %v944_v33 = vor.u32 1.1754944e-38, %v943_v30  ;;  %vm942_vm12 = vcmp.eq.f32.partialorder %v941_v31, 8.507059e+37 }
 0xc28   :  { %v1448_v25 = vpop.eup %1447 }
 0xc29   :  { %v933_v26 = vmul.f32 %v1448_v25, %v931_v24  ;;  %vm938_vm7 = vweird.f32 %v1448_v25 }
 0xc2a   :  { %vm939_vm9 = vmor %vm937_vm8, %vm938_vm7 }
 0xc2b   :  { %v934_v27 = vsub.f32 1.0, %v933_v26 }
 0xc2d   :  { %v935_v28 = vmul.f32 %v1448_v25, %v934_v27 }
 0xc2f   :  { %v936_v29 = vadd.f32 %v1448_v25, %v935_v28 }
 0xc31   :  { %v918_v8 = vpop.f32.mrf.mxu1  ;;  %v940_v0 = vsel %vm939_vm9, %v1448_v25, %v936_v29 }
 0xc32   :  { %v993_v12 = vadd.f32 %v918_v8, %v1658_v32  ;;  %v945_v35 = vsel %vm942_vm12, %v944_v33, %v940_v0  ;;  %v971_v38 = vrot.slane %v918_v8, 4  ;;  %v1065_v0 = vld [vmem:[#allocation2 + $0x18] sm:$0x30] }
 0xc33   :  { %v960_v5 = vsub.f32 1.0, %v945_v35  ;;  %v968_v2 = vmul.f32 %v966_v10, %v945_v35 }
 0xc34   :  { %v995_v14 = vrot.slane %v993_v12, 4  ;;  %v973_v40 = vadd.f32 %v971_v38, %v923_v39 }
 0xc36   :  { %996 = vrot.lane.b32.xlu1 %v995_v14, %s1534_s9  ;;  %v1362_v41 = vmul.f32 -1.442695, %v973_v40 }
 0xc38   :  { %1449 = vpow2.f32 %v1362_v41 }
 0xc39   :  { %v920_v15 = vpop.f32.mrf.mxu1 }
 0xc3e   :  { %v1450_v43 = vpop.eup %1449 }
 0xc3f   :  { %v977_v44 = vadd.f32 1.0, %v1450_v43 }
 0xc41   :  { %1451 = vrcp.f32 %v977_v44  ;;  %v989_v49 = vand.u32 2147483648, %v977_v44  ;;  %vm983_vm14 = vweird.f32 %v977_v44  ;;  %v987_v50 = vand.u32 2147483647, %v977_v44 }
 0xc43   :  { %v990_v52 = vor.u32 1.1754944e-38, %v989_v49  ;;  %vm988_vm1 = vcmp.eq.f32.partialorder %v987_v50, 8.507059e+37 }
 0xc47   :  { %v1452_v45 = vpop.eup %1451 }
 0xc48   :  { %v979_v46 = vmul.f32 %v1452_v45, %v977_v44  ;;  %vm984_vm13 = vweird.f32 %v1452_v45 }
 0xc49   :  { %vm985_vm0 = vmor %vm983_vm14, %vm984_vm13 }
 0xc4a   :  { %v980_v13 = vsub.f32 1.0, %v979_v46 }
 0xc4c   :  { %v981_v18 = vmul.f32 %v1452_v45, %v980_v13 }
 0xc4e   :  { %v982_v48 = vadd.f32 %v1452_v45, %v981_v18 }
 0xc50   :  { %v986_v51 = vsel %vm985_vm0, %v1452_v45, %v982_v48 }
 0xc51   :  { %v991_v55 = vsel %vm988_vm1, %v990_v52, %v986_v51  ;;  %v1066_v51 = vld [vmem:[#allocation2] sm:$0xc] }
 0xc52   :  { %v1006_v6 = vsub.f32 1.0, %v991_v55  ;;  %v1015_v12 = vmul.f32 %v1013_v7, %v991_v55 }
 0xc71   :  { %v951_v34 = vpop.permute.xlu2 %950 }
 0xc72   :  { %v953_v37 = vmul.f32 %v951_v34, %v945_v35 }
 0xc74   :  { %955 = vrot.lane.b32.xlu0 %v953_v37, %s1534_s9 }
 0xca8   :  { %v997_v53 = vpop.permute.xlu1 %996 }
 0xca9   :  { %v999_v56 = vmul.f32 %v997_v53, %v991_v55 }
 0xcab   :  { %1001 = vrot.lane.b32.xlu2 %v999_v56, %s1534_s9 }
 0xce6   :  { %v956_v42 = vpop.permute.xlu0 %955 }
 0xce7   :  { %v958_v57 = vadd.f32 %v956_v42, %v922_v17 }
 0xce9   :  { %1453 = vtanh.f32 %v958_v57 }
 0xcef   :  { %v1454_v60 = vpop.eup %1453 }
 0xcf0   :  { %962 = vrot.lane.b32.xlu0 %v1454_v60, %s1537_s15 }
 0xd05   :  { %v1002_v61 = vpop.permute.xlu2 %1001 }
 0xd06   :  { %v1004_v62 = vadd.f32 %v1002_v61, %v923_v39 }
 0xd08   :  { %1455 = vtanh.f32 %v1004_v62 }
 0xd0e   :  { %v1456_v63 = vpop.eup %1455 }
 0xd0f   :  { %1008 = vrot.lane.b32.xlu1 %v1456_v63, %s1537_s15 }
 0xd62   :  { %v963_v9 = vpop.permute.xlu0 %962 }
 0xd63   :  { %v965_v11 = vmul.f32 %v963_v9, %v960_v5 }
 0xd65   :  { %v1812_v3 = vadd.f32 %v968_v2, %v965_v11 }
 0xd67   :  { %v1023_v4 = vpack.c.bf16 %v1812_v3, %v1812_v3 }
 0xd69   :  { %v1025_v59 = vrot.slane %v1023_v4, 1 }
 0xd6b   :  { %1026 = vrot.lane.b32.xlu2 %v1025_v59, %s1537_s15 }
 0xd81   :  { %v1009_v8 = vpop.permute.xlu1 %1008 }
 0xd82   :  { %v1011_v14 = vmul.f32 %v1009_v8, %v1006_v6 }
 0xd84   :  { %v1818_v15 = vadd.f32 %v1015_v12, %v1011_v14 }
 0xd86   :  { %v1044_v16 = vpack.c.bf16 %v1818_v15, %v1818_v15 }
 0xd88   :  { %v1046_v17 = vrot.slane %v1044_v16, 2 }
 0xd8a   :  { %1047 = vrot.lane.b32.xlu0 %v1046_v17, %s1537_s15  ;;  %v1109_v17 = vrot.slane %v1812_v3, 6 }
 0xdc5   :  { %v1027_v19 = vpop.permute.xlu2 %1026 }
 0xdc6   :  { %1363 = vmatmul.msk.bf16.vlgmr.msra.gmra.mxu2 %vm159_vm2, %v1027_v19 }
 0xdfc   :  { %v1048_v21 = vpop.permute.xlu0 %1047 }
 0xdfd   :  { %1364 = vmatmul.msk.bf16.vlgmr.msra.gmra.mxu3 %vm159_vm2, %v1048_v21 }
 0xe49   :  { %v1040_v23 = vpop.f32.mrf.mxu2 }
 0xe4a   :  { %v1090_v24 = vadd.f32 %v1040_v23, %v1654_v22  ;;  %v1068_v31 = vrot.slane %v1040_v23, 4 }
 0xe4c   :  { %v1092_v25 = vrot.slane %v1090_v24, 4  ;;  %v1070_v33 = vadd.f32 %v1068_v31, %v1065_v0 }
 0xe4e   :  { %1093 = vrot.lane.b32.xlu1 %v1092_v25, %s1534_s9  ;;  %v1365_v34 = vmul.f32 -1.442695, %v1070_v33 }
 0xe50   :  { %1457 = vpow2.f32 %v1365_v34 }
 0xe51   :  { %v1042_v26 = vpop.f32.mrf.mxu2 }
 0xe56   :  { %v1458_v35 = vpop.eup %1457 }
 0xe57   :  { %v1074_v37 = vadd.f32 1.0, %v1458_v35 }
 0xe59   :  { %1459 = vrcp.f32 %v1074_v37  ;;  %v1086_v44 = vand.u32 2147483648, %v1074_v37  ;;  %vm1080_vm4 = vweird.f32 %v1074_v37  ;;  %v1084_v45 = vand.u32 2147483647, %v1074_v37 }
 0xe5b   :  { %v1087_v13 = vor.u32 1.1754944e-38, %v1086_v44  ;;  %vm1085_vm7 = vcmp.eq.f32.partialorder %v1084_v45, 8.507059e+37  ;;  %v1208_v44 = vld [vmem:[#allocation2 + $0x18] sm:$0xc0] }
 0xe5f   :  { %v1460_v38 = vpop.eup %1459 }
 0xe60   :  { %v1076_v39 = vmul.f32 %v1460_v38, %v1074_v37  ;;  %vm1081_vm3 = vweird.f32 %v1460_v38 }
 0xe61   :  { %vm1082_vm6 = vmor %vm1080_vm4, %vm1081_vm3 }
 0xe62   :  { %v1077_v40 = vsub.f32 1.0, %v1076_v39 }
 0xe64   :  { %v1078_v41 = vmul.f32 %v1460_v38, %v1077_v40 }
 0xe66   :  { %v1079_v43 = vadd.f32 %v1460_v38, %v1078_v41 }
 0xe68   :  { %v1083_v46 = vsel %vm1082_vm6, %v1460_v38, %v1079_v43 }
 0xe69   :  { %v1088_v48 = vsel %vm1085_vm7, %v1087_v13, %v1083_v46 }
 0xe6a   :  { %v1103_v16 = vsub.f32 1.0, %v1088_v48  ;;  %v1111_v21 = vmul.f32 %v1109_v17, %v1088_v48 }
 0xe80   :  { %v1061_v27 = vpop.f32.mrf.mxu3 }
 0xe81   :  { %v1136_v28 = vadd.f32 %v1061_v27, %v1658_v32  ;;  %v1114_v50 = vrot.slane %v1061_v27, 6 }
 0xe83   :  { %v1138_v29 = vrot.slane %v1136_v28, 6  ;;  %v1116_v52 = vadd.f32 %v1114_v50, %v1066_v51  ;;  %v1156_v28 = vrot.slane %v1818_v15, 2 }
 0xe85   :  { %1139 = vrot.lane.b32.xlu0 %v1138_v29, %s1534_s9  ;;  %v1366_v53 = vmul.f32 -1.442695, %v1116_v52 }
 0xe87   :  { %1461 = vpow2.f32 %v1366_v53 }
 0xe88   :  { %v1063_v30 = vpop.f32.mrf.mxu3 }
 0xe8d   :  { %v1462_v55 = vpop.eup %1461 }
 0xe8e   :  { %v1120_v56 = vadd.f32 1.0, %v1462_v55 }
 0xe90   :  { %1463 = vrcp.f32 %v1120_v56  ;;  %v1132_v63 = vand.u32 2147483648, %v1120_v56  ;;  %vm1126_vm9 = vweird.f32 %v1120_v56  ;;  %v1130_v5 = vand.u32 2147483647, %v1120_v56 }
 0xe92   :  { %v1133_v9 = vor.u32 1.1754944e-38, %v1132_v63  ;;  %vm1131_vm13 = vcmp.eq.f32.partialorder %v1130_v5, 8.507059e+37  ;;  %v1209_v63 = vld [vmem:[#allocation2] sm:$0x3] }
 0xe96   :  { %v1464_v42 = vpop.eup %1463 }
 0xe97   :  { %v1122_v57 = vmul.f32 %v1464_v42, %v1120_v56  ;;  %vm1127_vm8 = vweird.f32 %v1464_v42 }
 0xe98   :  { %vm1128_vm12 = vmor %vm1126_vm9, %vm1127_vm8  ;;  %vm598_vm8 = vcmask 259076   ;;  %vm309_vm9 = vcmask 254976  }
 0xe99   :  { %v1123_v60 = vsub.f32 1.0, %v1122_v57 }
 0xe9b   :  { %v1124_v61 = vmul.f32 %v1464_v42, %v1123_v60 }
 0xe9d   :  { %v1125_v62 = vadd.f32 %v1464_v42, %v1124_v61 }
 0xe9f   :  { %v1129_v10 = vsel %vm1128_vm12, %v1464_v42, %v1125_v62  ;;  %vm453_vm12 = vcmask 257026  }
 0xea0   :  { %v1134_v11 = vsel %vm1131_vm13, %v1133_v9, %v1129_v10 }
 0xea1   :  { %v1149_v27 = vsub.f32 1.0, %v1134_v11  ;;  %v1158_v30 = vmul.f32 %v1156_v28, %v1134_v11 }
 0xec0   :  { %v1094_v18 = vpop.permute.xlu1 %1093 }
 0xec1   :  { %v1096_v49 = vmul.f32 %v1094_v18, %v1088_v48 }
 0xec3   :  { %1098 = vrot.lane.b32.xlu2 %v1096_v49, %s1534_s9 }
 0xef7   :  { %v1140_v2 = vpop.permute.xlu0 %1139 }
 0xef8   :  { %v1142_v4 = vmul.f32 %v1140_v2, %v1134_v11 }
 0xefa   :  { %1144 = vrot.lane.b32.xlu1 %v1142_v4, %s1534_s9 }
 0xf1d   :  { %v1099_v59 = vpop.permute.xlu2 %1098 }
 0xf1e   :  { %v1101_v6 = vadd.f32 %v1099_v59, %v1065_v0 }
 0xf20   :  { %1465 = vtanh.f32 %v1101_v6 }
 0xf26   :  { %v1466_v7 = vpop.eup %1465 }
 0xf27   :  { %1105 = vrot.lane.b32.xlu2 %v1466_v7, %s1537_s15 }
 0xf6c   :  { %v1145_v8 = vpop.permute.xlu1 %1144 }
 0xf6d   :  { %v1147_v12 = vadd.f32 %v1145_v8, %v1066_v51 }
 0xf6f   :  { %1467 = vtanh.f32 %v1147_v12 }
 0xf75   :  { %v1468_v14 = vpop.eup %1467 }
 0xf76   :  { %1151 = vrot.lane.b32.xlu0 %v1468_v14, %s1537_s15 }
 0xf81   :  { %v1106_v19 = vpop.permute.xlu2 %1105 }
 0xf82   :  { %v1108_v23 = vmul.f32 %v1106_v19, %v1103_v16 }
 0xf84   :  { %v1834_v24 = vadd.f32 %v1111_v21, %v1108_v23 }
 0xf86   :  { %v1166_v25 = vpack.c.bf16 %v1834_v24, %v1834_v24 }
 0xf88   :  { %v1168_v26 = vrot.slane %v1166_v25, 2 }
 0xf8a   :  { %1169 = vrot.lane.b32.xlu1 %v1168_v26, %s1537_s15 }
 0xfe8   :  { %v1152_v29 = vpop.permute.xlu0 %1151 }
 0xfe9   :  { %v1154_v31 = vmul.f32 %v1152_v29, %v1149_v27 }
 0xfeb   :  { %v1840_v0 = vadd.f32 %v1158_v30, %v1154_v31 }
 0xfed   :  { %v1187_v33 = vpack.c.bf16 %v1840_v0, %v1840_v0 }
 0xfef   :  { %v1189_v34 = vrot.slane %v1187_v33, 1 }
 0xff1   :  { %1190 = vrot.lane.b32.xlu2 %v1189_v34, %s1537_s15 }
 0xffc   :  { %v1170_v35 = vpop.permute.xlu1 %1169 }
 0xffd   :  { %1367 = vmatmul.msk.bf16.vlgmr.msra.gmra.mxu0 %vm159_vm2, %v1170_v35 }
0x104b   :  { %v1191_v37 = vpop.permute.xlu2 %1190 }
0x104c   :  { %1368 = vmatmul.msk.bf16.vlgmr.msra.gmra.mxu1 %vm159_vm2, %v1191_v37 }
0x107a   :  { %v1183_v38 = vpop.f32.mrf.mxu0 }
0x107b   :  { %v1233_v39 = vadd.f32 %v1183_v38, %v1654_v22  ;;  %v1211_v43 = vrot.slane %v1183_v38, 2 }
0x107d   :  { %v1235_v40 = vrot.slane %v1233_v39, 2  ;;  %v1213_v45 = vadd.f32 %v1211_v43, %v1208_v44 }
0x107f   :  { %1236 = vrot.lane.b32.xlu0 %v1235_v40, %s1534_s9  ;;  %v1369_v46 = vmul.f32 -1.442695, %v1213_v45 }
0x1081   :  { %1469 = vpow2.f32 %v1369_v46 }
0x1082   :  { %v1185_v41 = vpop.f32.mrf.mxu0 }
0x1087   :  { %v1470_v48 = vpop.eup %1469 }
0x1088   :  { %v1217_v49 = vadd.f32 1.0, %v1470_v48 }
0x108a   :  { %1471 = vrcp.f32 %v1217_v49  ;;  %v1229_v56 = vand.u32 2147483648, %v1217_v49  ;;  %vm1223_vm14 = vweird.f32 %v1217_v49  ;;  %v1227_v42 = vand.u32 2147483647, %v1217_v49 }
0x108c   :  { %v1230_v60 = vor.u32 1.1754944e-38, %v1229_v56  ;;  %vm1228_vm1 = vcmp.eq.f32.partialorder %v1227_v42, 8.507059e+37 }
0x1090   :  { %v1472_v51 = vpop.eup %1471 }
0x1091   :  { %v1219_v22 = vmul.f32 %v1472_v51, %v1217_v49  ;;  %vm1224_vm2 = vweird.f32 %v1472_v51 }
0x1092   :  { %vm1225_vm0 = vmor %vm1223_vm14, %vm1224_vm2 }
0x1093   :  { %v1220_v52 = vsub.f32 1.0, %v1219_v22 }
0x1095   :  { %v1221_v53 = vmul.f32 %v1472_v51, %v1220_v52 }
0x1097   :  { %v1222_v55 = vadd.f32 %v1472_v51, %v1221_v53 }
0x1099   :  { %v1226_v57 = vsel %vm1225_vm0, %v1472_v51, %v1222_v55 }
0x109a   :  { %v1231_v61 = vsel %vm1228_vm1, %v1230_v60, %v1226_v57 }
0x10c9   :  { %v1204_v13 = vpop.f32.mrf.mxu1 }
0x10ca   :  { %v1276_v18 = vadd.f32 %v1204_v13, %v1658_v32  ;;  %v1256_v5 = vadd.f32 %v1209_v63, %v1204_v13 }
0x10cc   :  { %1278 = vrot.lane.b32.xlu1 %v1276_v18, %s1534_s9  ;;  %v1370_v10 = vmul.f32 -1.442695, %v1256_v5 }
0x10ce   :  { %1473 = vpow2.f32 %v1370_v10 }
0x10d1   :  { %v1206_v50 = vpop.f32.mrf.mxu1 }
0x10d4   :  { %v1474_v9 = vpop.eup %1473 }
0x10d5   :  { %v1260_v2 = vadd.f32 1.0, %v1474_v9 }
0x10d7   :  { %1475 = vrcp.f32 %v1260_v2  ;;  %v1272_v8 = vand.u32 2147483648, %v1260_v2  ;;  %vm1266_vm4 = vweird.f32 %v1260_v2  ;;  %v1270_v12 = vand.u32 2147483647, %v1260_v2 }
0x10d9   :  { %v1273_v16 = vor.u32 1.1754944e-38, %v1272_v8  ;;  %vm1271_vm7 = vcmp.eq.f32.partialorder %v1270_v12, 8.507059e+37 }
0x10dd   :  { %v1476_v11 = vpop.eup %1475 }
0x10de   :  { %v1262_v4 = vmul.f32 %v1476_v11, %v1260_v2  ;;  %vm1267_vm3 = vweird.f32 %v1476_v11 }
0x10df   :  { %vm1268_vm6 = vmor %vm1266_vm4, %vm1267_vm3 }
0x10e0   :  { %v1263_v59 = vsub.f32 1.0, %v1262_v4 }
0x10e2   :  { %v1264_v6 = vmul.f32 %v1476_v11, %v1263_v59 }
0x10e4   :  { %v1265_v7 = vadd.f32 %v1476_v11, %v1264_v6 }
0x10e6   :  { %v1269_v14 = vsel %vm1268_vm6, %v1476_v11, %v1265_v7 }
0x10e7   :  { %v1274_v17 = vsel %vm1271_vm7, %v1273_v16, %v1269_v14 }
0x10f1   :  { %v1237_v32 = vpop.permute.xlu0 %1236 }
0x10f2   :  { %v1239_v62 = vmul.f32 %v1237_v32, %v1231_v61 }
0x10f4   :  { %1241 = vrot.lane.b32.xlu2 %v1239_v62, %s1534_s9 }
0x10fc   :  { %595 = vrot.lane.b32.xlu2 %v1738_v47, %s1537_s15 }
0x113e   :  { %v1279_v47 = vpop.permute.xlu1 %1278 }
0x113f   :  { %v1281_v19 = vmul.f32 %v1279_v47, %v1274_v17 }
0x1141   :  { %1283 = vrot.lane.b32.xlu0 %v1281_v19, %s1534_s9 }
0x1149   :  { %306 = vrot.lane.b32.xlu0 %v1668_v20, %s1537_s15 }
0x114e   :  { %v1242_v21 = vpop.permute.xlu2 %1241 }
0x114f   :  { %v1244_v23 = vadd.f32 %v1242_v21, %v1208_v44 }
0x1151   :  { %1477 = vtanh.f32 %v1244_v23  ;;  %736 = vrot.lane.b32.xlu0 %v1764_v54, %s1537_s15 }
0x1156   :  { %v596_v25 = vpop.permute.xlu2 %595 }
0x1157   :  { %v1478_v26 = vpop.eup %1477  ;;  %599 = vst.msk [vmem:[%s1935_s6] sm:$0x30] %vm598_vm8, %v596_v25 }
0x1158   :  { %1022 = vst.msk [vmem:[%s1935_s6] sm:$0x30] %vm455_vm5, %v1818_v15  ;;  %1248 = vrot.lane.b32.xlu1 %v1478_v26, %s1537_s15  ;;  %vm739_vm5 = vcmask 261126  }
0x1159   :  { %1018 = vrot.lane.b32.xlu0 %v1812_v3, %s1537_s15  ;;  %v1252_v3 = vrot.slane %v1834_v24, 6 }
0x115b   :  { %v1254_v30 = vmul.f32 %v1252_v3, %v1231_v61 }
0x1160   :  { %450 = vrot.lane.b32.xlu1 %v1708_v36, %s1537_s15  ;;  %v1246_v36 = vsub.f32 1.0, %v1231_v61 }
0x11b3   :  { %v1284_v20 = vpop.permute.xlu0 %1283 }
0x11b4   :  { %v1286_v54 = vadd.f32 %v1284_v20, %v1209_v63 }
0x11b6   :  { %1479 = vtanh.f32 %v1286_v54 }
0x11bb   :  { %v307_v27 = vpop.permute.xlu0 %306 }
0x11bc   :  { %v1480_v28 = vpop.eup %1479  ;;  %310 = vst.msk [vmem:[%s1935_s6] sm:$0x3] %vm309_vm9, %v307_v27 }
0x11bd   :  { %1290 = vrot.lane.b32.xlu2 %v1480_v28, %s1537_s15 }
0x11c3   :  { %v737_v15 = vpop.permute.xlu0 %736 }
0x11c4   :  { %740 = vst.msk [vmem:[%s1935_s6] sm:$0xc0] %vm739_vm5, %v737_v15 }
0x11c5   :  { %880 = vst.msk [vmem:[%s1935_s6] sm:$0xc0] %vm311_vm11, %v1796_v1  ;;  %876 = vrot.lane.b32.xlu2 %v1790_v58, %s1537_s15  ;;  %v1288_v58 = vsub.f32 1.0, %v1274_v17  ;;  %v1295_v1 = vrot.slane %v1840_v0, 2 }
0x11c7   :  { %v1297_v38 = vmul.f32 %v1295_v1, %v1274_v17 }
0x11ca   :  { %v1249_v29 = vpop.permute.xlu1 %1248 }
0x11cb   :  { %v1251_v31 = vmul.f32 %v1249_v29, %v1246_v36  ;;  %v1019_v33 = vpop.permute.xlu0 %1018 }
0x11cc   :  { %1021 = vst.msk [vmem:[%s1935_s6 + $0x8] sm:$0xc] %vm453_vm12, %v1019_v33 }
0x11cd   :  { %v1255_v34 = vadd.f32 %v1254_v30, %v1251_v31 }
0x11cf   :  { %1300 = vrot.lane.b32.xlu1 %v1255_v34, %s1537_s15 }
0x11d2   :  { %v451_v35 = vpop.permute.xlu1 %450 }
0x11d3   :  { %454 = vst.msk [vmem:[%s1935_s6] sm:$0xc] %vm453_vm12, %v451_v35 }
0x11d4   :  { %1165 = vst.msk [vmem:[%s1935_s6] sm:$0xc] %vm600_vm15, %v1840_v0 }
0x11d7   :  { %1161 = vrot.lane.b32.xlu1 %v1834_v24, %s1537_s15 }
0x1217   :  { %v1291_v37 = vpop.permute.xlu2 %1290 }
0x1218   :  { %v1293_v39 = vmul.f32 %v1291_v37, %v1288_v58 }
0x121a   :  { %v1298_v40 = vadd.f32 %v1297_v38, %v1293_v39 }
0x121c   :  { %1304 = vst.msk [vmem:[%s1935_s6] sm:$0x3] %vm741_vm10, %v1298_v40 }
0x121f   :  { %v877_v41 = vpop.permute.xlu2 %876 }
0x1220   :  { %879 = vst.msk [vmem:[%s1935_s6 + $0x8] sm:$0x3] %vm309_vm9, %v877_v41 }
0x1241   :  { %v1301_v43 = vpop.permute.xlu1 %1300 }
0x1242   :  { %1303 = vst.msk [vmem:[%s1935_s6 + $0x8] sm:$0xc0] %vm739_vm5, %v1301_v43 }
0x1243   :  { %1305 = vst.msk [vmem:[%s1936_s7 - $0x6] sm:$0xc0] %vm739_vm5, %v1301_v43 }
0x1244   :  { %1306 = vst.msk [vmem:[%s1936_s7] sm:$0x3] %vm741_vm10, %v1298_v40 }
0x1249   :  { %v1162_v24 = vpop.permute.xlu1 %1161 }
0x124a   :  { %1164 = vst.msk [vmem:[%s1935_s6 + $0x8] sm:$0x30] %vm598_vm8, %v1162_v24 }
0x124b   :  { %1315 = vsyncpa [#allocation4], 1 }
0x124c   :  { %1316 = vsyncpa [#allocation6], 1 }

// kernel: traj_gru_forward.3
= control target key start
LH: loop header
LB: loop body
LE: loop exit
PB: predicated region body
PF: predicated region fallthrough
CT: control target
= control target key end

     0   :  { %13 = vsyncpa [#allocation4], 0  ;;  %s1941_s0 = inlined_call_operand.vmem [shape: f32[16,128], index: 0, kind: input, shape index: {}]   ;;  %s1942_s1 = inlined_call_operand.hbm [shape: f32[128,256], index: 1, kind: input, shape index: {}]   ;;  %s1943_s2 = inlined_call_operand.vmem [shape: f32[1,256], index: 2, kind: input, shape index: {}]   ;;  %s1944_s3 = inlined_call_operand.vmem [shape: bf16[2,32,128], index: 3, kind: input, shape index: {}]   ;;  %s1945_s4 = inlined_call_operand.hbm [shape: f32[1,64], index: 4, kind: input, shape index: {}]   ;;  %s1946_s5 = inlined_call_operand.vmem [shape: f32[2,64], index: 5, kind: input, shape index: {}]   ;;  %s1947_s6 = inlined_call_operand.vmem [shape: f32[16,128], index: 6, kind: output, shape index: {0}]   ;;  %s1948_s7 = inlined_call_operand.vmem [shape: f32[2,64], index: 7, kind: output, shape index: {1}]  }
   0x1   :  { %s21_s26 = sshll.u32 %s1942_s1, 4  ;;  %s22_s26 = int_to_ptr.hbm [resolvable:$true] %s21_s26 }
   0x2   :  { %14 = vsyncpa [#allocation6], 0  ;;  %s1545_s27 = smov [#allocation3]   ;;  %s39_s8 = sshll.u32 %s1945_s4, 4  ;;  %s40_s8 = int_to_ptr.hbm [resolvable:$true] %s39_s8 }
   0x3   :  { %s23_s28 = sshll.u32 %s1545_s27, 4  ;;  %s1546_s9 = smov 256   ;;  %s24_s28 = int_to_ptr.vmem [resolvable:$true] %s23_s28 }
   0x4   :  { %s1547_s10 = smov 16   ;;  %s1548_s11 = smov [#allocation5]  }
   0x5   :  { %29 = dma.hbm_to_vmem [thread:$0]  %s22_s26, 4096, %s24_s28, [#allocation4], %s1546_s9, %s1546_s9, %s1547_s10  }
   0x6   :  { %s41_s12 = sshll.u32 %s1548_s11, 4  ;;  %s42_s12 = int_to_ptr.vmem [resolvable:$true] %s41_s12 }
   0x7   :  { %44 = dma.hbm_to_vmem [thread:$0]  %s40_s8, 16, %s42_s12, [#allocation6]  }
   0x8   :  { %1541 = dma.done.wait [#allocation4], 4096  }
   0x9   :  { %1542 = vsyncadd [#allocation4], 4294963200 }
   0xa   :  { %1543 = dma.done.wait [#allocation6], 16  }
   0xb   :  { %1544 = vsyncadd [#allocation6], 4294967280  ;;  %v88_v0 = vld [vmem:[#allocation3 + $0xf0] sm:$0xff]  ;;  %v1602_v1 = vld [vmem:[%s1946_s5] sm:$0x3]  ;;  %s1549_s15 = smov 96  }
   0xc   :  { %v86_v2 = vld [vmem:[#allocation3 + $0xe0] sm:$0xff]  ;;  %96 = vmatpush.msra.mxu0 %v88_v0  ;;  %v161_v3 = vpack.c.bf16 %v1602_v1, %v1602_v1  ;;  %v1609_v4 = vld [vmem:[%s1944_s3 + $0x8] sm:$0xff]  ;;  %v84_v5 = vld [vmem:[#allocation3 + $0xd0] sm:$0xff]  ;;  %s1550_s17 = smov 32   ;;  %vm174_vm0 = vcmask 261120   ;;  %s1551_s18 = smov 64  }
   0xd   :  { %184 = vmatpush.bf16.msra.mxu2 %v1609_v4  ;;  %v82_v6 = vld [vmem:[#allocation3 + $0xc0] sm:$0xff]  ;;  %v80_v9 = vld [vmem:[#allocation3 + $0xb0] sm:$0xff]  ;;  %v89_v10 = vld [vmem:[#allocation3 + $0xf8] sm:$0xff]  ;;  %vm326_vm9 = vcmask 523526  }
   0xe   :  { %192 = vrot.lane.b32.xlu0 %v161_v3, %s1549_s15  ;;  %97 = vmatpush.msra.mxu0 %v86_v2  ;;  %v1616_v7 = vld [vmem:[%s1944_s3] sm:$0xff]  ;;  %v87_v11 = vld [vmem:[#allocation3 + $0xe8] sm:$0xff]  ;;  %v85_v13 = vld [vmem:[#allocation3 + $0xd8] sm:$0xff] }
   0xf   :  { %v1396_v8 = vld [vmem:[#allocation5] ss:$0 sm:$0xff]  ;;  %119 = vmatpush.msra.mxu1 %v89_v10  ;;  %v76_v14 = vld [vmem:[#allocation3 + $0x90] sm:$0xff]  ;;  %v83_v15 = vld [vmem:[#allocation3 + $0xc8] sm:$0xff] }
  0x10   :  { %98 = vmatpush.msra.mxu0 %v84_v5  ;;  %294 = vrot.lane.b32.xlu1 %v1396_v8, %s1550_s17  ;;  %v78_v12 = vld [vmem:[#allocation3 + $0xa0] sm:$0xff]  ;;  %v1626_v17 = vld [vmem:[%s1944_s3 + $0x18] sm:$0xff]  ;;  %v72_v19 = vld [vmem:[#allocation3 + $0x70] sm:$0xff] }
  0x11   :  { %185 = vmatpush.bf16.msra.mxu2 %v1616_v7  ;;  %120 = vmatpush.msra.mxu1 %v87_v11  ;;  %v74_v16 = vld [vmem:[#allocation3 + $0x80] sm:$0xff]  ;;  %v81_v18 = vld [vmem:[#allocation3 + $0xb8] sm:$0xff]  ;;  %v1633_v20 = vld [vmem:[%s1944_s3 + $0x10] sm:$0xff] }
  0x12   :  { %99 = vmatpush.msra.mxu0 %v82_v6  ;;  %215 = vmatpush.bf16.msra.mxu3 %v1626_v17  ;;  %v79_v21 = vld [vmem:[#allocation3 + $0xa8] sm:$0xff]  ;;  %v70_v22 = vld [vmem:[#allocation3 + $0x60] sm:$0xff]  ;;  %v77_v23 = vld [vmem:[#allocation3 + $0x98] sm:$0xff] }
  0x13   :  { %121 = vmatpush.msra.mxu1 %v85_v13  ;;  %v68_v24 = vld [vmem:[#allocation3 + $0x50] sm:$0xff]  ;;  %v75_v25 = vld [vmem:[#allocation3 + $0x88] sm:$0xff]  ;;  %v66_v26 = vld [vmem:[#allocation3 + $0x40] sm:$0xff] }
  0x14   :  { %100 = vmatpush.msra.mxu0 %v80_v9  ;;  %1344 = vmatmul.msk.bf16.vlgmr.msra.gmra.mxu2 %vm174_vm0, %v161_v3  ;;  %v73_v27 = vld [vmem:[#allocation3 + $0x78] sm:$0xff]  ;;  %v64_v28 = vld [vmem:[#allocation3 + $0x30] sm:$0xff]  ;;  %v71_v29 = vld [vmem:[#allocation3 + $0x68] sm:$0xff] }
  0x15   :  { %341 = vmatpush.bf16.msrb.mxu2 %v1609_v4  ;;  %122 = vmatpush.msra.mxu1 %v83_v15  ;;  %v62_v30 = vld [vmem:[#allocation3 + $0x20] sm:$0xff]  ;;  %v69_v31 = vld [vmem:[#allocation3 + $0x58] sm:$0xff]  ;;  %v60_v32 = vld [vmem:[#allocation3 + $0x10] sm:$0xff] }
  0x16   :  { %101 = vmatpush.msra.mxu0 %v78_v12  ;;  %244 = vrot.lane.b32.xlu0 %v1396_v8, %s1551_s18  ;;  %v67_v33 = vld [vmem:[#allocation3 + $0x48] sm:$0xff]  ;;  %v58_v34 = vld [vmem:[#allocation3] sm:$0xff]  ;;  %v65_v36 = vld [vmem:[#allocation3 + $0x38] sm:$0xff] }
  0x17   :  { %123 = vmatpush.msra.mxu1 %v81_v18  ;;  %216 = vmatpush.bf16.msra.mxu3 %v1633_v20  ;;  %v56_v35 = vld [vmem:[%s1941_s0] sm:$0xff]  ;;  %v63_v37 = vld [vmem:[#allocation3 + $0x28] sm:$0xff]  ;;  %v61_v38 = vld [vmem:[#allocation3 + $0x18] sm:$0xff] }
  0x18   :  { %102 = vmatpush.msra.mxu0 %v76_v14  ;;  %v59_v39 = vld [vmem:[#allocation3 + $0x8] sm:$0xff]  ;;  %v1664_v46 = vld [vmem:[%s1943_s2] sm:$0x3] }
  0x19   :  { %342 = vmatpush.bf16.msrb.mxu2 %v1616_v7  ;;  %124 = vmatpush.msra.mxu1 %v79_v21  ;;  %v57_v40 = vld [vmem:[%s1941_s0 + $0x8] sm:$0xff]  ;;  %v92_v47 = vperm.slane %v1664_v46, 0  ;;  %v93_v50 = vperm.slane %v1664_v46, 1 }
  0x1a   :  { %103 = vmatpush.msra.mxu0 %v74_v16 }
  0x1b   :  { %362 = vmatpush.bf16.msrb.mxu3 %v1626_v17  ;;  %125 = vmatpush.msra.mxu1 %v77_v23 }
  0x1c   :  { %104 = vmatpush.msra.mxu0 %v72_v19 }
  0x1d   :  { %486 = vmatpush.bf16.msra.mxu2 %v1609_v4  ;;  %126 = vmatpush.msra.mxu1 %v75_v25 }
  0x1e   :  { %105 = vmatpush.msra.mxu0 %v70_v22 }
  0x1f   :  { %363 = vmatpush.bf16.msrb.mxu3 %v1633_v20  ;;  %127 = vmatpush.msra.mxu1 %v73_v27 }
  0x20   :  { %106 = vmatpush.msra.mxu0 %v68_v24 }
  0x21   :  { %487 = vmatpush.bf16.msra.mxu2 %v1616_v7  ;;  %128 = vmatpush.msra.mxu1 %v71_v29 }
  0x22   :  { %107 = vmatpush.msra.mxu0 %v66_v26 }
  0x23   :  { %129 = vmatpush.msra.mxu1 %v69_v31 }
  0x24   :  { %108 = vmatpush.msra.mxu0 %v64_v28 }
  0x25   :  { %130 = vmatpush.msra.mxu1 %v67_v33 }
  0x26   :  { %109 = vmatpush.msra.mxu0 %v62_v30 }
  0x27   :  { %131 = vmatpush.msra.mxu1 %v65_v36 }
  0x28   :  { %110 = vmatpush.msra.mxu0 %v60_v32 }
  0x29   :  { %132 = vmatpush.msra.mxu1 %v63_v37 }
  0x2a   :  { %111 = vmatpush.msra.mxu0 %v58_v34 }
  0x2b   :  { %112 = vmatmul.f32.vlgmr.msra.gmra.mxu0 %v56_v35  ;;  %133 = vmatpush.msra.mxu1 %v61_v38 }
  0x2c   :  { %631 = vmatpush.bf16.msrb.mxu0 %v1609_v4 }
  0x2d   :  { %134 = vmatpush.msra.mxu1 %v59_v39 }
  0x2e   :  { %135 = vmatmul.f32.vlgmr.msra.gmra.mxu1 %v56_v35 }
  0x2f   :  { %652 = vmatpush.bf16.msrb.mxu1 %v1626_v17 }
  0x30   :  { %632 = vmatpush.bf16.msrb.mxu0 %v1616_v7 }
  0x33   :  { %115 = vmatmul.f32.gmra.mxu0 %v57_v40  ;;  %653 = vmatpush.bf16.msrb.mxu1 %v1633_v20 }
  0x34   :  { %909 = vmatpush.bf16.msra.mxu0 %v1609_v4 }
  0x36   :  { %138 = vmatmul.f32.gmra.mxu1 %v57_v40 }
  0x37   :  { %930 = vmatpush.bf16.msra.mxu1 %v1626_v17 }
  0x38   :  { %910 = vmatpush.bf16.msra.mxu0 %v1616_v7 }
  0x3b   :  { %931 = vmatpush.bf16.msra.mxu1 %v1633_v20 }
  0x80   :  { %v193_v41 = vpop.permute.xlu0 %192 }
  0x81   :  { %1353 = vmatmul.msk.bf16.vlgmr.msra.gmra.mxu3 %vm174_vm0, %v193_v41 }
  0x82   :  { %507 = vmatpush.bf16.msra.mxu3 %v1626_v17  ;;  %v1670_v63 = vpop.permute.xlu1 %294 }
  0x86   :  { %508 = vmatpush.bf16.msra.mxu3 %v1633_v20 }
  0x88   :  { %v1657_v42 = vpop.permute.xlu0 %244 }
  0x97   :  { %v187_v43 = vpop.f32.mrf.mxu2 }
  0x98   :  { %v247_v44 = vadd.f32 %v1657_v42, %v187_v43 }
  0x9a   :  { %249 = vrot.lane.b32.xlu1 %v247_v44, %s1551_s18 }
  0x9f   :  { %v189_v45 = vpop.f32.mrf.mxu2 }
  0xa8   :  { %v113_v48 = vpop.f32.mrf.mxu0 }
  0xa9   :  { %v114_v49 = vadd.f32 %v113_v48, %v92_v47 }
  0xab   :  { %142 = vst [vmem:[#allocation2 + $0x10] sm:$0xff] %v114_v49  ;;  %v136_v51 = vpop.f32.mrf.mxu1 }
  0xac   :  { %v137_v52 = vadd.f32 %v136_v51, %v93_v50 }
  0xae   :  { %143 = vst [vmem:[#allocation2] sm:$0xff] %v137_v52  ;;  %v1552_v52 = vmov 0.0  }
  0xaf   :  { %146 = vst [vmem:[%s1947_s6] sm:$0xff] %v1552_v52 }
  0xb0   :  { %147 = vst [vmem:[%s1947_s6 + $0x8] sm:$0xff] %v1552_v52 }
  0xb2   :  { %v222_v55 = vld [vmem:[#allocation2 + $0x10] sm:$0x3] }
  0xb3   :  { %v139_v53 = vpop.f32.mrf.mxu1  ;;  %v224_v56 = vadd.f32 %v222_v55, %v187_v43 }
  0xb4   :  { %v140_v54 = vadd.f32 %v139_v53, %v93_v50  ;;  %v316_v53 = vrot.slane %v1602_v1, 2 }
  0xb5   :  { %v1354_v57 = vmul.f32 -1.442695, %v224_v56 }
  0xb6   :  { %145 = vst [vmem:[#allocation2 + $0x8] sm:$0xff] %v140_v54 }
  0xb7   :  { %1397 = vpow2.f32 %v1354_v57 }
  0xbd   :  { %v1398_v58 = vpop.eup %1397  ;;  %v223_v18 = vld [vmem:[#allocation2 + $0x8] sm:$0xc0] }
  0xbe   :  { %v228_v59 = vadd.f32 1.0, %v1398_v58 }
  0xc0   :  { %1399 = vrcp.f32 %v228_v59  ;;  %v240_v8 = vand.u32 2147483648, %v228_v59  ;;  %vm234_vm2 = vweird.f32 %v228_v59  ;;  %v238_v9 = vand.u32 2147483647, %v228_v59 }
  0xc2   :  { %v241_v12 = vor.u32 1.1754944e-38, %v240_v8  ;;  %vm239_vm4 = vcmp.eq.f32.partialorder %v238_v9, 8.507059e+37 }
  0xc6   :  { %v1400_v60 = vpop.eup %1399 }
  0xc7   :  { %v230_v61 = vmul.f32 %v1400_v60, %v228_v59  ;;  %vm235_vm1 = vweird.f32 %v1400_v60 }
  0xc8   :  { %vm236_vm3 = vmor %vm234_vm2, %vm235_vm1 }
  0xc9   :  { %v231_v62 = vsub.f32 1.0, %v230_v61 }
  0xcb   :  { %v232_v0 = vmul.f32 %v1400_v60, %v231_v62 }
  0xcd   :  { %v233_v6 = vadd.f32 %v1400_v60, %v232_v0 }
  0xcf   :  { %v237_v10 = vsel %vm236_vm3, %v1400_v60, %v233_v6  ;;  %v369_v6 = vld [vmem:[#allocation2 + $0x10] sm:$0xc]  ;;  %vm470_vm3 = vcmask 521476  }
  0xd0   :  { %v242_v14 = vsel %vm239_vm4, %v241_v12, %v237_v10 }
  0xd1   :  { %v259_v44 = vsub.f32 1.0, %v242_v14 }
 0x104   :  { %v218_v2 = vpop.f32.mrf.mxu3 }
 0x105   :  { %v297_v3 = vadd.f32 %v1670_v63, %v218_v2  ;;  %v272_v16 = vrot.slane %v218_v2, 2 }
 0x107   :  { %v299_v5 = vrot.slane %v297_v3, 2  ;;  %v274_v19 = vadd.f32 %v272_v16, %v223_v18 }
 0x109   :  { %300 = vrot.lane.b32.xlu2 %v299_v5, %s1551_s18  ;;  %v1355_v21 = vmul.f32 -1.442695, %v274_v19 }
 0x10b   :  { %1401 = vpow2.f32 %v1355_v21 }
 0x10c   :  { %v220_v11 = vpop.f32.mrf.mxu3  ;;  %v250_v13 = vpop.permute.xlu1 %249 }
 0x10d   :  { %v252_v15 = vmul.f32 %v250_v13, %v242_v14 }
 0x111   :  { %254 = vrot.lane.b32.xlu2 %v252_v15, %s1551_s18  ;;  %v1402_v22 = vpop.eup %1401  ;;  %v370_v15 = vld [vmem:[#allocation2 + $0x8] sm:$0x30] }
 0x112   :  { %v278_v23 = vadd.f32 1.0, %v1402_v22 }
 0x114   :  { %1403 = vrcp.f32 %v278_v23  ;;  %v290_v29 = vand.u32 2147483648, %v278_v23  ;;  %vm284_vm6 = vweird.f32 %v278_v23  ;;  %v288_v30 = vand.u32 2147483647, %v278_v23 }
 0x116   :  { %v291_v32 = vor.u32 1.1754944e-38, %v290_v29  ;;  %vm289_vm8 = vcmp.eq.f32.partialorder %v288_v30, 8.507059e+37 }
 0x119   :  { %266 = vrot.lane.b32.xlu2 %v1602_v1, %s1550_s17 }
 0x11a   :  { %v1404_v24 = vpop.eup %1403 }
 0x11b   :  { %v280_v25 = vmul.f32 %v1404_v24, %v278_v23  ;;  %vm285_vm5 = vweird.f32 %v1404_v24 }
 0x11c   :  { %vm286_vm7 = vmor %vm284_vm6, %vm285_vm5 }
 0x11d   :  { %v281_v26 = vsub.f32 1.0, %v280_v25 }
 0x11f   :  { %v282_v27 = vmul.f32 %v1404_v24, %v281_v26 }
 0x121   :  { %v283_v28 = vadd.f32 %v1404_v24, %v282_v27 }
 0x123   :  { %v287_v31 = vsel %vm286_vm7, %v1404_v24, %v283_v28 }
 0x124   :  { %v292_v34 = vsel %vm289_vm8, %v291_v32, %v287_v31 }
 0x125   :  { %v310_v54 = vsub.f32 1.0, %v292_v34  ;;  %v318_v56 = vmul.f32 %v316_v53, %v292_v34 }
 0x163   :  { %v301_v33 = vpop.permute.xlu2 %300 }
 0x164   :  { %v303_v35 = vmul.f32 %v301_v33, %v292_v34 }
 0x166   :  { %305 = vrot.lane.b32.xlu0 %v303_v35, %s1551_s18 }
 0x16b   :  { %v255_v36 = vpop.permute.xlu2 %254 }
 0x16c   :  { %v257_v37 = vadd.f32 %v255_v36, %v222_v55 }
 0x16e   :  { %1405 = vtanh.f32 %v257_v37 }
 0x173   :  { %v267_v43 = vpop.permute.xlu2 %266 }
 0x174   :  { %v1406_v38 = vpop.eup %1405  ;;  %v269_v48 = vmul.f32 %v267_v43, %v242_v14 }
 0x175   :  { %261 = vrot.lane.b32.xlu1 %v1406_v38, %s1549_s15 }
 0x1d8   :  { %v306_v39 = vpop.permute.xlu0 %305 }
 0x1d9   :  { %v308_v40 = vadd.f32 %v306_v39, %v223_v18 }
 0x1db   :  { %1407 = vtanh.f32 %v308_v40 }
 0x1e1   :  { %v1408_v41 = vpop.eup %1407 }
 0x1e2   :  { %312 = vrot.lane.b32.xlu0 %v1408_v41, %s1549_s15 }
 0x1e7   :  { %v262_v45 = vpop.permute.xlu1 %261 }
 0x1e8   :  { %v264_v49 = vmul.f32 %v262_v45, %v259_v44 }
 0x1ea   :  { %v1680_v50 = vadd.f32 %v269_v48, %v264_v49 }
 0x1ec   :  { %v328_v51 = vpack.c.bf16 %v1680_v50, %v1680_v50 }
 0x1ee   :  { %330 = vrot.lane.b32.xlu1 %v328_v51, %s1549_s15 }
 0x254   :  { %v313_v55 = vpop.permute.xlu0 %312 }
 0x255   :  { %v315_v57 = vmul.f32 %v313_v55, %v310_v54 }
 0x257   :  { %v1692_v58 = vadd.f32 %v318_v56, %v315_v57 }
 0x259   :  { %v348_v59 = vpack.c.bf16 %v1692_v58, %v1692_v58  ;;  %327 = vst.msk [vmem:[%s1947_s6 + $0x8] sm:$0xc0] %vm326_vm9, %v1692_v58  ;;  %v460_v43 = vrot.slane %v1692_v58, 2 }
 0x25b   :  { %v350_v60 = vrot.slane %v348_v59, 3 }
 0x25d   :  { %351 = vrot.lane.b32.xlu2 %v350_v60, %s1549_s15 }
 0x260   :  { %v331_v1 = vpop.permute.xlu1 %330 }
 0x261   :  { %1356 = vmatmul.msk.bf16.vlgmr.msrb.gmra.mxu2 %vm174_vm0, %v331_v1  ;;  %v413_v1 = vrot.slane %v1680_v50, 6 }
 0x262   :  { %772 = vmatpush.bf16.msrb.mxu2 %v1609_v4 }
 0x266   :  { %773 = vmatpush.bf16.msrb.mxu2 %v1616_v7 }
 0x2b7   :  { %v352_v61 = vpop.permute.xlu2 %351 }
 0x2b8   :  { %1357 = vmatmul.msk.bf16.vlgmr.msrb.gmra.mxu3 %vm174_vm0, %v352_v61 }
 0x2b9   :  { %792 = vmatpush.bf16.msrb.mxu3 %v1626_v17 }
 0x2bd   :  { %793 = vmatpush.bf16.msrb.mxu3 %v1633_v20 }
 0x2e4   :  { %v344_v62 = vpop.f32.mrf.mxu2 }
 0x2e5   :  { %v394_v0 = vadd.f32 %v344_v62, %v1657_v42  ;;  %v372_v5 = vrot.slane %v344_v62, 6 }
 0x2e7   :  { %v396_v2 = vrot.slane %v394_v0, 6  ;;  %v374_v8 = vadd.f32 %v372_v5, %v369_v6 }
 0x2e9   :  { %397 = vrot.lane.b32.xlu0 %v396_v2, %s1551_s18  ;;  %v1358_v9 = vmul.f32 -1.442695, %v374_v8 }
 0x2eb   :  { %1409 = vpow2.f32 %v1358_v9 }
 0x2ec   :  { %v346_v3 = vpop.f32.mrf.mxu2 }
 0x2f1   :  { %v1410_v10 = vpop.eup %1409 }
 0x2f2   :  { %v378_v11 = vadd.f32 1.0, %v1410_v10 }
 0x2f4   :  { %1411 = vrcp.f32 %v378_v11  ;;  %vm384_vm11 = vweird.f32 %v378_v11  ;;  %v390_v32 = vand.u32 2147483648, %v378_v11  ;;  %v388_v34 = vand.u32 2147483647, %v378_v11 }
 0x2f6   :  { %v391_v39 = vor.u32 1.1754944e-38, %v390_v32  ;;  %vm389_vm1 = vcmp.eq.f32.partialorder %v388_v34, 8.507059e+37 }
 0x2fa   :  { %v1412_v22 = vpop.eup %1411 }
 0x2fb   :  { %v380_v24 = vmul.f32 %v1412_v22, %v378_v11  ;;  %vm385_vm10 = vweird.f32 %v1412_v22 }
 0x2fc   :  { %vm386_vm13 = vmor %vm384_vm11, %vm385_vm10 }
 0x2fd   :  { %v381_v26 = vsub.f32 1.0, %v380_v24 }
 0x2ff   :  { %v382_v27 = vmul.f32 %v1412_v22, %v381_v26 }
 0x301   :  { %v383_v30 = vadd.f32 %v1412_v22, %v382_v27 }
 0x303   :  { %v387_v37 = vsel %vm386_vm13, %v1412_v22, %v383_v30  ;;  %vm615_vm13 = vcmask 519426  }
 0x304   :  { %v392_v45 = vsel %vm389_vm1, %v391_v39, %v387_v37 }
 0x305   :  { %v407_v60 = vsub.f32 1.0, %v392_v45  ;;  %v415_v62 = vmul.f32 %v413_v1, %v392_v45 }
 0x33b   :  { %v365_v12 = vpop.f32.mrf.mxu3 }
 0x33c   :  { %v418_v13 = vrot.slane %v365_v12, 4  ;;  %v440_v14 = vadd.f32 %v365_v12, %v1670_v63 }
 0x33e   :  { %v420_v16 = vadd.f32 %v418_v13, %v370_v15  ;;  %v442_v18 = vrot.slane %v440_v14, 4 }
 0x340   :  { %v1359_v19 = vmul.f32 -1.442695, %v420_v16  ;;  %443 = vrot.lane.b32.xlu2 %v442_v18, %s1551_s18 }
 0x342   :  { %1413 = vpow2.f32 %v1359_v19 }
 0x343   :  { %v367_v21 = vpop.f32.mrf.mxu3 }
 0x348   :  { %v1414_v23 = vpop.eup %1413 }
 0x349   :  { %v424_v25 = vadd.f32 1.0, %v1414_v23 }
 0x34b   :  { %1415 = vrcp.f32 %v424_v25  ;;  %v436_v33 = vand.u32 2147483648, %v424_v25  ;;  %v434_v36 = vand.u32 2147483647, %v424_v25  ;;  %vm430_vm14 = vweird.f32 %v424_v25 }
 0x34d   :  { %v437_v40 = vor.u32 1.1754944e-38, %v436_v33  ;;  %vm435_vm2 = vcmp.eq.f32.partialorder %v434_v36, 8.507059e+37 }
 0x351   :  { %v1416_v28 = vpop.eup %1415 }
 0x352   :  { %v426_v29 = vmul.f32 %v1416_v28, %v424_v25  ;;  %vm431_vm12 = vweird.f32 %v1416_v28  ;;  %v514_v25 = vld [vmem:[#allocation2 + $0x10] sm:$0x30] }
 0x353   :  { %vm432_vm15 = vmor %vm430_vm14, %vm431_vm12 }
 0x354   :  { %v427_v31 = vsub.f32 1.0, %v426_v29 }
 0x356   :  { %v428_v35 = vmul.f32 %v1416_v28, %v427_v31 }
 0x358   :  { %v429_v38 = vadd.f32 %v1416_v28, %v428_v35 }
 0x35a   :  { %v433_v41 = vsel %vm432_vm15, %v1416_v28, %v429_v38 }
 0x35b   :  { %v398_v44 = vpop.permute.xlu0 %397  ;;  %v438_v48 = vsel %vm435_vm2, %v437_v40, %v433_v41 }
 0x35c   :  { %v400_v49 = vmul.f32 %v398_v44, %v392_v45  ;;  %v462_v51 = vmul.f32 %v460_v43, %v438_v48  ;;  %v515_v45 = vld [vmem:[#allocation2 + $0x8] sm:$0xc] }
 0x35e   :  { %402 = vrot.lane.b32.xlu1 %v400_v49, %s1551_s18 }
 0x39a   :  { %v444_v52 = vpop.permute.xlu2 %443 }
 0x39b   :  { %v446_v53 = vmul.f32 %v444_v52, %v438_v48 }
 0x39d   :  { %448 = vrot.lane.b32.xlu0 %v446_v53, %s1551_s18 }
 0x3d0   :  { %v403_v54 = vpop.permute.xlu1 %402 }
 0x3d1   :  { %v405_v55 = vadd.f32 %v403_v54, %v369_v6  ;;  %v453_v6 = vsub.f32 1.0, %v438_v48 }
 0x3d3   :  { %1417 = vtanh.f32 %v405_v55 }
 0x3d9   :  { %v1418_v56 = vpop.eup %1417 }
 0x3da   :  { %409 = vrot.lane.b32.xlu1 %v1418_v56, %s1549_s15 }
 0x40f   :  { %v449_v57 = vpop.permute.xlu0 %448 }
 0x410   :  { %v451_v59 = vadd.f32 %v449_v57, %v370_v15 }
 0x412   :  { %1419 = vtanh.f32 %v451_v59 }
 0x418   :  { %v1420_v58 = vpop.eup %1419 }
 0x419   :  { %455 = vrot.lane.b32.xlu2 %v1420_v58, %s1549_s15 }
 0x44c   :  { %v410_v61 = vpop.permute.xlu1 %409 }
 0x44d   :  { %v412_v0 = vmul.f32 %v410_v61, %v407_v60 }
 0x44f   :  { %v1718_v2 = vadd.f32 %v415_v62, %v412_v0 }
 0x451   :  { %v472_v3 = vpack.c.bf16 %v1718_v2, %v1718_v2 }
 0x453   :  { %v474_v5 = vrot.slane %v472_v3, 1 }
 0x455   :  { %475 = vrot.lane.b32.xlu0 %v474_v5, %s1549_s15 }
 0x473   :  { %v456_v8 = vpop.permute.xlu2 %455 }
 0x474   :  { %v458_v9 = vmul.f32 %v456_v8, %v453_v6 }
 0x476   :  { %v1723_v10 = vadd.f32 %v462_v51, %v458_v9 }
 0x478   :  { %v493_v11 = vpack.c.bf16 %v1723_v10, %v1723_v10  ;;  %471 = vst.msk [vmem:[%s1947_s6 + $0x8] sm:$0x30] %vm470_vm3, %v1723_v10 }
 0x47a   :  { %v495_v12 = vrot.slane %v493_v11, 2 }
 0x47c   :  { %496 = vrot.lane.b32.xlu1 %v495_v12, %s1549_s15 }
 0x4c7   :  { %v476_v13 = vpop.permute.xlu0 %475 }
 0x4c8   :  { %1360 = vmatmul.msk.bf16.vlgmr.msra.gmra.mxu2 %vm174_vm0, %v476_v13  ;;  %v558_v13 = vrot.slane %v1718_v2, 6 }
 0x4c9   :  { %1052 = vmatpush.bf16.msra.mxu2 %v1609_v4 }
 0x4cd   :  { %1053 = vmatpush.bf16.msra.mxu2 %v1616_v7 }
 0x4ee   :  { %v497_v14 = vpop.permute.xlu1 %496 }
 0x4ef   :  { %1361 = vmatmul.msk.bf16.vlgmr.msra.gmra.mxu3 %vm174_vm0, %v497_v14 }
 0x4f0   :  { %1073 = vmatpush.bf16.msra.mxu3 %v1626_v17 }
 0x4f4   :  { %1074 = vmatpush.bf16.msra.mxu3 %v1633_v20 }
 0x54b   :  { %v489_v15 = vpop.f32.mrf.mxu2 }
 0x54c   :  { %v539_v16 = vadd.f32 %v489_v15, %v1657_v42  ;;  %v517_v23 = vrot.slane %v489_v15, 4 }
 0x54e   :  { %v541_v18 = vrot.slane %v539_v16, 4  ;;  %v519_v26 = vadd.f32 %v517_v23, %v514_v25  ;;  %v605_v23 = vrot.slane %v1723_v10, 2  ;;  %v116_v10 = vpop.f32.mrf.mxu0 }
 0x550   :  { %542 = vrot.lane.b32.xlu2 %v541_v18, %s1551_s18  ;;  %v1362_v28 = vmul.f32 -1.442695, %v519_v26 }
 0x552   :  { %1421 = vpow2.f32 %v1362_v28 }
 0x553   :  { %v491_v19 = vpop.f32.mrf.mxu2 }
 0x558   :  { %v1422_v29 = vpop.eup %1421 }
 0x559   :  { %v523_v30 = vadd.f32 1.0, %v1422_v29 }
 0x55b   :  { %1423 = vrcp.f32 %v523_v30  ;;  %v535_v36 = vand.u32 2147483648, %v523_v30  ;;  %vm529_vm5 = vweird.f32 %v523_v30  ;;  %v533_v37 = vand.u32 2147483647, %v523_v30 }
 0x55d   :  { %v536_v39 = vor.u32 1.1754944e-38, %v535_v36  ;;  %vm534_vm7 = vcmp.eq.f32.partialorder %v533_v37, 8.507059e+37  ;;  %v660_v36 = vld [vmem:[#allocation2 + $0x8] sm:$0x3] }
 0x561   :  { %v1424_v31 = vpop.eup %1423 }
 0x562   :  { %v525_v32 = vmul.f32 %v1424_v31, %v523_v30  ;;  %vm530_vm4 = vweird.f32 %v1424_v31 }
 0x563   :  { %vm531_vm6 = vmor %vm529_vm5, %vm530_vm4 }
 0x564   :  { %v526_v33 = vsub.f32 1.0, %v525_v32 }
 0x566   :  { %v527_v34 = vmul.f32 %v1424_v31, %v526_v33 }
 0x568   :  { %v528_v35 = vadd.f32 %v1424_v31, %v527_v34 }
 0x56a   :  { %v532_v38 = vsel %vm531_vm6, %v1424_v31, %v528_v35  ;;  %v117_v31 = vadd.f32 %v116_v10, %v92_v47 }
 0x56b   :  { %v537_v41 = vsel %vm534_vm7, %v536_v39, %v532_v38 }
 0x56c   :  { %v552_v12 = vsub.f32 1.0, %v537_v41  ;;  %v560_v15 = vmul.f32 %v558_v13, %v537_v41  ;;  %144 = vst [vmem:[#allocation2 + $0x18] sm:$0xff] %v117_v31 }
 0x572   :  { %v510_v21 = vpop.f32.mrf.mxu3 }
 0x573   :  { %v585_v22 = vadd.f32 %v510_v21, %v1670_v63  ;;  %v563_v44 = vrot.slane %v510_v21, 6 }
 0x575   :  { %v587_v24 = vrot.slane %v585_v22, 6  ;;  %v565_v48 = vadd.f32 %v563_v44, %v515_v45 }
 0x577   :  { %588 = vrot.lane.b32.xlu1 %v587_v24, %s1551_s18  ;;  %v1363_v49 = vmul.f32 -1.442695, %v565_v48 }
 0x579   :  { %1425 = vpow2.f32 %v1363_v49 }
 0x57a   :  { %v512_v27 = vpop.f32.mrf.mxu3 }
 0x57f   :  { %v1426_v51 = vpop.eup %1425 }
 0x580   :  { %v569_v52 = vadd.f32 1.0, %v1426_v51 }
 0x582   :  { %1427 = vrcp.f32 %v569_v52  ;;  %v581_v59 = vand.u32 2147483648, %v569_v52  ;;  %vm575_vm10 = vweird.f32 %v569_v52  ;;  %v579_v58 = vand.u32 2147483647, %v569_v52 }
 0x584   :  { %v582_v1 = vor.u32 1.1754944e-38, %v581_v59  ;;  %vm580_vm12 = vcmp.eq.f32.partialorder %v579_v58, 8.507059e+37 }
 0x588   :  { %v1428_v53 = vpop.eup %1427 }
 0x589   :  { %v571_v54 = vmul.f32 %v1428_v53, %v569_v52  ;;  %vm576_vm8 = vweird.f32 %v1428_v53 }
 0x58a   :  { %vm577_vm11 = vmor %vm575_vm10, %vm576_vm8  ;;  %vm756_vm8 = vcmask 517376  }
 0x58b   :  { %v572_v55 = vsub.f32 1.0, %v571_v54 }
 0x58d   :  { %v573_v56 = vmul.f32 %v1428_v53, %v572_v55 }
 0x58f   :  { %v574_v57 = vadd.f32 %v1428_v53, %v573_v56 }
 0x591   :  { %v578_v60 = vsel %vm577_vm11, %v1428_v53, %v574_v57 }
 0x592   :  { %v583_v62 = vsel %vm580_vm12, %v582_v1, %v578_v60 }
 0x593   :  { %v598_v22 = vsub.f32 1.0, %v583_v62 }
 0x5aa   :  { %v543_v40 = vpop.permute.xlu2 %542 }
 0x5ab   :  { %v545_v43 = vmul.f32 %v543_v40, %v537_v41 }
 0x5ad   :  { %547 = vrot.lane.b32.xlu0 %v545_v43, %s1551_s18 }
 0x5e9   :  { %v589_v61 = vpop.permute.xlu1 %588 }
 0x5ea   :  { %v591_v0 = vmul.f32 %v589_v61, %v583_v62 }
 0x5ec   :  { %593 = vrot.lane.b32.xlu2 %v591_v0, %s1551_s18 }
 0x61f   :  { %v548_v3 = vpop.permute.xlu0 %547 }
 0x620   :  { %v550_v5 = vadd.f32 %v548_v3, %v514_v25  ;;  %v607_v25 = vmul.f32 %v605_v23, %v583_v62 }
 0x622   :  { %1429 = vtanh.f32 %v550_v5 }
 0x628   :  { %v1430_v6 = vpop.eup %1429 }
 0x629   :  { %554 = vrot.lane.b32.xlu0 %v1430_v6, %s1549_s15 }
 0x646   :  { %v594_v8 = vpop.permute.xlu2 %593 }
 0x647   :  { %v596_v9 = vadd.f32 %v594_v8, %v515_v45 }
 0x649   :  { %1431 = vtanh.f32 %v596_v9 }
 0x64f   :  { %v1432_v11 = vpop.eup %1431 }
 0x650   :  { %600 = vrot.lane.b32.xlu1 %v1432_v11, %s1549_s15 }
 0x69b   :  { %v555_v14 = vpop.permute.xlu0 %554 }
 0x69c   :  { %v557_v16 = vmul.f32 %v555_v14, %v552_v12 }
 0x69e   :  { %v1748_v18 = vadd.f32 %v560_v15, %v557_v16 }
 0x6a0   :  { %v617_v19 = vpack.c.bf16 %v1748_v18, %v1748_v18 }
 0x6a2   :  { %v619_v21 = vrot.slane %v617_v19, 2 }
 0x6a4   :  { %620 = vrot.lane.b32.xlu2 %v619_v21, %s1549_s15 }
 0x6c2   :  { %v601_v24 = vpop.permute.xlu1 %600 }
 0x6c3   :  { %v603_v26 = vmul.f32 %v601_v24, %v598_v22 }
 0x6c5   :  { %v608_v27 = vadd.f32 %v607_v25, %v603_v26  ;;  %v703_v26 = vrot.slane %v1748_v18, 6 }
 0x6c7   :  { %v638_v28 = vpack.c.bf16 %v608_v27, %v608_v27  ;;  %616 = vst.msk [vmem:[%s1947_s6 + $0x8] sm:$0xc] %vm615_vm13, %v608_v27  ;;  %v746_v59 = vrot.slane %v608_v27, 2 }
 0x6c9   :  { %v640_v29 = vrot.slane %v638_v28, 1 }
 0x6cb   :  { %641 = vrot.lane.b32.xlu0 %v640_v29, %s1549_s15 }
 0x6fe   :  { %v621_v30 = vpop.permute.xlu2 %620 }
 0x6ff   :  { %1364 = vmatmul.msk.bf16.vlgmr.msrb.gmra.mxu0 %vm174_vm0, %v621_v30 }
 0x700   :  { %1195 = vmatpush.bf16.msrb.mxu0 %v1609_v4 }
 0x704   :  { %1196 = vmatpush.bf16.msrb.mxu0 %v1616_v7 }
 0x73d   :  { %v642_v32 = vpop.permute.xlu0 %641 }
 0x73e   :  { %1365 = vmatmul.msk.bf16.vlgmr.msrb.gmra.mxu1 %vm174_vm0, %v642_v32 }
 0x73f   :  { %1216 = vmatpush.bf16.msrb.mxu1 %v1626_v17  ;;  %v659_v17 = vld [vmem:[#allocation2 + $0x10] sm:$0xc0] }
 0x743   :  { %1217 = vmatpush.bf16.msrb.mxu1 %v1633_v20 }
 0x77c   :  { %v634_v33 = vpop.f32.mrf.mxu0 }
 0x77d   :  { %v684_v34 = vadd.f32 %v634_v33, %v1657_v42  ;;  %v662_v47 = vrot.slane %v634_v33, 2 }
 0x77f   :  { %v686_v35 = vrot.slane %v684_v34, 2  ;;  %v664_v39 = vadd.f32 %v662_v47, %v659_v17 }
 0x781   :  { %687 = vrot.lane.b32.xlu1 %v686_v35, %s1551_s18  ;;  %v1366_v41 = vmul.f32 -1.442695, %v664_v39 }
 0x784   :  { %v636_v4 = vpop.f32.mrf.mxu0 }
 0x7bb   :  { %v655_v7 = vpop.f32.mrf.mxu1 }
 0x7bc   :  { %v707_v37 = vadd.f32 %v660_v36, %v655_v7  ;;  %v727_v46 = vadd.f32 %v655_v7, %v1670_v63 }
 0x7be   :  { %v1367_v38 = vmul.f32 -1.442695, %v707_v37  ;;  %729 = vrot.lane.b32.xlu2 %v727_v46, %s1551_s18 }
 0x7c0   :  { %1433 = vpow2.f32 %v1367_v38 }
 0x7c3   :  { %v657_v20 = vpop.f32.mrf.mxu1 }
 0x7c6   :  { %v1434_v40 = vpop.eup %1433 }
 0x7c7   :  { %v711_v43 = vadd.f32 1.0, %v1434_v40  ;;  %v799_v40 = vld [vmem:[#allocation2 + $0x18] sm:$0x3] }
 0x7c9   :  { %1435 = vrcp.f32 %v711_v43  ;;  %v723_v52 = vand.u32 2147483648, %v711_v43  ;;  %v721_v54 = vand.u32 2147483647, %v711_v43  ;;  %vm717_vm15 = vweird.f32 %v711_v43 }
 0x7ca   :  { %1437 = vpow2.f32 %v1366_v41 }
 0x7cb   :  { %v724_v56 = vor.u32 1.1754944e-38, %v723_v52  ;;  %vm722_vm2 = vcmp.eq.f32.partialorder %v721_v54, 8.507059e+37 }
 0x7cf   :  { %v1436_v44 = vpop.eup %1435 }
 0x7d0   :  { %v1438_v45 = vpop.eup %1437  ;;  %v713_v48 = vmul.f32 %v1436_v44, %v711_v43  ;;  %vm718_vm14 = vweird.f32 %v1436_v44 }
 0x7d1   :  { %v668_v51 = vadd.f32 1.0, %v1438_v45  ;;  %vm719_vm1 = vmor %vm717_vm15, %vm718_vm14 }
 0x7d2   :  { %v714_v49 = vsub.f32 1.0, %v713_v48 }
 0x7d3   :  { %1439 = vrcp.f32 %v668_v51  ;;  %v680_v5 = vand.u32 2147483648, %v668_v51  ;;  %vm674_vm5 = vweird.f32 %v668_v51  ;;  %v678_v6 = vand.u32 2147483647, %v668_v51 }
 0x7d4   :  { %v715_v53 = vmul.f32 %v1436_v44, %v714_v49 }
 0x7d5   :  { %v681_v9 = vor.u32 1.1754944e-38, %v680_v5  ;;  %vm679_vm7 = vcmp.eq.f32.partialorder %v678_v6, 8.507059e+37 }
 0x7d6   :  { %v716_v55 = vadd.f32 %v1436_v44, %v715_v53  ;;  %v800_v53 = vld [vmem:[#allocation2] sm:$0xc0] }
 0x7d8   :  { %v720_v57 = vsel %vm719_vm1, %v1436_v44, %v716_v55 }
 0x7d9   :  { %v725_v58 = vsel %vm722_vm2, %v724_v56, %v720_v57  ;;  %v1440_v1 = vpop.eup %1439 }
 0x7da   :  { %v748_v60 = vmul.f32 %v746_v59, %v725_v58  ;;  %v670_v61 = vmul.f32 %v1440_v1, %v668_v51  ;;  %vm675_vm4 = vweird.f32 %v1440_v1  ;;  %v739_v32 = vsub.f32 1.0, %v725_v58 }
 0x7db   :  { %vm676_vm6 = vmor %vm674_vm5, %vm675_vm4 }
 0x7dc   :  { %v671_v62 = vsub.f32 1.0, %v670_v61 }
 0x7de   :  { %v672_v0 = vmul.f32 %v1440_v1, %v671_v62 }
 0x7e0   :  { %v673_v3 = vadd.f32 %v1440_v1, %v672_v0 }
 0x7e2   :  { %v677_v8 = vsel %vm676_vm6, %v1440_v1, %v673_v3 }
 0x7e3   :  { %v682_v12 = vsel %vm679_vm7, %v681_v9, %v677_v8 }
 0x7e4   :  { %v697_v25 = vsub.f32 1.0, %v682_v12  ;;  %v705_v28 = vmul.f32 %v703_v26, %v682_v12 }
 0x7f3   :  { %v688_v11 = vpop.permute.xlu1 %687 }
 0x7f4   :  { %v690_v13 = vmul.f32 %v688_v11, %v682_v12 }
 0x7f6   :  { %692 = vrot.lane.b32.xlu0 %v690_v13, %s1551_s18 }
 0x818   :  { %v730_v14 = vpop.permute.xlu2 %729 }
 0x819   :  { %v732_v15 = vmul.f32 %v730_v14, %v725_v58 }
 0x81b   :  { %734 = vrot.lane.b32.xlu1 %v732_v15, %s1551_s18 }
 0x868   :  { %v693_v16 = vpop.permute.xlu0 %692 }
 0x869   :  { %v695_v19 = vadd.f32 %v693_v16, %v659_v17 }
 0x86b   :  { %1441 = vtanh.f32 %v695_v19 }
 0x871   :  { %v1442_v21 = vpop.eup %1441 }
 0x872   :  { %699 = vrot.lane.b32.xlu2 %v1442_v21, %s1549_s15 }
 0x88d   :  { %v735_v22 = vpop.permute.xlu1 %734 }
 0x88e   :  { %v737_v23 = vadd.f32 %v735_v22, %v660_v36 }
 0x890   :  { %1443 = vtanh.f32 %v737_v23 }
 0x896   :  { %v1444_v24 = vpop.eup %1443 }
 0x897   :  { %741 = vrot.lane.b32.xlu0 %v1444_v24, %s1549_s15 }
 0x8cc   :  { %v700_v27 = vpop.permute.xlu2 %699 }
 0x8cd   :  { %v702_v29 = vmul.f32 %v700_v27, %v697_v25 }
 0x8cf   :  { %v1776_v30 = vadd.f32 %v705_v28, %v702_v29 }
 0x8d1   :  { %v758_v10 = vpack.c.bf16 %v1776_v30, %v1776_v30 }
 0x8d3   :  { %v760_v31 = vrot.slane %v758_v10, 3  ;;  %v839_v10 = vrot.slane %v1776_v30, 6 }
 0x8d5   :  { %761 = vrot.lane.b32.xlu1 %v760_v31, %s1549_s15 }
 0x909   :  { %v742_v33 = vpop.permute.xlu0 %741 }
 0x90a   :  { %v744_v34 = vmul.f32 %v742_v33, %v739_v32 }
 0x90c   :  { %v1781_v35 = vadd.f32 %v748_v60, %v744_v34 }
 0x90e   :  { %v779_v4 = vpack.c.bf16 %v1781_v35, %v1781_v35  ;;  %757 = vst.msk [vmem:[%s1947_s6 + $0x8] sm:$0x3] %vm756_vm8, %v1781_v35 }
 0x910   :  { %781 = vrot.lane.b32.xlu2 %v779_v4, %s1549_s15 }
 0x947   :  { %v762_v7 = vpop.permute.xlu1 %761 }
 0x948   :  { %1368 = vmatmul.msk.bf16.vlgmr.msrb.gmra.mxu2 %vm174_vm0, %v762_v7 }
 0x96a   :  { %v782_v36 = vpop.permute.xlu2 %781 }
 0x96b   :  { %1369 = vmatmul.msk.bf16.vlgmr.msrb.gmra.mxu3 %vm174_vm0, %v782_v36  ;;  %v886_v36 = vrot.slane %v1781_v35, 2 }
 0x9cb   :  { %v775_v37 = vpop.f32.mrf.mxu2 }
 0x9cc   :  { %v821_v46 = vadd.f32 %v775_v37, %v1657_v42  ;;  %v801_v41 = vadd.f32 %v799_v40, %v775_v37 }
 0x9ce   :  { %823 = vrot.lane.b32.xlu0 %v821_v46, %s1551_s18  ;;  %v1370_v43 = vmul.f32 -1.442695, %v801_v41 }
 0x9d0   :  { %1445 = vpow2.f32 %v1370_v43 }
 0x9d3   :  { %v777_v47 = vpop.f32.mrf.mxu2 }
 0x9d6   :  { %v1446_v44 = vpop.eup %1445 }
 0x9d7   :  { %v805_v45 = vadd.f32 1.0, %v1446_v44 }
 0x9d9   :  { %1447 = vrcp.f32 %v805_v45  ;;  %v817_v59 = vand.u32 2147483648, %v805_v45  ;;  %vm811_vm11 = vweird.f32 %v805_v45  ;;  %v815_v58 = vand.u32 2147483647, %v805_v45 }
 0x9db   :  { %v818_v1 = vor.u32 1.1754944e-38, %v817_v59  ;;  %vm816_vm14 = vcmp.eq.f32.partialorder %v815_v58, 8.507059e+37 }
 0x9df   :  { %v1448_v48 = vpop.eup %1447 }
 0x9e0   :  { %v807_v49 = vmul.f32 %v1448_v48, %v805_v45  ;;  %vm812_vm10 = vweird.f32 %v1448_v48 }
 0x9e1   :  { %vm813_vm12 = vmor %vm811_vm11, %vm812_vm10 }
 0x9e2   :  { %v808_v52 = vsub.f32 1.0, %v807_v49 }
 0x9e4   :  { %v809_v55 = vmul.f32 %v1448_v48, %v808_v52  ;;  %v937_v52 = vld [vmem:[#allocation2 + $0x18] sm:$0xc] }
 0x9e6   :  { %v810_v57 = vadd.f32 %v1448_v48, %v809_v55 }
 0x9e8   :  { %v814_v60 = vsel %vm813_vm12, %v1448_v48, %v810_v57 }
 0x9e9   :  { %v819_v62 = vsel %vm816_vm14, %v818_v1, %v814_v60 }
 0x9ea   :  { %v833_v29 = vsub.f32 1.0, %v819_v62  ;;  %v841_v32 = vmul.f32 %v839_v10, %v819_v62 }
 0x9ee   :  { %v795_v38 = vpop.f32.mrf.mxu3 }
 0x9ef   :  { %v866_v17 = vadd.f32 %v795_v38, %v1670_v63  ;;  %v844_v51 = vrot.slane %v795_v38, 2 }
 0x9f1   :  { %v868_v39 = vrot.slane %v866_v17, 2  ;;  %v846_v54 = vadd.f32 %v844_v51, %v800_v53 }
 0x9f3   :  { %869 = vrot.lane.b32.xlu1 %v868_v39, %s1551_s18  ;;  %v1371_v56 = vmul.f32 -1.442695, %v846_v54 }
 0x9f5   :  { %1449 = vpow2.f32 %v1371_v56 }
 0x9f6   :  { %v797_v20 = vpop.f32.mrf.mxu3 }
 0x9fb   :  { %v1450_v3 = vpop.eup %1449 }
 0x9fc   :  { %v850_v5 = vadd.f32 1.0, %v1450_v3 }
 0x9fe   :  { %1451 = vrcp.f32 %v850_v5  ;;  %v862_v13 = vand.u32 2147483648, %v850_v5  ;;  %vm856_vm1 = vweird.f32 %v850_v5  ;;  %v860_v14 = vand.u32 2147483647, %v850_v5 }
 0xa00   :  { %v863_v16 = vor.u32 1.1754944e-38, %v862_v13  ;;  %vm861_vm4 = vcmp.eq.f32.partialorder %v860_v14, 8.507059e+37 }
 0xa04   :  { %v1452_v6 = vpop.eup %1451 }
 0xa05   :  { %v852_v8 = vmul.f32 %v1452_v6, %v850_v5  ;;  %vm857_vm15 = vweird.f32 %v1452_v6 }
 0xa06   :  { %vm858_vm2 = vmor %vm856_vm1, %vm857_vm15 }
 0xa07   :  { %v853_v9 = vsub.f32 1.0, %v852_v8 }
 0xa09   :  { %v854_v11 = vmul.f32 %v1452_v6, %v853_v9 }
 0xa0b   :  { %v855_v12 = vadd.f32 %v1452_v6, %v854_v11 }
 0xa0d   :  { %v859_v15 = vsel %vm858_vm2, %v1452_v6, %v855_v12  ;;  %v938_v12 = vld [vmem:[#allocation2] sm:$0x30] }
 0xa0e   :  { %v864_v21 = vsel %vm861_vm4, %v863_v16, %v859_v15 }
 0xa0f   :  { %v879_v7 = vsub.f32 1.0, %v864_v21  ;;  %v888_v46 = vmul.f32 %v886_v36, %v864_v21 }
 0xa40   :  { %v824_v61 = vpop.permute.xlu0 %823 }
 0xa41   :  { %v826_v0 = vmul.f32 %v824_v61, %v819_v62 }
 0xa43   :  { %828 = vrot.lane.b32.xlu2 %v826_v0, %s1551_s18 }
 0xa65   :  { %v870_v19 = vpop.permute.xlu1 %869 }
 0xa66   :  { %v872_v22 = vmul.f32 %v870_v19, %v864_v21 }
 0xa68   :  { %874 = vrot.lane.b32.xlu0 %v872_v22, %s1551_s18 }
 0xa9d   :  { %v829_v23 = vpop.permute.xlu2 %828 }
 0xa9e   :  { %v831_v24 = vadd.f32 %v829_v23, %v799_v40 }
 0xaa0   :  { %1453 = vtanh.f32 %v831_v24 }
 0xaa6   :  { %v1454_v25 = vpop.eup %1453 }
 0xaa7   :  { %835 = vrot.lane.b32.xlu1 %v1454_v25, %s1549_s15 }
 0xada   :  { %v875_v26 = vpop.permute.xlu0 %874 }
 0xadb   :  { %v877_v27 = vadd.f32 %v875_v26, %v800_v53 }
 0xadd   :  { %1455 = vtanh.f32 %v877_v27 }
 0xae3   :  { %v1456_v28 = vpop.eup %1455 }
 0xae4   :  { %881 = vrot.lane.b32.xlu2 %v1456_v28, %s1549_s15 }
 0xb19   :  { %v836_v31 = vpop.permute.xlu1 %835 }
 0xb1a   :  { %v838_v33 = vmul.f32 %v836_v31, %v833_v29 }
 0xb1c   :  { %v1802_v34 = vadd.f32 %v841_v32, %v838_v33 }
 0xb1e   :  { %v896_v4 = vpack.c.bf16 %v1802_v34, %v1802_v34 }
 0xb20   :  { %898 = vrot.lane.b32.xlu0 %v896_v4, %s1549_s15 }
 0xb3e   :  { %v882_v37 = vpop.permute.xlu2 %881 }
 0xb3f   :  { %v884_v47 = vmul.f32 %v882_v37, %v879_v7 }
 0xb41   :  { %v1808_v38 = vadd.f32 %v888_v46, %v884_v47  ;;  %v981_v47 = vrot.slane %v1802_v34, 6 }
 0xb43   :  { %v916_v17 = vpack.c.bf16 %v1808_v38, %v1808_v38 }
 0xb45   :  { %v918_v39 = vrot.slane %v916_v17, 3 }
 0xb47   :  { %919 = vrot.lane.b32.xlu1 %v918_v39, %s1549_s15 }
 0xb92   :  { %v899_v20 = vpop.permute.xlu0 %898 }
 0xb93   :  { %1372 = vmatmul.msk.bf16.vlgmr.msra.gmra.mxu0 %vm174_vm0, %v899_v20 }
 0xbb9   :  { %v920_v40 = vpop.permute.xlu1 %919 }
 0xbba   :  { %1373 = vmatmul.msk.bf16.vlgmr.msra.gmra.mxu1 %vm174_vm0, %v920_v40 }
 0xc10   :  { %v912_v41 = vpop.f32.mrf.mxu0 }
 0xc11   :  { %v962_v35 = vadd.f32 %v912_v41, %v1657_v42  ;;  %v940_v49 = vrot.slane %v912_v41, 6 }
 0xc13   :  { %v964_v43 = vrot.slane %v962_v35, 6  ;;  %v942_v53 = vadd.f32 %v940_v49, %v937_v52 }
 0xc15   :  { %965 = vrot.lane.b32.xlu2 %v964_v43, %s1551_s18  ;;  %v1374_v55 = vmul.f32 -1.442695, %v942_v53 }
 0xc17   :  { %1457 = vpow2.f32 %v1374_v55 }
 0xc18   :  { %v914_v44 = vpop.f32.mrf.mxu0 }
 0xc19   :  { %v1028_v44 = vrot.slane %v1808_v38, 2 }
 0xc1d   :  { %v1458_v56 = vpop.eup %1457 }
 0xc1e   :  { %v946_v57 = vadd.f32 1.0, %v1458_v56 }
 0xc20   :  { %1459 = vrcp.f32 %v946_v57  ;;  %v958_v62 = vand.u32 2147483648, %v946_v57  ;;  %vm952_vm6 = vweird.f32 %v946_v57  ;;  %v956_v0 = vand.u32 2147483647, %v946_v57 }
 0xc22   :  { %v959_v5 = vor.u32 1.1754944e-38, %v958_v62  ;;  %vm957_vm10 = vcmp.eq.f32.partialorder %v956_v0, 8.507059e+37  ;;  %v1080_v0 = vld [vmem:[#allocation2 + $0x18] sm:$0x30] }
 0xc26   :  { %v1460_v59 = vpop.eup %1459 }
 0xc27   :  { %v948_v58 = vmul.f32 %v1460_v59, %v946_v57  ;;  %vm953_vm5 = vweird.f32 %v1460_v59 }
 0xc28   :  { %vm954_vm7 = vmor %vm952_vm6, %vm953_vm5 }
 0xc29   :  { %v949_v60 = vsub.f32 1.0, %v948_v58 }
 0xc2b   :  { %v950_v1 = vmul.f32 %v1460_v59, %v949_v60 }
 0xc2d   :  { %v951_v61 = vadd.f32 %v1460_v59, %v950_v1 }
 0xc2f   :  { %v955_v3 = vsel %vm954_vm7, %v1460_v59, %v951_v61 }
 0xc30   :  { %v960_v8 = vsel %vm957_vm10, %v959_v5, %v955_v3 }
 0xc31   :  { %v975_v46 = vsub.f32 1.0, %v960_v8  ;;  %v983_v39 = vmul.f32 %v981_v47, %v960_v8 }
 0xc37   :  { %v933_v45 = vpop.f32.mrf.mxu1 }
 0xc38   :  { %v1008_v48 = vadd.f32 %v933_v45, %v1670_v63  ;;  %v986_v11 = vrot.slane %v933_v45, 4 }
 0xc3a   :  { %v1010_v51 = vrot.slane %v1008_v48, 4  ;;  %v988_v13 = vadd.f32 %v986_v11, %v938_v12 }
 0xc3c   :  { %1011 = vrot.lane.b32.xlu1 %v1010_v51, %s1551_s18  ;;  %v1375_v14 = vmul.f32 -1.442695, %v988_v13 }
 0xc3e   :  { %1461 = vpow2.f32 %v1375_v14 }
 0xc3f   :  { %v935_v54 = vpop.f32.mrf.mxu1 }
 0xc44   :  { %v1462_v15 = vpop.eup %1461 }
 0xc45   :  { %v992_v16 = vadd.f32 1.0, %v1462_v15 }
 0xc47   :  { %1463 = vrcp.f32 %v992_v16  ;;  %v1004_v25 = vand.u32 2147483648, %v992_v16  ;;  %vm998_vm12 = vweird.f32 %v992_v16  ;;  %v1002_v26 = vand.u32 2147483647, %v992_v16 }
 0xc49   :  { %v1005_v28 = vor.u32 1.1754944e-38, %v1004_v25  ;;  %vm1003_vm15 = vcmp.eq.f32.partialorder %v1002_v26, 8.507059e+37 }
 0xc4d   :  { %v1464_v19 = vpop.eup %1463 }
 0xc4e   :  { %v994_v21 = vmul.f32 %v1464_v19, %v992_v16  ;;  %vm999_vm11 = vweird.f32 %v1464_v19 }
 0xc4f   :  { %vm1000_vm14 = vmor %vm998_vm12, %vm999_vm11 }
 0xc50   :  { %v995_v22 = vsub.f32 1.0, %v994_v21 }
 0xc52   :  { %v996_v23 = vmul.f32 %v1464_v19, %v995_v22 }
 0xc54   :  { %v997_v24 = vadd.f32 %v1464_v19, %v996_v23 }
 0xc56   :  { %v1001_v27 = vsel %vm1000_vm14, %v1464_v19, %v997_v24 }
 0xc57   :  { %v1006_v10 = vsel %vm1003_vm15, %v1005_v28, %v1001_v27  ;;  %v1081_v27 = vld [vmem:[#allocation2] sm:$0xc] }
 0xc58   :  { %v1021_v43 = vsub.f32 1.0, %v1006_v10  ;;  %v1030_v48 = vmul.f32 %v1028_v44, %v1006_v10 }
 0xc6f   :  { %v966_v6 = vpop.permute.xlu2 %965 }
 0xc70   :  { %v968_v9 = vmul.f32 %v966_v6, %v960_v8 }
 0xc72   :  { %970 = vrot.lane.b32.xlu0 %v968_v9, %s1551_s18 }
 0xcae   :  { %v1012_v29 = vpop.permute.xlu1 %1011 }
 0xcaf   :  { %v1014_v31 = vmul.f32 %v1012_v29, %v1006_v10 }
 0xcb1   :  { %1016 = vrot.lane.b32.xlu2 %v1014_v31, %s1551_s18 }
 0xce4   :  { %v971_v32 = vpop.permute.xlu0 %970 }
 0xce5   :  { %v973_v33 = vadd.f32 %v971_v32, %v937_v52 }
 0xce7   :  { %1465 = vtanh.f32 %v973_v33 }
 0xced   :  { %v1466_v4 = vpop.eup %1465 }
 0xcee   :  { %977 = vrot.lane.b32.xlu0 %v1466_v4, %s1549_s15 }
 0xd0b   :  { %v1017_v7 = vpop.permute.xlu2 %1016 }
 0xd0c   :  { %v1019_v36 = vadd.f32 %v1017_v7, %v938_v12 }
 0xd0e   :  { %1467 = vtanh.f32 %v1019_v36 }
 0xd14   :  { %v1468_v37 = vpop.eup %1467 }
 0xd15   :  { %1023 = vrot.lane.b32.xlu1 %v1468_v37, %s1549_s15 }
 0xd60   :  { %v978_v17 = vpop.permute.xlu0 %977 }
 0xd61   :  { %v980_v20 = vmul.f32 %v978_v17, %v975_v46 }
 0xd63   :  { %v1824_v40 = vadd.f32 %v983_v39, %v980_v20 }
 0xd65   :  { %v1038_v41 = vpack.c.bf16 %v1824_v40, %v1824_v40 }
 0xd67   :  { %v1040_v35 = vrot.slane %v1038_v41, 1 }
 0xd69   :  { %1041 = vrot.lane.b32.xlu2 %v1040_v35, %s1549_s15 }
 0xd87   :  { %v1024_v45 = vpop.permute.xlu1 %1023 }
 0xd88   :  { %v1026_v49 = vmul.f32 %v1024_v45, %v1021_v43 }
 0xd8a   :  { %v1830_v51 = vadd.f32 %v1030_v48, %v1026_v49 }
 0xd8c   :  { %v1059_v52 = vpack.c.bf16 %v1830_v51, %v1830_v51 }
 0xd8e   :  { %v1061_v53 = vrot.slane %v1059_v52, 2 }
 0xd90   :  { %1062 = vrot.lane.b32.xlu0 %v1061_v53, %s1549_s15  ;;  %v1124_v53 = vrot.slane %v1824_v40, 6 }
 0xdc3   :  { %v1042_v54 = vpop.permute.xlu2 %1041 }
 0xdc4   :  { %1376 = vmatmul.msk.bf16.vlgmr.msra.gmra.mxu2 %vm174_vm0, %v1042_v54 }
 0xe02   :  { %v1063_v55 = vpop.permute.xlu0 %1062 }
 0xe03   :  { %1377 = vmatmul.msk.bf16.vlgmr.msra.gmra.mxu3 %vm174_vm0, %v1063_v55 }
 0xe47   :  { %v1055_v56 = vpop.f32.mrf.mxu2 }
 0xe48   :  { %v1105_v57 = vadd.f32 %v1055_v56, %v1657_v42  ;;  %v1083_v61 = vrot.slane %v1055_v56, 4 }
 0xe4a   :  { %v1107_v59 = vrot.slane %v1105_v57, 4  ;;  %v1085_v3 = vadd.f32 %v1083_v61, %v1080_v0 }
 0xe4c   :  { %1108 = vrot.lane.b32.xlu1 %v1107_v59, %s1551_s18  ;;  %v1378_v6 = vmul.f32 -1.442695, %v1085_v3 }
 0xe4e   :  { %1469 = vpow2.f32 %v1378_v6 }
 0xe4f   :  { %v1057_v58 = vpop.f32.mrf.mxu2 }
 0xe54   :  { %v1470_v8 = vpop.eup %1469 }
 0xe55   :  { %v1089_v9 = vadd.f32 1.0, %v1470_v8 }
 0xe57   :  { %1471 = vrcp.f32 %v1089_v9  ;;  %v1101_v16 = vand.u32 2147483648, %v1089_v9  ;;  %vm1095_vm2 = vweird.f32 %v1089_v9  ;;  %v1099_v19 = vand.u32 2147483647, %v1089_v9 }
 0xe59   :  { %v1102_v22 = vor.u32 1.1754944e-38, %v1101_v16  ;;  %vm1100_vm5 = vcmp.eq.f32.partialorder %v1099_v19, 8.507059e+37  ;;  %v1223_v16 = vld [vmem:[#allocation2 + $0x18] sm:$0xc0] }
 0xe5d   :  { %v1472_v11 = vpop.eup %1471 }
 0xe5e   :  { %v1091_v12 = vmul.f32 %v1472_v11, %v1089_v9  ;;  %vm1096_vm1 = vweird.f32 %v1472_v11 }
 0xe5f   :  { %vm1097_vm4 = vmor %vm1095_vm2, %vm1096_vm1 }
 0xe60   :  { %v1092_v13 = vsub.f32 1.0, %v1091_v12 }
 0xe62   :  { %v1093_v14 = vmul.f32 %v1472_v11, %v1092_v13 }
 0xe64   :  { %v1094_v15 = vadd.f32 %v1472_v11, %v1093_v14 }
 0xe66   :  { %v1098_v21 = vsel %vm1097_vm4, %v1472_v11, %v1094_v15 }
 0xe67   :  { %v1103_v24 = vsel %vm1100_vm5, %v1102_v22, %v1098_v21 }
 0xe68   :  { %v1118_v52 = vsub.f32 1.0, %v1103_v24  ;;  %v1126_v55 = vmul.f32 %v1124_v53, %v1103_v24 }
 0xe86   :  { %v1076_v60 = vpop.f32.mrf.mxu3 }
 0xe87   :  { %v1151_v1 = vadd.f32 %v1076_v60, %v1670_v63  ;;  %v1129_v26 = vrot.slane %v1076_v60, 6 }
 0xe89   :  { %v1153_v62 = vrot.slane %v1151_v1, 6  ;;  %v1131_v28 = vadd.f32 %v1129_v26, %v1081_v27  ;;  %v1171_v1 = vrot.slane %v1830_v51, 2 }
 0xe8b   :  { %1154 = vrot.lane.b32.xlu0 %v1153_v62, %s1551_s18  ;;  %v1379_v29 = vmul.f32 -1.442695, %v1131_v28 }
 0xe8d   :  { %1473 = vpow2.f32 %v1379_v29 }
 0xe8e   :  { %v1078_v5 = vpop.f32.mrf.mxu3 }
 0xe93   :  { %v1474_v10 = vpop.eup %1473 }
 0xe94   :  { %v1135_v31 = vadd.f32 1.0, %v1474_v10 }
 0xe96   :  { %1475 = vrcp.f32 %v1135_v31  ;;  %v1147_v37 = vand.u32 2147483648, %v1135_v31  ;;  %vm1141_vm7 = vweird.f32 %v1135_v31  ;;  %v1145_v46 = vand.u32 2147483647, %v1135_v31 }
 0xe98   :  { %v1148_v17 = vor.u32 1.1754944e-38, %v1147_v37  ;;  %vm1146_vm11 = vcmp.eq.f32.partialorder %v1145_v46, 8.507059e+37  ;;  %v1224_v37 = vld [vmem:[#allocation2] sm:$0x3] }
 0xe9c   :  { %v1476_v32 = vpop.eup %1475 }
 0xe9d   :  { %v1137_v33 = vmul.f32 %v1476_v32, %v1135_v31  ;;  %vm1142_vm6 = vweird.f32 %v1476_v32 }
 0xe9e   :  { %vm1143_vm10 = vmor %vm1141_vm7, %vm1142_vm6  ;;  %vm613_vm6 = vcmask 259076   ;;  %vm324_vm7 = vcmask 254976  }
 0xe9f   :  { %v1138_v4 = vsub.f32 1.0, %v1137_v33 }
 0xea1   :  { %v1139_v7 = vmul.f32 %v1476_v32, %v1138_v4 }
 0xea3   :  { %v1140_v36 = vadd.f32 %v1476_v32, %v1139_v7 }
 0xea5   :  { %v1144_v47 = vsel %vm1143_vm10, %v1476_v32, %v1140_v36  ;;  %vm468_vm10 = vcmask 257026  }
 0xea6   :  { %v1149_v20 = vsel %vm1146_vm11, %v1148_v17, %v1144_v47 }
 0xea7   :  { %v1164_v60 = vsub.f32 1.0, %v1149_v20  ;;  %v1173_v62 = vmul.f32 %v1171_v1, %v1149_v20 }
 0xebe   :  { %v1109_v23 = vpop.permute.xlu1 %1108 }
 0xebf   :  { %v1111_v25 = vmul.f32 %v1109_v23, %v1103_v24 }
 0xec1   :  { %1113 = vrot.lane.b32.xlu2 %v1111_v25, %s1551_s18 }
 0xefd   :  { %v1155_v39 = vpop.permute.xlu0 %1154 }
 0xefe   :  { %v1157_v41 = vmul.f32 %v1155_v39, %v1149_v20 }
 0xf00   :  { %1159 = vrot.lane.b32.xlu1 %v1157_v41, %s1551_s18 }
 0xf1b   :  { %v1114_v35 = vpop.permute.xlu2 %1113 }
 0xf1c   :  { %v1116_v43 = vadd.f32 %v1114_v35, %v1080_v0 }
 0xf1e   :  { %1477 = vtanh.f32 %v1116_v43 }
 0xf24   :  { %v1478_v44 = vpop.eup %1477 }
 0xf25   :  { %1120 = vrot.lane.b32.xlu2 %v1478_v44, %s1549_s15 }
 0xf72   :  { %v1160_v45 = vpop.permute.xlu1 %1159 }
 0xf73   :  { %v1162_v48 = vadd.f32 %v1160_v45, %v1081_v27 }
 0xf75   :  { %1479 = vtanh.f32 %v1162_v48 }
 0xf7b   :  { %v1480_v49 = vpop.eup %1479 }
 0xf7c   :  { %1166 = vrot.lane.b32.xlu0 %v1480_v49, %s1549_s15 }
 0xf7f   :  { %v1121_v54 = vpop.permute.xlu2 %1120 }
 0xf80   :  { %v1123_v56 = vmul.f32 %v1121_v54, %v1118_v52 }
 0xf82   :  { %v1846_v57 = vadd.f32 %v1126_v55, %v1123_v56 }
 0xf84   :  { %v1181_v59 = vpack.c.bf16 %v1846_v57, %v1846_v57 }
 0xf86   :  { %v1183_v58 = vrot.slane %v1181_v59, 2 }
 0xf88   :  { %1184 = vrot.lane.b32.xlu1 %v1183_v58, %s1549_s15 }
 0xfee   :  { %v1167_v61 = vpop.permute.xlu0 %1166 }
 0xfef   :  { %v1169_v0 = vmul.f32 %v1167_v61, %v1164_v60 }
 0xff1   :  { %v1852_v3 = vadd.f32 %v1173_v62, %v1169_v0 }
 0xff3   :  { %v1202_v5 = vpack.c.bf16 %v1852_v3, %v1852_v3 }
 0xff5   :  { %v1204_v6 = vrot.slane %v1202_v5, 1 }
 0xff7   :  { %1205 = vrot.lane.b32.xlu2 %v1204_v6, %s1549_s15 }
 0xffa   :  { %v1185_v8 = vpop.permute.xlu1 %1184 }
 0xffb   :  { %1380 = vmatmul.msk.bf16.vlgmr.msrb.gmra.mxu0 %vm174_vm0, %v1185_v8 }
0x1051   :  { %v1206_v9 = vpop.permute.xlu2 %1205 }
0x1052   :  { %1381 = vmatmul.msk.bf16.vlgmr.msrb.gmra.mxu1 %vm174_vm0, %v1206_v9 }
0x1078   :  { %v1198_v11 = vpop.f32.mrf.mxu0 }
0x1079   :  { %v1248_v12 = vadd.f32 %v1198_v11, %v1657_v42  ;;  %v1226_v15 = vrot.slane %v1198_v11, 2 }
0x107b   :  { %v1250_v13 = vrot.slane %v1248_v12, 2  ;;  %v1228_v19 = vadd.f32 %v1226_v15, %v1223_v16 }
0x107d   :  { %1251 = vrot.lane.b32.xlu0 %v1250_v13, %s1551_s18  ;;  %v1382_v21 = vmul.f32 -1.442695, %v1228_v19 }
0x107f   :  { %1481 = vpow2.f32 %v1382_v21 }
0x1080   :  { %v1200_v14 = vpop.f32.mrf.mxu0 }
0x1085   :  { %v1482_v22 = vpop.eup %1481 }
0x1086   :  { %v1232_v23 = vadd.f32 1.0, %v1482_v22 }
0x1088   :  { %1483 = vrcp.f32 %v1232_v23  ;;  %v1244_v31 = vand.u32 2147483648, %v1232_v23  ;;  %vm1238_vm12 = vweird.f32 %v1232_v23  ;;  %v1242_v32 = vand.u32 2147483647, %v1232_v23 }
0x108a   :  { %v1245_v4 = vor.u32 1.1754944e-38, %v1244_v31  ;;  %vm1243_vm15 = vcmp.eq.f32.partialorder %v1242_v32, 8.507059e+37 }
0x108e   :  { %v1484_v27 = vpop.eup %1483 }
0x108f   :  { %v1234_v42 = vmul.f32 %v1484_v27, %v1232_v23  ;;  %vm1239_vm0 = vweird.f32 %v1484_v27 }
0x1090   :  { %vm1240_vm14 = vmor %vm1238_vm12, %vm1239_vm0 }
0x1091   :  { %v1235_v28 = vsub.f32 1.0, %v1234_v42 }
0x1093   :  { %v1236_v29 = vmul.f32 %v1484_v27, %v1235_v28 }
0x1095   :  { %v1237_v10 = vadd.f32 %v1484_v27, %v1236_v29 }
0x1097   :  { %v1241_v33 = vsel %vm1240_vm14, %v1484_v27, %v1237_v10 }
0x1098   :  { %v1246_v36 = vsel %vm1243_vm15, %v1245_v4, %v1241_v33 }
0x10cf   :  { %v1219_v24 = vpop.f32.mrf.mxu1 }
0x10d0   :  { %v1291_v25 = vadd.f32 %v1219_v24, %v1670_v63  ;;  %v1271_v46 = vadd.f32 %v1224_v37, %v1219_v24 }
0x10d2   :  { %1293 = vrot.lane.b32.xlu1 %v1291_v25, %s1551_s18  ;;  %v1383_v47 = vmul.f32 -1.442695, %v1271_v46 }
0x10d4   :  { %1485 = vpow2.f32 %v1383_v47 }
0x10d7   :  { %v1221_v26 = vpop.f32.mrf.mxu1 }
0x10da   :  { %v1486_v17 = vpop.eup %1485 }
0x10db   :  { %v1275_v39 = vadd.f32 1.0, %v1486_v17 }
0x10dd   :  { %1487 = vrcp.f32 %v1275_v39  ;;  %v1287_v45 = vand.u32 2147483648, %v1275_v39  ;;  %vm1281_vm2 = vweird.f32 %v1275_v39  ;;  %v1285_v48 = vand.u32 2147483647, %v1275_v39 }
0x10df   :  { %v1288_v52 = vor.u32 1.1754944e-38, %v1287_v45  ;;  %vm1286_vm5 = vcmp.eq.f32.partialorder %v1285_v48, 8.507059e+37 }
0x10e3   :  { %v1488_v20 = vpop.eup %1487 }
0x10e4   :  { %v1277_v41 = vmul.f32 %v1488_v20, %v1275_v39  ;;  %vm1282_vm1 = vweird.f32 %v1488_v20 }
0x10e5   :  { %vm1283_vm4 = vmor %vm1281_vm2, %vm1282_vm1 }
0x10e6   :  { %v1278_v35 = vsub.f32 1.0, %v1277_v41 }
0x10e8   :  { %v1279_v43 = vmul.f32 %v1488_v20, %v1278_v35 }
0x10ea   :  { %v1280_v44 = vadd.f32 %v1488_v20, %v1279_v43 }
0x10ec   :  { %v1284_v49 = vsel %vm1283_vm4, %v1488_v20, %v1280_v44 }
0x10ef   :  { %v1252_v7 = vpop.permute.xlu0 %1251 }
0x10f0   :  { %v1254_v63 = vmul.f32 %v1252_v7, %v1246_v36 }
0x10f2   :  { %1256 = vrot.lane.b32.xlu2 %v1254_v63, %s1551_s18 }
0x10fa   :  { %610 = vrot.lane.b32.xlu2 %v1748_v18, %s1549_s15  ;;  %v1289_v18 = vsel %vm1286_vm5, %v1288_v52, %v1284_v49 }
0x1144   :  { %v1294_v53 = vpop.permute.xlu1 %1293 }
0x1145   :  { %v1296_v54 = vmul.f32 %v1294_v53, %v1289_v18 }
0x1147   :  { %1298 = vrot.lane.b32.xlu0 %v1296_v54, %s1551_s18 }
0x114c   :  { %v1257_v55 = vpop.permute.xlu2 %1256 }
0x114d   :  { %v1259_v56 = vadd.f32 %v1257_v55, %v1223_v16 }
0x114f   :  { %1489 = vtanh.f32 %v1259_v56  ;;  %321 = vrot.lane.b32.xlu0 %v1680_v50, %s1549_s15 }
0x1154   :  { %v611_v59 = vpop.permute.xlu2 %610 }
0x1155   :  { %v1490_v58 = vpop.eup %1489  ;;  %614 = vst.msk [vmem:[%s1947_s6] sm:$0x30] %vm613_vm6, %v611_v59 }
0x1156   :  { %1037 = vst.msk [vmem:[%s1947_s6] sm:$0x30] %vm470_vm3, %v1830_v51  ;;  %1263 = vrot.lane.b32.xlu1 %v1490_v58, %s1549_s15  ;;  %v1267_v51 = vrot.slane %v1846_v57, 6  ;;  %vm754_vm3 = vcmask 261126  }
0x1157   :  { %751 = vrot.lane.b32.xlu0 %v1776_v30, %s1549_s15  ;;  %v1261_v30 = vsub.f32 1.0, %v1246_v36 }
0x1158   :  { %v1269_v62 = vmul.f32 %v1267_v51, %v1246_v36 }
0x115e   :  { %465 = vrot.lane.b32.xlu1 %v1718_v2, %s1549_s15 }
0x115f   :  { %1033 = vrot.lane.b32.xlu0 %v1824_v40, %s1549_s15 }
0x11b9   :  { %v1299_v50 = vpop.permute.xlu0 %1298 }
0x11ba   :  { %v1301_v60 = vadd.f32 %v1299_v50, %v1224_v37 }
0x11bc   :  { %1491 = vtanh.f32 %v1301_v60 }
0x11c1   :  { %v322_v1 = vpop.permute.xlu0 %321 }
0x11c2   :  { %v1492_v61 = vpop.eup %1491  ;;  %325 = vst.msk [vmem:[%s1947_s6] sm:$0x3] %vm324_vm7, %v322_v1 }
0x11c3   :  { %1305 = vrot.lane.b32.xlu2 %v1492_v61, %s1549_s15 }
0x11c8   :  { %v1264_v2 = vpop.permute.xlu1 %1263 }
0x11c9   :  { %v1266_v40 = vmul.f32 %v1264_v2, %v1261_v30  ;;  %v752_v0 = vpop.permute.xlu0 %751 }
0x11ca   :  { %755 = vst.msk [vmem:[%s1947_s6] sm:$0xc0] %vm754_vm3, %v752_v0 }
0x11cb   :  { %v1270_v5 = vadd.f32 %v1269_v62, %v1266_v40  ;;  %895 = vst.msk [vmem:[%s1947_s6] sm:$0xc0] %vm326_vm9, %v1808_v38  ;;  %891 = vrot.lane.b32.xlu2 %v1802_v34, %s1549_s15  ;;  %v1303_v34 = vsub.f32 1.0, %v1289_v18  ;;  %v1310_v38 = vrot.slane %v1852_v3, 2 }
0x11cd   :  { %1315 = vrot.lane.b32.xlu1 %v1270_v5, %s1549_s15  ;;  %v1312_v11 = vmul.f32 %v1310_v38, %v1289_v18 }
0x11d0   :  { %v466_v6 = vpop.permute.xlu1 %465 }
0x11d1   :  { %469 = vst.msk [vmem:[%s1947_s6] sm:$0xc] %vm468_vm10, %v466_v6  ;;  %v1034_v8 = vpop.permute.xlu0 %1033 }
0x11d2   :  { %1180 = vst.msk [vmem:[%s1947_s6] sm:$0xc] %vm615_vm13, %v1852_v3 }
0x11d3   :  { %1036 = vst.msk [vmem:[%s1947_s6 + $0x8] sm:$0xc] %vm468_vm10, %v1034_v8 }
0x11d5   :  { %1176 = vrot.lane.b32.xlu1 %v1846_v57, %s1549_s15 }
0x121d   :  { %v1306_v9 = vpop.permute.xlu2 %1305 }
0x121e   :  { %v1308_v12 = vmul.f32 %v1306_v9, %v1303_v34 }
0x1220   :  { %v1313_v13 = vadd.f32 %v1312_v11, %v1308_v12 }
0x1222   :  { %1319 = vst.msk [vmem:[%s1947_s6] sm:$0x3] %vm756_vm8, %v1313_v13 }
0x1225   :  { %v892_v14 = vpop.permute.xlu2 %891 }
0x1226   :  { %894 = vst.msk [vmem:[%s1947_s6 + $0x8] sm:$0x3] %vm324_vm7, %v892_v14 }
0x123f   :  { %v1316_v15 = vpop.permute.xlu1 %1315 }
0x1240   :  { %1318 = vst.msk [vmem:[%s1947_s6 + $0x8] sm:$0xc0] %vm754_vm3, %v1316_v15 }
0x1241   :  { %1320 = vst.msk [vmem:[%s1948_s7 - $0x6] sm:$0xc0] %vm754_vm3, %v1316_v15 }
0x1242   :  { %1321 = vst.msk [vmem:[%s1948_s7] sm:$0x3] %vm756_vm8, %v1313_v13 }
0x1247   :  { %v1177_v57 = vpop.permute.xlu1 %1176 }
0x1248   :  { %1179 = vst.msk [vmem:[%s1947_s6 + $0x8] sm:$0x30] %vm613_vm6, %v1177_v57 }
0x1249   :  { %1330 = vsyncpa [#allocation4], 1 }
0x124a   :  { %1331 = vsyncpa [#allocation6], 1 }

</bundles_post_ra>
